<compile_context>
chip_gen: v7x
topology: tpu7x:2x2x1
jax: 0.10.0
libtpu: 0.0.40
codegen_flags: <defaults>
</compile_context>

<pallas_src>
import functools

import jax
import jax.numpy as jnp
from jax.experimental import pallas as pl
from jax.experimental.pallas import tpu as pltpu


# ----------------------------- Pallas kernel ------------------------------

def _vq_kernel(x_ref, e_ref, esq_ref, enc_ref, q_ref, sse_ref, cnt_ref,
               *, n_valid, tn, n_half):
    # x_ref:   (TN, D)       flat input tile (f32)
    # e_ref:   (Kp, D)       codebook, rows zero-padded to Kp (resident)
    # esq_ref: (1, Kp)       ||e||^2 per code (padded rows = +1e30, resident)
    # enc_ref: (TN, Kp)      one-hot encodings, bf16 output (values exactly 0/1)
    # q_ref:   (TN, D)       quantized vectors, f32 output
    # sse_ref: (1, 1, 1)     per-core running sum of squared error
    # cnt_ref: (1, 1, Kp)    per-core running per-code counts
    i = pl.program_id(1)

    @pl.when(i == 0)
    def _init():
        sse_ref[...] = jnp.zeros_like(sse_ref)
        cnt_ref[...] = jnp.zeros_like(cnt_ref)

    x = x_ref[...]                      # (TN, D) f32
    e = e_ref[...]                      # (Kp, D) f32
    kp = e.shape[0]

    # Distance matmul: argmin over codes is invariant to the per-row ||x||^2
    # term, so dist = ||e||^2 - 2 x.e^T suffices (single lane-dense MXU pass).
    scores = jax.lax.dot_general(
        x, e, dimension_numbers=(((1,), (1,)), ((), ())),
        preferred_element_type=jnp.float32)              # (TN, Kp)
    dist = esq_ref[...] - 2.0 * scores                   # (TN, Kp)

    # argmin with first-match tie break (lane reductions on XLU).
    col = jax.lax.broadcasted_iota(jnp.int32, dist.shape, 1)
    min_d = jnp.min(dist, axis=1, keepdims=True)                     # (TN, 1)
    idx = jnp.min(jnp.where(dist == min_d, col, kp), axis=1,
                  keepdims=True)                                     # (TN, 1)

    enc = (col == idx).astype(jnp.float32)                           # (TN, Kp)
    if n_valid is not None:
        # Tail padding exists: zero out padded token rows ((TN,1) mask only).
        gstep = pl.program_id(0) * n_half + i
        row = jax.lax.broadcasted_iota(jnp.int32, (tn, 1), 0)
        valid = (gstep * tn + row) < n_valid                         # (TN, 1)
        enc = enc * valid.astype(jnp.float32)

    # bf16 store: 0/1 values are exact; halves the dominant HBM writeback.
    enc_ref[...] = enc.astype(enc_ref.dtype)

    # quantized = one-hot @ codebook (second MXU pass).
    q = jnp.dot(enc, e, preferred_element_type=jnp.float32)          # (TN, D)
    q_ref[...] = q.astype(q_ref.dtype)

    # In-kernel reductions for loss / perplexity (padded rows contribute 0).
    diff = q - x
    sse_ref[...] += jnp.sum(diff * diff)
    cnt_ref[...] += jnp.sum(enc, axis=0, keepdims=True).reshape(1, 1, -1)


# ------------------------- tile / VMEM derivation ---------------------------

def _auto_tn(n_rows, d, kp, budget_bytes=40 << 20):
    """Largest token tile whose double-buffered footprint fits the VMEM budget.

    Budget of ~40 MiB is safe on every generation (v7x has only 64 MiB VMEM)."""
    resident = 2 * (kp * d * 4 + kp * 4) + (1 << 20)   # codebook + esq + slack
    per_row = 2 * (4 * d + 2 * kp + 4 * d)             # x(f32), enc(bf16), q(f32), x2 buffers
    tn = (budget_bytes - resident) // per_row
    tn = int(max(8, min(tn - (tn % 8), 2048)))
    tn = min(tn, ((n_rows + 7) // 8) * 8)
    return tn


def _vmem_bytes(tn, d, kp):
    per_step = 2 * (tn * d * 4 + tn * kp * 2 + tn * d * 4)
    resident = 2 * (kp * d * 4 + kp * 4)
    accum = 2 * (4 + kp * 4)
    return per_step + resident + accum


# -------------------------------- wrapper ----------------------------------

def vq_ema_forward(inputs, embedding, commitment_cost, *, tn=None):
    """Eval-mode forward of STARVectorQuantizerEMA.

    inputs:    (..., D) with D == embedding_dim (last dim is the code dim)
    embedding: (K, D) codebook
    returns (loss, quantized, perplexity, encodings) like the PyTorch module.
    encodings is returned as bfloat16 (values are exactly 0 / 1).
    """
    input_shape = inputs.shape
    K, D = embedding.shape
    flat = inputs.reshape(-1, D).astype(jnp.float32)
    N = flat.shape[0]
    Kp = 128 * pl.cdiv(K, 128)          # lane-dense code axis

    if tn is None:
        tn = _auto_tn(N, D, Kp)
    tn = int(max(8, min((tn // 8) * 8, ((N + 7) // 8) * 8)))
    n_steps = pl.cdiv(N, tn)
    Np = n_steps * tn

    # Use both TensorCores on v7x when the step count splits evenly
    # (harmless on single-core v5e/v6e: grid just runs sequentially).
    num_cores = 2 if (n_steps >= 2 and n_steps % 2 == 0) else 1
    n_half = n_steps // num_cores

    if Np != N:
        flat_p = jnp.pad(flat, ((0, Np - N), (0, 0)))
        n_valid = N                      # kernel masks the padded tail rows
    else:
        flat_p = flat
        n_valid = None                   # no masking generated at all

    emb_f32 = embedding.astype(jnp.float32)
    e_p = emb_f32 if Kp == K else jnp.pad(emb_f32, ((0, Kp - K), (0, 0)))
    esq_valid = jnp.sum(emb_f32 * emb_f32, axis=1)
    if Kp == K:
        esq = esq_valid.reshape(1, Kp)
    else:
        esq = jnp.concatenate(
            [esq_valid, jnp.full((Kp - K,), 1e30, jnp.float32)]).reshape(1, Kp)

    kernel = functools.partial(_vq_kernel, n_valid=n_valid, tn=tn, n_half=n_half)
    vmem_limit = int(min(max(_vmem_bytes(tn, D, Kp) + (4 << 20), 32 << 20), 48 << 20))

    enc_p, q_p, sse, cnt = pl.pallas_call(
        kernel,
        out_shape=(
            jax.ShapeDtypeStruct((Np, Kp), jnp.bfloat16),      # encodings (0/1)
            jax.ShapeDtypeStruct((Np, D), jnp.float32),        # quantized
            jax.ShapeDtypeStruct((num_cores, 1, 1), jnp.float32),   # per-core SSE
            jax.ShapeDtypeStruct((num_cores, 1, Kp), jnp.float32),  # per-core counts
        ),
        grid_spec=pltpu.PrefetchScalarGridSpec(
            num_scalar_prefetch=0,
            grid=(num_cores, n_half),
            in_specs=[
                pl.BlockSpec((tn, D), lambda c, i: (c * n_half + i, 0)),  # flat tile
                pl.BlockSpec((Kp, D), lambda c, i: (0, 0)),               # codebook (resident)
                pl.BlockSpec((1, Kp), lambda c, i: (0, 0)),               # code norms (resident)
            ],
            out_specs=[
                pl.BlockSpec((tn, Kp), lambda c, i: (c * n_half + i, 0)),
                pl.BlockSpec((tn, D), lambda c, i: (c * n_half + i, 0)),
                pl.BlockSpec((1, 1, 1), lambda c, i: (c, 0, 0)),
                pl.BlockSpec((1, 1, Kp), lambda c, i: (c, 0, 0)),
            ],
        ),
        compiler_params=pltpu.CompilerParams(
            dimension_semantics=("parallel", "arbitrary"),
            vmem_limit_bytes=vmem_limit),
    )(flat_p, e_p, esq)

    if Np != N or Kp != K:
        encodings = enc_p[:N, :K]
    else:
        encodings = enc_p
    quantized = (q_p[:N] if Np != N else q_p).reshape(input_shape)

    sse_total = jnp.sum(sse)
    cnt_total = jnp.sum(cnt, axis=(0, 1))[:K]

    e_latent_loss = sse_total / (N * D)            # F.mse_loss (mean over elements)
    loss = commitment_cost * e_latent_loss
    quantized_st = (inputs + jax.lax.stop_gradient(
        quantized - inputs.astype(quantized.dtype))).astype(inputs.dtype)

    avg_probs = cnt_total / N
    perplexity = jnp.exp(-jnp.sum(avg_probs * jnp.log(avg_probs + 1e-10)))
    return loss, quantized_st, perplexity, encodings


# --------------------------- pure-JAX reference ----------------------------

def vq_reference(inputs, embedding, commitment_cost):
    K, D = embedding.shape
    flat = inputs.reshape(-1, D)
    dist = (jnp.sum(flat ** 2, axis=1, keepdims=True)
            + jnp.sum(embedding ** 2, axis=1)
            - 2.0 * flat @ embedding.T)
    idx = jnp.argmin(dist, axis=1)
    enc = jax.nn.one_hot(idx, K, dtype=jnp.float32)
    quantized = (enc @ embedding).reshape(inputs.shape)
    e_latent_loss = jnp.mean((quantized - inputs) ** 2)
    loss = commitment_cost * e_latent_loss
    quantized_st = inputs + jax.lax.stop_gradient(quantized - inputs)
    avg_probs = jnp.mean(enc, axis=0)
    perplexity = jnp.exp(-jnp.sum(avg_probs * jnp.log(avg_probs + 1e-10)))
    return loss, quantized_st, perplexity, enc


# --------------------------------- main ------------------------------------

if __name__ == "__main__":
    key = jax.random.PRNGKey(0)
    k_x, k_e = jax.random.split(key)

    # Small shapes consistent with the module: inputs (B, H, W, D), D = embedding_dim.
    B, H, W = 2, 16, 16                       # N = 512 flat tokens
    num_embeddings, embedding_dim = 100, 32
    commitment_cost = 0.25

    inputs = jax.random.normal(k_x, (B, H, W, embedding_dim), jnp.float32)
    embedding = jax.random.normal(k_e, (num_embeddings, embedding_dim),
                                  jnp.float32)   # matches .normal_() init

    r_loss, r_q, r_perp, r_enc = vq_reference(inputs, embedding, commitment_cost)

    # Exercise: auto big-tile path, multi-step 2-core path, tail-masking path.
    configs = [
        ("auto-tile", None),   # tn=512: one step, no padding
        ("two-core", 128),     # 4 steps -> (2, 2) grid with per-core accumulators
        ("tail-mask", 192),    # 3 steps, Np=576 > N=512 -> padded-row masking
    ]
    for name, tile in configs:
        fwd = jax.jit(functools.partial(
            vq_ema_forward, commitment_cost=commitment_cost, tn=tile))
        loss, quantized, perplexity, encodings = jax.block_until_ready(
            fwd(inputs, embedding))

        assert quantized.shape == inputs.shape, (name, quantized.shape)
        assert encodings.shape == (B * H * W, num_embeddings), (name, encodings.shape)

        enc_err = float(jnp.max(jnp.abs(encodings.astype(jnp.float32) - r_enc)))
        assert enc_err < 1e-6, (name, enc_err)
        q_err = float(jnp.max(jnp.abs(quantized - r_q)))
        assert q_err < 1e-4, (name, q_err)
        assert abs(float(loss) - float(r_loss)) < 1e-4 * max(1.0, abs(float(r_loss))), \
            (name, float(loss), float(r_loss))
        assert abs(float(perplexity) - float(r_perp)) < 1e-3 * max(1.0, float(r_perp)), \
            (name, float(perplexity), float(r_perp))

    print("KERNEL_OK")
</pallas_src>

<mosaic_0001>
module attributes {stable_mosaic.version = 11 : i64} {
  func.func @_vq_kernel(%arg0: i32, %arg1: i32, %arg2: memref<512x32xf32, #tpu.memory_space<vmem>>, %arg3: memref<128x32xf32, #tpu.memory_space<vmem>>, %arg4: memref<1x128xf32, #tpu.memory_space<vmem>>, %arg5: memref<512x128xbf16, #tpu.memory_space<vmem>>, %arg6: memref<512x32xf32, #tpu.memory_space<vmem>>, %arg7: memref<1x1x1xf32, #tpu.memory_space<vmem>>, %arg8: memref<1x1x128xf32, #tpu.memory_space<vmem>>) attributes {dimension_semantics = [#tpu.dimension_semantics<parallel>, #tpu.dimension_semantics<arbitrary>], iteration_bounds = array<i64: 1, 1>, scalar_prefetch = 0 : i64, scratch_operands = 0 : i64, tpu.core_type = #tpu.core_type<tc>, window_params = [{transform_indices = @transform_0, window_bounds = array<i64: 512, 32>}, {pipeline_mode = #tpu.pipeline_mode<synchronous>, transform_indices = @transform_1, window_bounds = array<i64: 128, 32>}, {pipeline_mode = #tpu.pipeline_mode<synchronous>, transform_indices = @transform_2, window_bounds = array<i64: 1, 128>}, {transform_indices = @transform_3, window_bounds = array<i64: 512, 128>}, {transform_indices = @transform_4, window_bounds = array<i64: 512, 32>}, {transform_indices = @transform_5, window_bounds = array<i64: 1, 1, 1>}, {transform_indices = @transform_6, window_bounds = array<i64: 1, 1, 128>}]} {
    %c0_i32 = arith.constant 0 : i32
    %0 = arith.cmpi eq, %arg1, %c0_i32 : i32
    %1 = arith.extui %0 : i1 to i32
    %c0_i32_0 = arith.constant 0 : i32
    %2 = arith.cmpi ne, %1, %c0_i32_0 : i32
    scf.if %2 {
      %cst_28 = arith.constant 0.000000e+00 : f32
      %44 = vector.broadcast %cst_28 : f32 to vector<1x1x1xf32>
      %c0_29 = arith.constant 0 : index
      %c0_30 = arith.constant 0 : index
      %c0_31 = arith.constant 0 : index
      %45 = vector.load %arg7[%c0_29, %c0_30, %c0_31] : memref<1x1x1xf32, #tpu.memory_space<vmem>>, vector<1x1x1xf32>
      tpu.vector_store %arg7[%c0_29, %c0_30, %c0_31], %44 {strides = array<i32>} : memref<1x1x1xf32, #tpu.memory_space<vmem>>, vector<1x1x1xf32>,
      %cst_32 = arith.constant 0.000000e+00 : f32
      %46 = vector.broadcast %cst_32 : f32 to vector<1x1x128xf32>
      %c0_33 = arith.constant 0 : index
      %c0_34 = arith.constant 0 : index
      %c0_35 = arith.constant 0 : index
      %47 = vector.load %arg8[%c0_33, %c0_34, %c0_35] : memref<1x1x128xf32, #tpu.memory_space<vmem>>, vector<1x1x128xf32>
      tpu.vector_store %arg8[%c0_33, %c0_34, %c0_35], %46 {strides = array<i32>} : memref<1x1x128xf32, #tpu.memory_space<vmem>>, vector<1x1x128xf32>,
    } else {
    }
    %c0 = arith.constant 0 : index
    %c0_1 = arith.constant 0 : index
    %3 = vector.load %arg2[%c0, %c0_1] : memref<512x32xf32, #tpu.memory_space<vmem>>, vector<512x32xf32>
    %c0_2 = arith.constant 0 : index
    %c0_3 = arith.constant 0 : index
    %4 = vector.load %arg3[%c0_2, %c0_3] : memref<128x32xf32, #tpu.memory_space<vmem>>, vector<128x32xf32>
    %cst = arith.constant dense<0.000000e+00> : vector<512x128xf32>
    %5 = tpu.matmul %3, %4, %cst {dimension_numbers = #tpu.dot_dimension_numbers<[1], [1], [0], [0], [0, 0, 1, 0], [], []>} : vector<512x32xf32>, vector<128x32xf32>, vector<512x128xf32> -> vector<512x128xf32>
    %c0_4 = arith.constant 0 : index
    %c0_5 = arith.constant 0 : index
    %6 = vector.load %arg4[%c0_4, %c0_5] : memref<1x128xf32, #tpu.memory_space<vmem>>, vector<1x128xf32>
    %cst_6 = arith.constant 2.000000e+00 : f32
    %7 = vector.broadcast %cst_6 : f32 to vector<512x128xf32>
    %8 = arith.mulf %7, %5 : vector<512x128xf32>
    %9 = vector.broadcast %6 : vector<1x128xf32> to vector<512x128xf32>
    %10 = arith.subf %9, %8 : vector<512x128xf32>
    %11 = tpu.iota {dimensions = array<i32: 1>} : vector<512x128xi32>
    %cst_7 = arith.constant dense<0x7F800000> : vector<512xf32>
    %12 = vector.multi_reduction <minimumf>, %10, %cst_7 [1] : vector<512x128xf32> to vector<512xf32>
    %13 = vector.shape_cast %12 : vector<512xf32> to vector<512x1xf32>
    %14 = vector.broadcast %13 : vector<512x1xf32> to vector<512x128xf32>
    %15 = arith.cmpf oeq, %10, %14 : vector<512x128xf32>
    %c128_i32 = arith.constant 128 : i32
    %16 = vector.broadcast %c128_i32 : i32 to vector<512x128xi32>
    %17 = arith.select %15, %11, %16 : vector<512x128xi1>, vector<512x128xi32>
    %cst_8 = arith.constant dense<2147483647> : vector<512xi32>
    %18 = vector.multi_reduction <minsi>, %17, %cst_8 [1] : vector<512x128xi32> to vector<512xi32>
    %19 = vector.shape_cast %18 : vector<512xi32> to vector<512x1xi32>
    %20 = vector.broadcast %19 : vector<512x1xi32> to vector<512x128xi32>
    %21 = arith.cmpi eq, %11, %20 : vector<512x128xi32>
    %22 = arith.extui %21 : vector<512x128xi1> to vector<512x128xi32>
    %23 = arith.sitofp %22 : vector<512x128xi32> to vector<512x128xf32>
    %24 = arith.truncf %23 : vector<512x128xf32> to vector<512x128xbf16>
    %c0_9 = arith.constant 0 : index
    %c0_10 = arith.constant 0 : index
    %25 = vector.load %arg5[%c0_9, %c0_10] : memref<512x128xbf16, #tpu.memory_space<vmem>>, vector<512x128xbf16>
    tpu.vector_store %arg5[%c0_9, %c0_10], %24 {strides = array<i32>} : memref<512x128xbf16, #tpu.memory_space<vmem>>, vector<512x128xbf16>,
    %cst_11 = arith.constant dense<0.000000e+00> : vector<512x32xf32>
    %26 = tpu.matmul %23, %4, %cst_11 {dimension_numbers = #tpu.dot_dimension_numbers<[1], [0], [0], [1], [0, 0, 1, 1], [], []>} : vector<512x128xf32>, vector<128x32xf32>, vector<512x32xf32> -> vector<512x32xf32>
    %c0_12 = arith.constant 0 : index
    %c0_13 = arith.constant 0 : index
    %27 = vector.load %arg6[%c0_12, %c0_13] : memref<512x32xf32, #tpu.memory_space<vmem>>, vector<512x32xf32>
    tpu.vector_store %arg6[%c0_12, %c0_13], %26 {strides = array<i32>} : memref<512x32xf32, #tpu.memory_space<vmem>>, vector<512x32xf32>,
    %28 = arith.subf %26, %3 : vector<512x32xf32>
    %c0_14 = arith.constant 0 : index
    %c0_15 = arith.constant 0 : index
    %c0_16 = arith.constant 0 : index
    %29 = vector.load %arg7[%c0_14, %c0_15, %c0_16] : memref<1x1x1xf32, #tpu.memory_space<vmem>>, vector<1x1x1xf32>
    %30 = arith.mulf %28, %28 : vector<512x32xf32>
    %31 = vector.shape_cast %30 : vector<512x32xf32> to vector<1x512x32xf32>
    %cst_17 = arith.constant dense<0.000000e+00> : vector<1xf32>
    %32 = vector.multi_reduction <add>, %31, %cst_17 [1, 2] : vector<1x512x32xf32> to vector<1xf32>
    %33 = vector.shape_cast %32 : vector<1xf32> to vector<1x1x1xf32>
    %34 = vector.extract %33[0, 0, 0] : f32 from vector<1x1x1xf32>
    %35 = vector.broadcast %34 : f32 to vector<1x1x1xf32>
    %36 = arith.addf %29, %35 : vector<1x1x1xf32>
    %c0_18 = arith.constant 0 : index
    %c0_19 = arith.constant 0 : index
    %c0_20 = arith.constant 0 : index
    %37 = vector.load %arg7[%c0_18, %c0_19, %c0_20] : memref<1x1x1xf32, #tpu.memory_space<vmem>>, vector<1x1x1xf32>
    tpu.vector_store %arg7[%c0_18, %c0_19, %c0_20], %36 {strides = array<i32>} : memref<1x1x1xf32, #tpu.memory_space<vmem>>, vector<1x1x1xf32>,
    %c0_21 = arith.constant 0 : index
    %c0_22 = arith.constant 0 : index
    %c0_23 = arith.constant 0 : index
    %38 = vector.load %arg8[%c0_21, %c0_22, %c0_23] : memref<1x1x128xf32, #tpu.memory_space<vmem>>, vector<1x1x128xf32>
    %cst_24 = arith.constant dense<0.000000e+00> : vector<128xf32>
    %39 = vector.multi_reduction <add>, %23, %cst_24 [0] : vector<512x128xf32> to vector<128xf32>
    %40 = vector.shape_cast %39 : vector<128xf32> to vector<1x128xf32>
    %41 = vector.shape_cast %40 : vector<1x128xf32> to vector<1x1x128xf32>
    %42 = arith.addf %38, %41 : vector<1x1x128xf32>
    %c0_25 = arith.constant 0 : index
    %c0_26 = arith.constant 0 : index
    %c0_27 = arith.constant 0 : index
    %43 = vector.load %arg8[%c0_25, %c0_26, %c0_27] : memref<1x1x128xf32, #tpu.memory_space<vmem>>, vector<1x1x128xf32>
    tpu.vector_store %arg8[%c0_25, %c0_26, %c0_27], %42 {strides = array<i32>} : memref<1x1x128xf32, #tpu.memory_space<vmem>>, vector<1x1x128xf32>,
    return
  }
  func.func @transform_0(%arg0: i32, %arg1: i32) -> (i32, i32) {
    %c1_i32 = arith.constant 1 : i32
    %0 = arith.muli %arg0, %c1_i32 : i32
    %1 = arith.addi %0, %arg1 : i32
    %c0_i32 = arith.constant 0 : i32
    %c0_i32_0 = arith.constant 0 : i32
    return %1, %c0_i32 : i32, i32
  }
  func.func @transform_1(%arg0: i32, %arg1: i32) -> (i32, i32) {
    %c0_i32 = arith.constant 0 : i32
    %c0_i32_0 = arith.constant 0 : i32
    %c0_i32_1 = arith.constant 0 : i32
    return %c0_i32, %c0_i32_0 : i32, i32
  }
  func.func @transform_2(%arg0: i32, %arg1: i32) -> (i32, i32) {
    %c0_i32 = arith.constant 0 : i32
    %c0_i32_0 = arith.constant 0 : i32
    %c0_i32_1 = arith.constant 0 : i32
    return %c0_i32, %c0_i32_0 : i32, i32
  }
  func.func @transform_3(%arg0: i32, %arg1: i32) -> (i32, i32) {
    %c1_i32 = arith.constant 1 : i32
    %0 = arith.muli %arg0, %c1_i32 : i32
    %1 = arith.addi %0, %arg1 : i32
    %c0_i32 = arith.constant 0 : i32
    %c0_i32_0 = arith.constant 0 : i32
    return %1, %c0_i32 : i32, i32
  }
  func.func @transform_4(%arg0: i32, %arg1: i32) -> (i32, i32) {
    %c1_i32 = arith.constant 1 : i32
    %0 = arith.muli %arg0, %c1_i32 : i32
    %1 = arith.addi %0, %arg1 : i32
    %c0_i32 = arith.constant 0 : i32
    %c0_i32_0 = arith.constant 0 : i32
    return %1, %c0_i32 : i32, i32
  }
  func.func @transform_5(%arg0: i32, %arg1: i32) -> (i32, i32, i32) {
    %c0_i32 = arith.constant 0 : i32
    %c0_i32_0 = arith.constant 0 : i32
    %c0_i32_1 = arith.constant 0 : i32
    return %arg0, %c0_i32, %c0_i32_0 : i32, i32, i32
  }
  func.func @transform_6(%arg0: i32, %arg1: i32) -> (i32, i32, i32) {
    %c0_i32 = arith.constant 0 : i32
    %c0_i32_0 = arith.constant 0 : i32
    %c0_i32_1 = arith.constant 0 : i32
    return %arg0, %c0_i32, %c0_i32_0 : i32, i32, i32
  }
}

</mosaic_0001>

<bundles_post_ra>
// kernel: vq_ema_forward.1
= control target key start
LH: loop header
LB: loop body
LE: loop exit
PB: predicated region body
PF: predicated region fallthrough
CT: control target
= control target key end

     0   :  { %12 = vsyncpa [#allocation3], 0  ;;  %s6521_s0 = inlined_call_operand.hbm [shape: f32[512,32], index: 0, kind: input, shape index: {}]   ;;  %s6522_s1 = inlined_call_operand.vmem [shape: f32[128,32], index: 1, kind: input, shape index: {}]   ;;  %s6523_s2 = inlined_call_operand.vmem [shape: f32[1,128], index: 2, kind: input, shape index: {}]   ;;  %s6524_s3 = inlined_call_operand.vmem [shape: bf16[512,128], index: 3, kind: output, shape index: {0}]   ;;  %s6525_s4 = inlined_call_operand.vmem [shape: f32[512,32], index: 4, kind: output, shape index: {1}]   ;;  %s6526_s5 = inlined_call_operand.hbm [shape: f32[1,1,1], index: 5, kind: output, shape index: {2}]   ;;  %s6527_s6 = inlined_call_operand.vmem [shape: f32[1,1,128], index: 6, kind: output, shape index: {3}]  }
   0x1   :  { %13 = vsyncpa [#allocation4], 0  ;;  %s4522_s21 = smov [#allocation2]   ;;  %s4474_s25 = scalar_lea.hbm %s6521_s0, 8192 }
   0x2   :  { %s23_s22 = sshll.u32 %s4522_s21, 4  ;;  %p4475_p0 = scmp.ne.s32.totalorder %s6521_s0, %s4474_s25  ;;  %s24_s22 = int_to_ptr.vmem [resolvable:$true] %s23_s22 }
   0x3   :  { %p4478_p1 = scmp.lt.u32.totalorder %s4474_s25, %s6521_s0 }
   0x5   :  { %p4480_p2 = pnand %p4478_p1, %p4475_p0 }
   0x7   :  { %4483 = shalt.err (!%p4480_p2)
}
   0x8   :  { %s4484_s30 = scalar_lea.vmem %s24_s22, 8192  ;;  %p4489_p4 = scmp.lt.s32.totalorder %s24_s22, %s24_s22 }
   0x9   :  { %p4485_p3 = scmp.ne.s32.totalorder %s24_s22, %s4484_s30  ;;  %p4490_p5 = scmp.lt.s32.totalorder %s4484_s30, %s4484_s30 }
   0xb   :  { %p4491_p6 = por %p4490_p5, %p4489_p4 }
   0xd   :  { %p4492_p7 = pnand %p4491_p6, %p4485_p3 }
   0xf   :  { %4495 = shalt.err (!%p4492_p7)
}
  0x10   :  { %s4523_s7 = smov 128   ;;  %s4524_s8 = smov 8  }
  0x11   :  { %29 = dma.hbm_to_vmem [thread:$0]  %s6521_s0, 8192, %s24_s22, [#allocation3], %s4523_s7, %s4523_s7, %s4524_s8  }
  0x12   :  { %4518 = dma.done.wait [#allocation3], 8192  }
  0x13   :  { %4519 = vsyncadd [#allocation3], 4294959104  ;;  %vm154_vm0 = vcmask 261120   ;;  %v138_v1 = vld [vmem:[%s6522_s1] sm:$0xff]  ;;  %v139_v2 = vld [vmem:[%s6522_s1 + $0x8] sm:$0xff] }
  0x14   :  { %vm4577_vm1 = vmpackc.low %vm154_vm0, %vm154_vm0  ;;  %v140_v3 = vld [vmem:[%s6522_s1 + $0x10] sm:$0xff]  ;;  %v4322_v4 = vpack.c.bf16 %v139_v2, %v138_v1  ;;  %v141_v5 = vld [vmem:[%s6522_s1 + $0x18] sm:$0xff] }
  0x15   :  { %v4328_v6 = vpack.c.bf16 %v141_v5, %v140_v3  ;;  %v142_v7 = vld [vmem:[%s6522_s1 + $0x20] sm:$0xff]  ;;  %v143_v8 = vld [vmem:[%s6522_s1 + $0x28] sm:$0xff]  ;;  %v144_v11 = vld [vmem:[%s6522_s1 + $0x30] sm:$0xff] }
  0x16   :  { %4324 = vmatprep.subr.msk.bf16.mxu0 %vm4577_vm1, %v4322_v4  ;;  %4371 = vmatprep.subr.bf16.mxu1 %v4322_v4  ;;  %v74_v9 = vld [vmem:[#allocation2] sm:$0xff]  ;;  %v4334_v10 = vpack.c.bf16 %v143_v8, %v142_v7  ;;  %v145_v12 = vld [vmem:[%s6522_s1 + $0x38] sm:$0xff]  ;;  %v147_v15 = vld [vmem:[%s6522_s1 + $0x48] sm:$0xff] }
  0x17   :  { %4327 = vmatpush3.bf16.xpose.msk.msra.mxu0 %vm4577_vm1, %v4322_v4  ;;  %4373 = vmatpush3.bf16.msra.mxu1 %v4322_v4  ;;  %v4340_v13 = vpack.c.bf16 %v145_v12, %v144_v11  ;;  %v146_v14 = vld [vmem:[%s6522_s1 + $0x40] sm:$0xff]  ;;  %v148_v17 = vld [vmem:[%s6522_s1 + $0x50] sm:$0xff]  ;;  %v149_v18 = vld [vmem:[%s6522_s1 + $0x58] sm:$0xff] }
  0x18   :  { %4330 = vmatprep.subr.msk.bf16.mxu0 %vm4577_vm1, %v4328_v6  ;;  %4375 = vmatprep.subr.bf16.mxu1 %v4328_v6  ;;  %v4346_v16 = vpack.c.bf16 %v147_v15, %v146_v14  ;;  %v4352_v19 = vpack.c.bf16 %v149_v18, %v148_v17  ;;  %v150_v20 = vld [vmem:[%s6522_s1 + $0x60] sm:$0xff]  ;;  %v151_v21 = vld [vmem:[%s6522_s1 + $0x68] sm:$0xff]  ;;  %v152_v23 = vld [vmem:[%s6522_s1 + $0x70] sm:$0xff] }
  0x19   :  { %4098 = vmatprep.mubr.msk.f32.mxu0 %vm154_vm0, %v74_v9  ;;  %v4358_v22 = vpack.c.bf16 %v151_v21, %v150_v20  ;;  %v153_v24 = vld [vmem:[%s6522_s1 + $0x78] sm:$0xff]  ;;  %v75_v26 = vld [vmem:[#allocation2 + $0x8] sm:$0xff]  ;;  %v76_v27 = vld [vmem:[#allocation2 + $0x10] sm:$0xff] }
  0x1a   :  { %v4364_v25 = vpack.c.bf16 %v153_v24, %v152_v23  ;;  %v77_v28 = vld [vmem:[#allocation2 + $0x18] sm:$0xff]  ;;  %v78_v29 = vld [vmem:[#allocation2 + $0x20] sm:$0xff]  ;;  %v79_v30 = vld [vmem:[#allocation2 + $0x28] sm:$0xff] }
  0x1b   :  { %4377 = vmatpush3.bf16.msra.mxu1 %v4328_v6  ;;  %v80_v31 = vld [vmem:[#allocation2 + $0x30] sm:$0xff]  ;;  %v81_v32 = vld [vmem:[#allocation2 + $0x38] sm:$0xff]  ;;  %v82_v33 = vld [vmem:[#allocation2 + $0x40] sm:$0xff] }
  0x1c   :  { %4379 = vmatprep.subr.bf16.mxu1 %v4334_v10  ;;  %v83_v34 = vld [vmem:[#allocation2 + $0x48] sm:$0xff]  ;;  %v84_v35 = vld [vmem:[#allocation2 + $0x50] sm:$0xff]  ;;  %v85_v36 = vld [vmem:[#allocation2 + $0x58] sm:$0xff] }
  0x1d   :  { %v86_v37 = vld [vmem:[#allocation2 + $0x60] sm:$0xff]  ;;  %v87_v38 = vld [vmem:[#allocation2 + $0x68] sm:$0xff]  ;;  %v88_v39 = vld [vmem:[#allocation2 + $0x70] sm:$0xff] }
  0x1e   :  { %v89_v40 = vld [vmem:[#allocation2 + $0x78] sm:$0xff]  ;;  %v90_v41 = vld [vmem:[#allocation2 + $0x80] sm:$0xff]  ;;  %v91_v42 = vld [vmem:[#allocation2 + $0x88] sm:$0xff] }
  0x1f   :  { %4333 = vmatpush3.bf16.xpose.msk.msra.mxu0 %vm4577_vm1, %v4328_v6  ;;  %4381 = vmatpush3.bf16.msra.mxu1 %v4334_v10  ;;  %v92_v43 = vld [vmem:[#allocation2 + $0x90] sm:$0xff]  ;;  %v93_v44 = vld [vmem:[#allocation2 + $0x98] sm:$0xff]  ;;  %v94_v45 = vld [vmem:[#allocation2 + $0xa0] sm:$0xff] }
  0x20   :  { %4336 = vmatprep.subr.msk.bf16.mxu0 %vm4577_vm1, %v4334_v10  ;;  %4383 = vmatprep.subr.bf16.mxu1 %v4340_v13  ;;  %v95_v46 = vld [vmem:[#allocation2 + $0xa8] sm:$0xff]  ;;  %v96_v47 = vld [vmem:[#allocation2 + $0xb0] sm:$0xff]  ;;  %v97_v48 = vld [vmem:[#allocation2 + $0xb8] sm:$0xff] }
  0x21   :  { %v98_v49 = vld [vmem:[#allocation2 + $0xc0] sm:$0xff]  ;;  %v99_v50 = vld [vmem:[#allocation2 + $0xc8] sm:$0xff]  ;;  %v100_v51 = vld [vmem:[#allocation2 + $0xd0] sm:$0xff] }
  0x22   :  { %v101_v52 = vld [vmem:[#allocation2 + $0xd8] sm:$0xff]  ;;  %v102_v53 = vld [vmem:[#allocation2 + $0xe0] sm:$0xff]  ;;  %v103_v54 = vld [vmem:[#allocation2 + $0xe8] sm:$0xff] }
  0x23   :  { %4385 = vmatpush3.bf16.msra.mxu1 %v4340_v13  ;;  %v104_v55 = vld [vmem:[#allocation2 + $0xf0] sm:$0xff]  ;;  %v105_v56 = vld [vmem:[#allocation2 + $0xf8] sm:$0xff]  ;;  %v106_v57 = vld [vmem:[#allocation2 + $0x100] sm:$0xff] }
  0x24   :  { %4387 = vmatprep.subr.bf16.mxu1 %v4346_v16  ;;  %v107_v58 = vld [vmem:[#allocation2 + $0x108] sm:$0xff]  ;;  %v108_v59 = vld [vmem:[#allocation2 + $0x110] sm:$0xff]  ;;  %v109_v60 = vld [vmem:[#allocation2 + $0x118] sm:$0xff] }
  0x25   :  { %v110_v61 = vld [vmem:[#allocation2 + $0x120] sm:$0xff]  ;;  %v111_v62 = vld [vmem:[#allocation2 + $0x128] sm:$0xff]  ;;  %v112_v63 = vld [vmem:[#allocation2 + $0x130] sm:$0xff] }
  0x26   :  { %v113_v0 = vld [vmem:[#allocation2 + $0x138] sm:$0xff]  ;;  %v114_v1 = vld [vmem:[#allocation2 + $0x140] sm:$0xff]  ;;  %v115_v2 = vld [vmem:[#allocation2 + $0x148] sm:$0xff] }
  0x27   :  { %4339 = vmatpush3.bf16.xpose.msk.msra.mxu0 %vm4577_vm1, %v4334_v10  ;;  %4389 = vmatpush3.bf16.msra.mxu1 %v4346_v16  ;;  %v116_v3 = vld [vmem:[#allocation2 + $0x150] sm:$0xff]  ;;  %v117_v4 = vld [vmem:[#allocation2 + $0x158] sm:$0xff]  ;;  %v118_v5 = vld [vmem:[#allocation2 + $0x160] sm:$0xff] }
  0x28   :  { %4342 = vmatprep.subr.msk.bf16.mxu0 %vm4577_vm1, %v4340_v13  ;;  %4391 = vmatprep.subr.bf16.mxu1 %v4352_v19  ;;  %v119_v6 = vld [vmem:[#allocation2 + $0x168] sm:$0xff]  ;;  %v120_v7 = vld [vmem:[#allocation2 + $0x170] sm:$0xff]  ;;  %v121_v8 = vld [vmem:[#allocation2 + $0x178] sm:$0xff] }
  0x29   :  { %v122_v9 = vld [vmem:[#allocation2 + $0x180] sm:$0xff]  ;;  %v123_v10 = vld [vmem:[#allocation2 + $0x188] sm:$0xff]  ;;  %v124_v11 = vld [vmem:[#allocation2 + $0x190] sm:$0xff] }
  0x2a   :  { %v125_v12 = vld [vmem:[#allocation2 + $0x198] sm:$0xff]  ;;  %v127_v14 = vld [vmem:[#allocation2 + $0x1a8] sm:$0xff]  ;;  %v128_v15 = vld [vmem:[#allocation2 + $0x1b0] sm:$0xff] }
  0x2b   :  { %4393 = vmatpush3.bf16.msra.mxu1 %v4352_v19  ;;  %v130_v17 = vld [vmem:[#allocation2 + $0x1c0] sm:$0xff]  ;;  %v131_v18 = vld [vmem:[#allocation2 + $0x1c8] sm:$0xff]  ;;  %v133_v20 = vld [vmem:[#allocation2 + $0x1d8] sm:$0xff] }
  0x2c   :  { %4395 = vmatprep.subr.bf16.mxu1 %v4358_v22  ;;  %v134_v21 = vld [vmem:[#allocation2 + $0x1e0] sm:$0xff]  ;;  %v136_v23 = vld [vmem:[#allocation2 + $0x1f0] sm:$0xff]  ;;  %v137_v24 = vld [vmem:[#allocation2 + $0x1f8] sm:$0xff] }
  0x2f   :  { %4345 = vmatpush3.bf16.xpose.msk.msra.mxu0 %vm4577_vm1, %v4340_v13  ;;  %4397 = vmatpush3.bf16.msra.mxu1 %v4358_v22  ;;  %v126_v13 = vld [vmem:[#allocation2 + $0x1a0] sm:$0xff] }
  0x30   :  { %4348 = vmatprep.subr.msk.bf16.mxu0 %vm4577_vm1, %v4346_v16  ;;  %4399 = vmatprep.subr.bf16.mxu1 %v4364_v25 }
  0x33   :  { %4401 = vmatpush3.bf16.msra.mxu1 %v4364_v25 }
  0x37   :  { %4351 = vmatpush3.bf16.xpose.msk.msra.mxu0 %vm4577_vm1, %v4346_v16  ;;  %v129_v16 = vld [vmem:[#allocation2 + $0x1b8] sm:$0xff] }
  0x38   :  { %4354 = vmatprep.subr.msk.bf16.mxu0 %vm4577_vm1, %v4352_v19 }
  0x3f   :  { %4357 = vmatpush3.bf16.xpose.msk.msra.mxu0 %vm4577_vm1, %v4352_v19  ;;  %v132_v19 = vld [vmem:[#allocation2 + $0x1d0] sm:$0xff] }
  0x40   :  { %4360 = vmatprep.subr.msk.bf16.mxu0 %vm4577_vm1, %v4358_v22 }
  0x47   :  { %4363 = vmatpush3.bf16.xpose.msk.msra.mxu0 %vm4577_vm1, %v4358_v22  ;;  %v135_v22 = vld [vmem:[#allocation2 + $0x1e8] sm:$0xff] }
  0x48   :  { %4366 = vmatprep.subr.msk.bf16.mxu0 %vm4577_vm1, %v4364_v25 }
  0x4f   :  { %4369 = vmatpush3.bf16.xpose.msk.msra.mxu0 %vm4577_vm1, %v4364_v25 }
  0x56   :  { %4099 = vmatmul.mubr.msk.f32.vlgmr.msra.gmra.mrb[0].mxu0 %vm154_vm0, %v75_v26  ;;  %v4728_v26 = vld [vmem:[%s6523_s2] ss:$0 sm:$0xff] }
  0x57   :  { %4101 = vmatprep.mubr.msk.f32.mxu0 %vm154_vm0, %v76_v27 }
  0x5a   :  { %4102 = vmatmul.mubr.msk.f32.gmra.mrb[2].mxu0 %vm154_vm0, %v77_v28 }
  0x5b   :  { %4104 = vmatprep.mubr.msk.f32.mxu0 %vm154_vm0, %v78_v29 }
  0x5e   :  { %4105 = vmatmul.mubr.msk.f32.gmra.mrb[4].mxu0 %vm154_vm0, %v79_v30 }
  0x5f   :  { %4107 = vmatprep.mubr.msk.f32.mxu0 %vm154_vm0, %v80_v31 }
  0x62   :  { %4108 = vmatmul.mubr.msk.f32.gmra.mrb[6].mxu0 %vm154_vm0, %v81_v32 }
  0x63   :  { %4110 = vmatprep.mubr.msk.f32.mxu0 %vm154_vm0, %v82_v33 }
  0x66   :  { %4111 = vmatmul.mubr.msk.f32.gmra.mrb[8].mxu0 %vm154_vm0, %v83_v34 }
  0x67   :  { %4113 = vmatprep.mubr.msk.f32.mxu0 %vm154_vm0, %v84_v35 }
  0x6a   :  { %4114 = vmatmul.mubr.msk.f32.gmra.mrb[10].mxu0 %vm154_vm0, %v85_v36 }
  0x6b   :  { %4116 = vmatprep.mubr.msk.f32.mxu0 %vm154_vm0, %v86_v37 }
  0x6e   :  { %4117 = vmatmul.mubr.msk.f32.gmra.mrb[12].mxu0 %vm154_vm0, %v87_v38 }
  0x6f   :  { %4119 = vmatprep.mubr.msk.f32.mxu0 %vm154_vm0, %v88_v39 }
  0x72   :  { %4120 = vmatmul.mubr.msk.f32.gmra.mrb[14].mxu0 %vm154_vm0, %v89_v40 }
  0x73   :  { %4122 = vmatprep.mubr.msk.f32.mxu0 %vm154_vm0, %v90_v41 }
  0x76   :  { %4123 = vmatmul.mubr.msk.f32.gmra.mrb[16].mxu0 %vm154_vm0, %v91_v42 }
  0x77   :  { %4125 = vmatprep.mubr.msk.f32.mxu0 %vm154_vm0, %v92_v43 }
  0x7a   :  { %4126 = vmatmul.mubr.msk.f32.gmra.mrb[18].mxu0 %vm154_vm0, %v93_v44 }
  0x7b   :  { %4128 = vmatprep.mubr.msk.f32.mxu0 %vm154_vm0, %v94_v45 }
  0x7e   :  { %4129 = vmatmul.mubr.msk.f32.gmra.mrb[20].mxu0 %vm154_vm0, %v95_v46 }
  0x7f   :  { %4131 = vmatprep.mubr.msk.f32.mxu0 %vm154_vm0, %v96_v47 }
  0x82   :  { %4132 = vmatmul.mubr.msk.f32.gmra.mrb[22].mxu0 %vm154_vm0, %v97_v48 }
  0x83   :  { %4134 = vmatprep.mubr.msk.f32.mxu0 %vm154_vm0, %v98_v49 }
  0x86   :  { %4135 = vmatmul.mubr.msk.f32.gmra.mrb[24].mxu0 %vm154_vm0, %v99_v50 }
  0x87   :  { %4137 = vmatprep.mubr.msk.f32.mxu0 %vm154_vm0, %v100_v51 }
  0x8a   :  { %4138 = vmatmul.mubr.msk.f32.gmra.mrb[26].mxu0 %vm154_vm0, %v101_v52 }
  0x8b   :  { %4140 = vmatprep.mubr.msk.f32.mxu0 %vm154_vm0, %v102_v53 }
  0x8e   :  { %4141 = vmatmul.mubr.msk.f32.gmra.mrb[28].mxu0 %vm154_vm0, %v103_v54 }
  0x8f   :  { %4143 = vmatprep.mubr.msk.f32.mxu0 %vm154_vm0, %v104_v55 }
  0x92   :  { %4144 = vmatmul.mubr.msk.f32.gmra.mrb[30].mxu0 %vm154_vm0, %v105_v56 }
  0x93   :  { %4146 = vmatprep.mubr.msk.f32.mxu0 %vm154_vm0, %v106_v57 }
  0x96   :  { %4147 = vmatmul.mubr.msk.f32.gmra.mrb[32].mxu0 %vm154_vm0, %v107_v58 }
  0x97   :  { %4149 = vmatprep.mubr.msk.f32.mxu0 %vm154_vm0, %v108_v59 }
  0x9a   :  { %4150 = vmatmul.mubr.msk.f32.gmra.mrb[34].mxu0 %vm154_vm0, %v109_v60 }
  0x9b   :  { %4152 = vmatprep.mubr.msk.f32.mxu0 %vm154_vm0, %v110_v61 }
  0x9e   :  { %4153 = vmatmul.mubr.msk.f32.gmra.mrb[36].mxu0 %vm154_vm0, %v111_v62 }
  0x9f   :  { %4155 = vmatprep.mubr.msk.f32.mxu0 %vm154_vm0, %v112_v63 }
  0xa2   :  { %4156 = vmatmul.mubr.msk.f32.gmra.mrb[38].mxu0 %vm154_vm0, %v113_v0 }
  0xa3   :  { %4158 = vmatprep.mubr.msk.f32.mxu0 %vm154_vm0, %v114_v1 }
  0xa6   :  { %4159 = vmatmul.mubr.msk.f32.gmra.mrb[40].mxu0 %vm154_vm0, %v115_v2 }
  0xa7   :  { %4161 = vmatprep.mubr.msk.f32.mxu0 %vm154_vm0, %v116_v3 }
  0xaa   :  { %4162 = vmatmul.mubr.msk.f32.gmra.mrb[42].mxu0 %vm154_vm0, %v117_v4 }
  0xab   :  { %4164 = vmatprep.mubr.msk.f32.mxu0 %vm154_vm0, %v118_v5 }
  0xae   :  { %4165 = vmatmul.mubr.msk.f32.gmra.mrb[44].mxu0 %vm154_vm0, %v119_v6 }
  0xaf   :  { %4167 = vmatprep.mubr.msk.f32.mxu0 %vm154_vm0, %v120_v7 }
  0xb2   :  { %4168 = vmatmul.mubr.msk.f32.gmra.mrb[46].mxu0 %vm154_vm0, %v121_v8 }
  0xb3   :  { %4170 = vmatprep.mubr.msk.f32.mxu0 %vm154_vm0, %v122_v9 }
  0xb6   :  { %4171 = vmatmul.mubr.msk.f32.gmra.mrb[48].mxu0 %vm154_vm0, %v123_v10 }
  0xb7   :  { %4173 = vmatprep.mubr.msk.f32.mxu0 %vm154_vm0, %v124_v11 }
  0xba   :  { %4174 = vmatmul.mubr.msk.f32.gmra.mrb[50].mxu0 %vm154_vm0, %v125_v12 }
  0xbb   :  { %4176 = vmatprep.mubr.msk.f32.mxu0 %vm154_vm0, %v126_v13 }
  0xbe   :  { %4177 = vmatmul.mubr.msk.f32.gmra.mrb[52].mxu0 %vm154_vm0, %v127_v14 }
  0xbf   :  { %4179 = vmatprep.mubr.msk.f32.mxu0 %vm154_vm0, %v128_v15 }
  0xc2   :  { %4180 = vmatmul.mubr.msk.f32.gmra.mrb[54].mxu0 %vm154_vm0, %v129_v16 }
  0xc3   :  { %4182 = vmatprep.mubr.msk.f32.mxu0 %vm154_vm0, %v130_v17 }
  0xc6   :  { %4183 = vmatmul.mubr.msk.f32.gmra.mrb[56].mxu0 %vm154_vm0, %v131_v18 }
  0xc7   :  { %4185 = vmatprep.mubr.msk.f32.mxu0 %vm154_vm0, %v132_v19 }
  0xca   :  { %4186 = vmatmul.mubr.msk.f32.gmra.mrb[58].mxu0 %vm154_vm0, %v133_v20 }
  0xcb   :  { %4188 = vmatprep.mubr.msk.f32.mxu0 %vm154_vm0, %v134_v21 }
  0xce   :  { %4189 = vmatmul.mubr.msk.f32.gmra.mrb[60].mxu0 %vm154_vm0, %v135_v22 }
  0xcf   :  { %4191 = vmatprep.mubr.msk.f32.mxu0 %vm154_vm0, %v136_v23 }
  0xd2   :  { %4192 = vmatmul.mubr.msk.f32.gmra.mrb[62].mxu0 %vm154_vm0, %v137_v24 }
 0x129   :  { %v4100_v25 = vpop.f32.mrb[0].mxu0 }
 0x12a   :  { %v782_v27 = vmul.f32 2.0, %v4100_v25  ;;  %v461_v28 = vpop.f32.mrb[1].mxu0 }
 0x12b   :  { %v781_v29 = vmul.f32 2.0, %v461_v28 }
 0x12c   :  { %v4731_v30 = vsub.f32 %v4728_v26, %v782_v27 }
 0x12d   :  { %v4103_v31 = vpop.f32.mrb[2].mxu0  ;;  %v4735_v35 = vsub.f32 %v4728_v26, %v781_v29 }
 0x12e   :  { %v784_v32 = vmul.f32 2.0, %v4103_v31  ;;  %919 = vmin.xlane.f32.xlu0 %v4731_v30  ;;  %v471_v33 = vpop.f32.mrb[3].mxu0 }
 0x12f   :  { %v783_v34 = vmul.f32 2.0, %v471_v33 }
 0x130   :  { %v4738_v36 = vsub.f32 %v4728_v26, %v784_v32 }
 0x131   :  { %v4106_v37 = vpop.f32.mrb[4].mxu0  ;;  %v4743_v41 = vsub.f32 %v4728_v26, %v783_v34 }
 0x132   :  { %v786_v38 = vmul.f32 2.0, %v4106_v37  ;;  %917 = vmin.xlane.f32.xlu0 %v4735_v35  ;;  %923 = vmin.xlane.f32.xlu1 %v4738_v36  ;;  %v481_v39 = vpop.f32.mrb[5].mxu0 }
 0x133   :  { %v785_v40 = vmul.f32 2.0, %v481_v39 }
 0x134   :  { %v4750_v46 = vsub.f32 %v4728_v26, %v786_v38 }
 0x135   :  { %v4109_v42 = vpop.f32.mrb[6].mxu0  ;;  %v4746_v43 = vsub.f32 %v4728_v26, %v785_v40 }
 0x136   :  { %v788_v44 = vmul.f32 2.0, %v4109_v42  ;;  %921 = vmin.xlane.f32.xlu1 %v4743_v41  ;;  %v491_v45 = vpop.f32.mrb[7].mxu0 }
 0x137   :  { %v787_v47 = vmul.f32 2.0, %v491_v45  ;;  %925 = vmin.xlane.f32.xlu0 %v4746_v43 }
 0x138   :  { %v4758_v52 = vsub.f32 %v4728_v26, %v788_v44 }
 0x139   :  { %v4112_v48 = vpop.f32.mrb[8].mxu0  ;;  %v4754_v49 = vsub.f32 %v4728_v26, %v787_v47 }
 0x13a   :  { %v790_v50 = vmul.f32 2.0, %v4112_v48  ;;  %927 = vmin.xlane.f32.xlu1 %v4750_v46  ;;  %v501_v51 = vpop.f32.mrb[9].mxu0 }
 0x13b   :  { %v789_v53 = vmul.f32 2.0, %v501_v51  ;;  %929 = vmin.xlane.f32.xlu0 %v4754_v49 }
 0x13c   :  { %v4766_v58 = vsub.f32 %v4728_v26, %v790_v50 }
 0x13d   :  { %v4115_v54 = vpop.f32.mrb[10].mxu0  ;;  %v4762_v55 = vsub.f32 %v4728_v26, %v789_v53 }
 0x13e   :  { %v792_v56 = vmul.f32 2.0, %v4115_v54  ;;  %931 = vmin.xlane.f32.xlu1 %v4758_v52  ;;  %v511_v57 = vpop.f32.mrb[11].mxu0 }
 0x13f   :  { %v791_v59 = vmul.f32 2.0, %v511_v57  ;;  %933 = vmin.xlane.f32.xlu0 %v4762_v55 }
 0x140   :  { %v4774_v0 = vsub.f32 %v4728_v26, %v792_v56 }
 0x141   :  { %v4118_v60 = vpop.f32.mrb[12].mxu0  ;;  %v4770_v61 = vsub.f32 %v4728_v26, %v791_v59 }
 0x142   :  { %v794_v62 = vmul.f32 2.0, %v4118_v60  ;;  %935 = vmin.xlane.f32.xlu1 %v4766_v58  ;;  %v521_v63 = vpop.f32.mrb[13].mxu0 }
 0x143   :  { %v793_v1 = vmul.f32 2.0, %v521_v63  ;;  %937 = vmin.xlane.f32.xlu0 %v4770_v61 }
 0x144   :  { %v4782_v6 = vsub.f32 %v4728_v26, %v794_v62 }
 0x145   :  { %v4121_v2 = vpop.f32.mrb[14].mxu0  ;;  %v4778_v3 = vsub.f32 %v4728_v26, %v793_v1 }
 0x146   :  { %v796_v4 = vmul.f32 2.0, %v4121_v2  ;;  %939 = vmin.xlane.f32.xlu1 %v4774_v0  ;;  %v531_v5 = vpop.f32.mrb[15].mxu0 }
 0x147   :  { %v795_v7 = vmul.f32 2.0, %v531_v5  ;;  %941 = vmin.xlane.f32.xlu0 %v4778_v3 }
 0x148   :  { %v4790_v12 = vsub.f32 %v4728_v26, %v796_v4 }
 0x149   :  { %v4124_v8 = vpop.f32.mrb[16].mxu0  ;;  %v4786_v9 = vsub.f32 %v4728_v26, %v795_v7 }
 0x14a   :  { %v798_v10 = vmul.f32 2.0, %v4124_v8  ;;  %943 = vmin.xlane.f32.xlu1 %v4782_v6  ;;  %v541_v11 = vpop.f32.mrb[17].mxu0 }
 0x14b   :  { %v797_v13 = vmul.f32 2.0, %v541_v11  ;;  %945 = vmin.xlane.f32.xlu0 %v4786_v9 }
 0x14c   :  { %v4798_v18 = vsub.f32 %v4728_v26, %v798_v10 }
 0x14d   :  { %v4127_v14 = vpop.f32.mrb[18].mxu0  ;;  %v4794_v15 = vsub.f32 %v4728_v26, %v797_v13 }
 0x14e   :  { %v800_v16 = vmul.f32 2.0, %v4127_v14  ;;  %947 = vmin.xlane.f32.xlu1 %v4790_v12  ;;  %v551_v17 = vpop.f32.mrb[19].mxu0 }
 0x14f   :  { %v799_v19 = vmul.f32 2.0, %v551_v17  ;;  %949 = vmin.xlane.f32.xlu0 %v4794_v15 }
 0x150   :  { %v4806_v24 = vsub.f32 %v4728_v26, %v800_v16 }
 0x151   :  { %v4130_v20 = vpop.f32.mrb[20].mxu0  ;;  %v4802_v21 = vsub.f32 %v4728_v26, %v799_v19 }
 0x152   :  { %v802_v22 = vmul.f32 2.0, %v4130_v20  ;;  %951 = vmin.xlane.f32.xlu1 %v4798_v18  ;;  %v561_v23 = vpop.f32.mrb[21].mxu0 }
 0x153   :  { %v801_v25 = vmul.f32 2.0, %v561_v23  ;;  %953 = vmin.xlane.f32.xlu0 %v4802_v21 }
 0x154   :  { %v4814_v32 = vsub.f32 %v4728_v26, %v802_v22 }
 0x155   :  { %v4133_v27 = vpop.f32.mrb[22].mxu0  ;;  %v4810_v28 = vsub.f32 %v4728_v26, %v801_v25 }
 0x156   :  { %v804_v29 = vmul.f32 2.0, %v4133_v27  ;;  %955 = vmin.xlane.f32.xlu1 %v4806_v24  ;;  %v571_v31 = vpop.f32.mrb[23].mxu0 }
 0x157   :  { %v803_v33 = vmul.f32 2.0, %v571_v31  ;;  %957 = vmin.xlane.f32.xlu0 %v4810_v28 }
 0x158   :  { %v4822_v40 = vsub.f32 %v4728_v26, %v804_v29 }
 0x159   :  { %v4136_v34 = vpop.f32.mrb[24].mxu0  ;;  %v4818_v37 = vsub.f32 %v4728_v26, %v803_v33 }
 0x15a   :  { %v806_v38 = vmul.f32 2.0, %v4136_v34  ;;  %959 = vmin.xlane.f32.xlu1 %v4814_v32  ;;  %v581_v39 = vpop.f32.mrb[25].mxu0 }
 0x15b   :  { %v805_v42 = vmul.f32 2.0, %v581_v39  ;;  %961 = vmin.xlane.f32.xlu0 %v4818_v37 }
 0x15c   :  { %v4830_v50 = vsub.f32 %v4728_v26, %v806_v38 }
 0x15d   :  { %v4139_v44 = vpop.f32.mrb[26].mxu0  ;;  %v4826_v45 = vsub.f32 %v4728_v26, %v805_v42 }
 0x15e   :  { %v808_v47 = vmul.f32 2.0, %v4139_v44  ;;  %963 = vmin.xlane.f32.xlu1 %v4822_v40  ;;  %v591_v48 = vpop.f32.mrb[27].mxu0 }
 0x15f   :  { %v807_v51 = vmul.f32 2.0, %v591_v48  ;;  %965 = vmin.xlane.f32.xlu0 %v4826_v45 }
 0x160   :  { %v4838_v59 = vsub.f32 %v4728_v26, %v808_v47 }
 0x161   :  { %v4142_v53 = vpop.f32.mrb[28].mxu0  ;;  %v4834_v54 = vsub.f32 %v4728_v26, %v807_v51 }
 0x162   :  { %v810_v56 = vmul.f32 2.0, %v4142_v53  ;;  %967 = vmin.xlane.f32.xlu1 %v4830_v50  ;;  %v601_v57 = vpop.f32.mrb[29].mxu0 }
 0x163   :  { %v809_v60 = vmul.f32 2.0, %v601_v57  ;;  %969 = vmin.xlane.f32.xlu0 %v4834_v54 }
 0x164   :  { %v4846_v4 = vsub.f32 %v4728_v26, %v810_v56 }
 0x165   :  { %v4145_v62 = vpop.f32.mrb[30].mxu0  ;;  %v4842_v63 = vsub.f32 %v4728_v26, %v809_v60 }
 0x166   :  { %v812_v1 = vmul.f32 2.0, %v4145_v62  ;;  %971 = vmin.xlane.f32.xlu1 %v4838_v59  ;;  %v611_v2 = vpop.f32.mrb[31].mxu0 }
 0x167   :  { %v811_v5 = vmul.f32 2.0, %v611_v2  ;;  %973 = vmin.xlane.f32.xlu0 %v4842_v63 }
 0x168   :  { %v4854_v13 = vsub.f32 %v4728_v26, %v812_v1 }
 0x169   :  { %v4148_v7 = vpop.f32.mrb[32].mxu0  ;;  %v4850_v8 = vsub.f32 %v4728_v26, %v811_v5 }
 0x16a   :  { %v814_v10 = vmul.f32 2.0, %v4148_v7  ;;  %975 = vmin.xlane.f32.xlu1 %v4846_v4  ;;  %v621_v11 = vpop.f32.mrb[33].mxu0 }
 0x16b   :  { %v813_v14 = vmul.f32 2.0, %v621_v11  ;;  %977 = vmin.xlane.f32.xlu0 %v4850_v8 }
 0x16c   :  { %v4862_v22 = vsub.f32 %v4728_v26, %v814_v10 }
 0x16d   :  { %v4151_v16 = vpop.f32.mrb[34].mxu0  ;;  %v4858_v17 = vsub.f32 %v4728_v26, %v813_v14 }
 0x16e   :  { %v816_v19 = vmul.f32 2.0, %v4151_v16  ;;  %979 = vmin.xlane.f32.xlu1 %v4854_v13  ;;  %v631_v20 = vpop.f32.mrb[35].mxu0 }
 0x16f   :  { %v815_v23 = vmul.f32 2.0, %v631_v20  ;;  %981 = vmin.xlane.f32.xlu0 %v4858_v17 }
 0x170   :  { %v4870_v33 = vsub.f32 %v4728_v26, %v816_v19 }
 0x171   :  { %v4154_v25 = vpop.f32.mrb[36].mxu0  ;;  %v4866_v27 = vsub.f32 %v4728_v26, %v815_v23 }
 0x172   :  { %v818_v29 = vmul.f32 2.0, %v4154_v25  ;;  %983 = vmin.xlane.f32.xlu1 %v4862_v22  ;;  %v641_v31 = vpop.f32.mrb[37].mxu0 }
 0x173   :  { %v817_v34 = vmul.f32 2.0, %v641_v31  ;;  %985 = vmin.xlane.f32.xlu0 %v4866_v27 }
 0x174   :  { %v4878_v47 = vsub.f32 %v4728_v26, %v818_v29 }
 0x175   :  { %v4157_v38 = vpop.f32.mrb[38].mxu0  ;;  %v4874_v39 = vsub.f32 %v4728_v26, %v817_v34 }
 0x176   :  { %v820_v42 = vmul.f32 2.0, %v4157_v38  ;;  %987 = vmin.xlane.f32.xlu1 %v4870_v33  ;;  %v651_v44 = vpop.f32.mrb[39].mxu0 }
 0x177   :  { %v819_v48 = vmul.f32 2.0, %v651_v44  ;;  %989 = vmin.xlane.f32.xlu0 %v4874_v39 }
 0x178   :  { %v4886_v60 = vsub.f32 %v4728_v26, %v820_v42 }
 0x179   :  { %v4160_v51 = vpop.f32.mrb[40].mxu0  ;;  %v4882_v53 = vsub.f32 %v4728_v26, %v819_v48 }
 0x17a   :  { %v822_v56 = vmul.f32 2.0, %v4160_v51  ;;  %991 = vmin.xlane.f32.xlu1 %v4878_v47  ;;  %v661_v57 = vpop.f32.mrb[41].mxu0 }
 0x17b   :  { %v821_v62 = vmul.f32 2.0, %v661_v57  ;;  %993 = vmin.xlane.f32.xlu0 %v4882_v53 }
 0x17c   :  { %v4894_v10 = vsub.f32 %v4728_v26, %v822_v56 }
 0x17d   :  { %v4163_v1 = vpop.f32.mrb[42].mxu0  ;;  %v4890_v2 = vsub.f32 %v4728_v26, %v821_v62 }
 0x17e   :  { %v824_v5 = vmul.f32 2.0, %v4163_v1  ;;  %995 = vmin.xlane.f32.xlu1 %v4886_v60  ;;  %v671_v7 = vpop.f32.mrb[43].mxu0 }
 0x17f   :  { %v823_v11 = vmul.f32 2.0, %v671_v7  ;;  %997 = vmin.xlane.f32.xlu0 %v4890_v2 }
 0x180   :  { %v4902_v23 = vsub.f32 %v4728_v26, %v824_v5 }
 0x181   :  { %v4166_v14 = vpop.f32.mrb[44].mxu0  ;;  %v4898_v16 = vsub.f32 %v4728_v26, %v823_v11 }
 0x182   :  { %v826_v19 = vmul.f32 2.0, %v4166_v14  ;;  %999 = vmin.xlane.f32.xlu1 %v4894_v10  ;;  %v681_v20 = vpop.f32.mrb[45].mxu0 }
 0x183   :  { %v825_v25 = vmul.f32 2.0, %v681_v20  ;;  %1001 = vmin.xlane.f32.xlu0 %v4898_v16 }
 0x184   :  { %v4910_v42 = vsub.f32 %v4728_v26, %v826_v19 }
 0x185   :  { %v4169_v29 = vpop.f32.mrb[46].mxu0  ;;  %v4906_v31 = vsub.f32 %v4728_v26, %v825_v25 }
 0x186   :  { %v828_v34 = vmul.f32 2.0, %v4169_v29  ;;  %1003 = vmin.xlane.f32.xlu1 %v4902_v23  ;;  %v691_v38 = vpop.f32.mrb[47].mxu0 }
 0x187   :  { %v827_v44 = vmul.f32 2.0, %v691_v38  ;;  %1005 = vmin.xlane.f32.xlu0 %v4906_v31 }
 0x188   :  { %v4918_v62 = vsub.f32 %v4728_v26, %v828_v34 }
 0x189   :  { %v4172_v48 = vpop.f32.mrb[48].mxu0  ;;  %v4914_v51 = vsub.f32 %v4728_v26, %v827_v44 }
 0x18a   :  { %v830_v56 = vmul.f32 2.0, %v4172_v48  ;;  %1007 = vmin.xlane.f32.xlu1 %v4910_v42  ;;  %v701_v57 = vpop.f32.mrb[49].mxu0 }
 0x18b   :  { %v829_v1 = vmul.f32 2.0, %v701_v57  ;;  %1009 = vmin.xlane.f32.xlu0 %v4914_v51 }
 0x18c   :  { %v4926_v19 = vsub.f32 %v4728_v26, %v830_v56 }
 0x18d   :  { %v4175_v5 = vpop.f32.mrb[50].mxu0  ;;  %v4922_v7 = vsub.f32 %v4728_v26, %v829_v1 }
 0x18e   :  { %v832_v11 = vmul.f32 2.0, %v4175_v5  ;;  %1011 = vmin.xlane.f32.xlu1 %v4918_v62  ;;  %v711_v14 = vpop.f32.mrb[51].mxu0 }
 0x18f   :  { %v831_v20 = vmul.f32 2.0, %v711_v14  ;;  %1013 = vmin.xlane.f32.xlu0 %v4922_v7 }
 0x190   :  { %v4934_v44 = vsub.f32 %v4728_v26, %v832_v11 }
 0x191   :  { %v4178_v25 = vpop.f32.mrb[52].mxu0  ;;  %v4930_v29 = vsub.f32 %v4728_v26, %v831_v20 }
 0x192   :  { %v834_v34 = vmul.f32 2.0, %v4178_v25  ;;  %1015 = vmin.xlane.f32.xlu1 %v4926_v19  ;;  %v721_v38 = vpop.f32.mrb[53].mxu0  ;;  %6640 = vst [vmem:[#allocation9_spill] sm:$0xff] %v4934_v44 }
 0x193   :  { %6639 = vst [vmem:[#allocation8_spill] sm:$0xff] %v4930_v29  ;;  %v833_v48 = vmul.f32 2.0, %v721_v38  ;;  %1017 = vmin.xlane.f32.xlu0 %v4930_v29 }
 0x194   :  { %v4942_v14 = vsub.f32 %v4728_v26, %v834_v34 }
 0x195   :  { %v4181_v57 = vpop.f32.mrb[54].mxu0  ;;  %v4938_v56 = vsub.f32 %v4728_v26, %v833_v48 }
 0x196   :  { %v836_v1 = vmul.f32 2.0, %v4181_v57  ;;  %1019 = vmin.xlane.f32.xlu1 %v4934_v44  ;;  %v731_v5 = vpop.f32.mrb[55].mxu0  ;;  %6642 = vst [vmem:[#allocation11_spill] sm:$0xff] %v4942_v14 }
 0x197   :  { %6641 = vst [vmem:[#allocation10_spill] sm:$0xff] %v4938_v56  ;;  %v835_v20 = vmul.f32 2.0, %v731_v5  ;;  %1021 = vmin.xlane.f32.xlu0 %v4938_v56 }
 0x198   :  { %v4950_v48 = vsub.f32 %v4728_v26, %v836_v1 }
 0x199   :  { %v4184_v25 = vpop.f32.mrb[56].mxu0  ;;  %v4946_v11 = vsub.f32 %v4728_v26, %v835_v20 }
 0x19a   :  { %v838_v38 = vmul.f32 2.0, %v4184_v25  ;;  %1023 = vmin.xlane.f32.xlu1 %v4942_v14  ;;  %v741_v29 = vpop.f32.mrb[57].mxu0  ;;  %6644 = vst [vmem:[#allocation13_spill] sm:$0xff] %v4950_v48 }
 0x19b   :  { %6643 = vst [vmem:[#allocation12_spill] sm:$0xff] %v4946_v11  ;;  %v837_v57 = vmul.f32 2.0, %v741_v29  ;;  %1025 = vmin.xlane.f32.xlu0 %v4946_v11 }
 0x19c   :  { %v4958_v20 = vsub.f32 %v4728_v26, %v838_v38 }
 0x19d   :  { %v4187_v44 = vpop.f32.mrb[58].mxu0  ;;  %v4954_v34 = vsub.f32 %v4728_v26, %v837_v57 }
 0x19e   :  { %v840_v5 = vmul.f32 2.0, %v4187_v44  ;;  %1027 = vmin.xlane.f32.xlu1 %v4950_v48  ;;  %v751_v56 = vpop.f32.mrb[59].mxu0 }
 0x19f   :  { %6645 = vst [vmem:[#allocation14_spill] sm:$0xff] %v4954_v34  ;;  %v839_v25 = vmul.f32 2.0, %v751_v56  ;;  %1029 = vmin.xlane.f32.xlu0 %v4954_v34 }
 0x1a0   :  { %v4966_v57 = vsub.f32 %v4728_v26, %v840_v5 }
 0x1a1   :  { %v4190_v14 = vpop.f32.mrb[60].mxu0  ;;  %v4962_v1 = vsub.f32 %v4728_v26, %v839_v25 }
 0x1a2   :  { %v842_v29 = vmul.f32 2.0, %v4190_v14  ;;  %1031 = vmin.xlane.f32.xlu1 %v4958_v20  ;;  %v761_v11 = vpop.f32.mrb[61].mxu0 }
 0x1a3   :  { %v841_v44 = vmul.f32 2.0, %v761_v11  ;;  %1033 = vmin.xlane.f32.xlu0 %v4962_v1 }
 0x1a4   :  { %v4974_v25 = vsub.f32 %v4728_v26, %v842_v29 }
 0x1a5   :  { %v4193_v48 = vpop.f32.mrb[62].mxu0  ;;  %v4970_v38 = vsub.f32 %v4728_v26, %v841_v44 }
 0x1a6   :  { %v844_v56 = vmul.f32 2.0, %v4193_v48  ;;  %1035 = vmin.xlane.f32.xlu1 %v4966_v57  ;;  %v771_v34 = vpop.f32.mrb[63].mxu0  ;;  %6647 = vst [vmem:[#allocation16_spill] sm:$0xff] %v4974_v25  ;;  %v915_v48 = vlaneseq }
 0x1a7   :  { %6646 = vst [vmem:[#allocation15_spill] sm:$0xff] %v4970_v38  ;;  %v843_v14 = vmul.f32 2.0, %v771_v34  ;;  %1037 = vmin.xlane.f32.xlu0 %v4970_v38 }
 0x1a8   :  { %v4982_v11 = vsub.f32 %v4728_v26, %v844_v56  ;;  %v4986_v44 = vand.u32 127, %v915_v48 }
 0x1a9   :  { %v4978_v5 = vsub.f32 %v4728_v26, %v843_v14 }
 0x1aa   :  { %1039 = vmin.xlane.f32.xlu1 %v4974_v25  ;;  %6648 = vst [vmem:[#allocation17_spill] sm:$0xff] %v4986_v44 }
 0x1ab   :  { %1041 = vmin.xlane.f32.xlu0 %v4978_v5 }
 0x1ae   :  { %1043 = vmin.xlane.f32.xlu1 %v4982_v11 }
 0x1bb   :  { %v920_v29 = vpop.xlane.xlu0 %919 }
 0x1bc   :  { %vm1046_vm2 = vcmp.eq.f32.partialorder %v4731_v30, %v920_v29 }
 0x1bd   :  { %v4990_v34 = vsel %vm1046_vm2, %v4986_v44, 128 }
 0x1be   :  { %6649 = vst [vmem:[#allocation18_spill] sm:$0xff] %v4990_v34  ;;  %v1188_v14 = vshra.s32 %v4990_v34, 16 }
 0x1bf   :  { %v918_v38 = vpop.xlane.xlu0 %917  ;;  %v924_v25 = vpop.xlane.xlu1 %923 }
 0x1c0   :  { %vm1045_vm3 = vcmp.eq.f32.partialorder %v4735_v35, %v918_v38  ;;  %vm1048_vm4 = vcmp.eq.f32.partialorder %v4738_v36, %v924_v25  ;;  %v4995_v26 = vcvt.s32.f32 %v1188_v14 }
 0x1c1   :  { %v4998_v56 = vsel %vm1045_vm3, %v4986_v44, 128  ;;  %v5001_v48 = vsel %vm1048_vm4, %v4986_v44, 128 }
 0x1c2   :  { %6650 = vst [vmem:[#allocation19_spill] sm:$0xff] %v4995_v26  ;;  %6651 = vst [vmem:[#allocation20_spill] sm:$0xff] %v5001_v48  ;;  %1191 = vmin.xlane.f32.xlu1 %v4995_v26  ;;  %v1216_v30 = vshra.s32 %v5001_v48, 16  ;;  %v1174_v29 = vshra.s32 %v4998_v56, 16 }
 0x1c3   :  { %v922_v34 = vpop.xlane.xlu1 %921 }
 0x1c4   :  { %vm1047_vm5 = vcmp.eq.f32.partialorder %v4743_v41, %v922_v34  ;;  %v926_v35 = vpop.xlane.xlu0 %925  ;;  %v5007_v38 = vcvt.s32.f32 %v1216_v30  ;;  %v5009_v36 = vcvt.s32.f32 %v1174_v29 }
 0x1c5   :  { %v5012_v25 = vsel %vm1047_vm5, %v4986_v44, 128  ;;  %vm1049_vm6 = vcmp.eq.f32.partialorder %v4746_v43, %v926_v35 }
 0x1c6   :  { %6652 = vst [vmem:[#allocation21_spill] sm:$0xff] %v5007_v38  ;;  %6653 = vst [vmem:[#allocation22_spill] sm:$0xff] %v5009_v36  ;;  %v5016_v14 = vsel %vm1049_vm6, %v4986_v44, 128  ;;  %1219 = vmin.xlane.f32.xlu1 %v5007_v38  ;;  %1177 = vmin.xlane.f32.xlu0 %v5009_v36  ;;  %v1202_v26 = vshra.s32 %v5012_v25, 16 }
 0x1c7   :  { %6654 = vst [vmem:[#allocation23_spill] sm:$0xff] %v5016_v14  ;;  %v928_v41 = vpop.xlane.xlu1 %927  ;;  %v1230_v29 = vshra.s32 %v5016_v14, 16 }
 0x1c8   :  { %vm1050_vm7 = vcmp.eq.f32.partialorder %v4750_v46, %v928_v41  ;;  %v930_v34 = vpop.xlane.xlu0 %929  ;;  %v5022_v30 = vcvt.s32.f32 %v1202_v26 }
 0x1c9   :  { %v5026_v48 = vsel %vm1050_vm7, %v4986_v44, 128  ;;  %vm1051_vm8 = vcmp.eq.f32.partialorder %v4754_v49, %v930_v34  ;;  %v5037_v41 = vcvt.s32.f32 %v1230_v29 }
 0x1ca   :  { %v5030_v43 = vsel %vm1051_vm8, %v4986_v44, 128  ;;  %1205 = vmin.xlane.f32.xlu0 %v5022_v30  ;;  %v1244_v35 = vshra.s32 %v5026_v48, 16 }
 0x1cb   :  { %6655 = vst [vmem:[#allocation24_spill] sm:$0xff] %v5030_v43  ;;  %v932_v36 = vpop.xlane.xlu1 %931  ;;  %6656 = vst [vmem:[#allocation25_spill] sm:$0xff] %v5037_v41  ;;  %v1258_v14 = vshra.s32 %v5030_v43, 16 }
 0x1cc   :  { %vm1052_vm9 = vcmp.eq.f32.partialorder %v4758_v52, %v932_v36  ;;  %v934_v46 = vpop.xlane.xlu0 %933  ;;  %v5035_v26 = vcvt.s32.f32 %v1244_v35 }
 0x1cd   :  { %v5041_v38 = vsel %vm1052_vm9, %v4986_v44, 128  ;;  %vm1053_vm10 = vcmp.eq.f32.partialorder %v4762_v55, %v934_v46  ;;  %v5053_v35 = vcvt.s32.f32 %v1258_v14 }
 0x1ce   :  { %v5045_v49 = vsel %vm1053_vm10, %v4986_v44, 128  ;;  %1247 = vmin.xlane.f32.xlu1 %v5035_v26  ;;  %1233 = vmin.xlane.f32.xlu0 %v5037_v41  ;;  %v1272_v52 = vshra.s32 %v5041_v38, 16 }
 0x1cf   :  { %6657 = vst [vmem:[#allocation26_spill] sm:$0xff] %v5045_v49  ;;  %v936_v36 = vpop.xlane.xlu1 %935  ;;  %6658 = vst [vmem:[#allocation27_spill] sm:$0xff] %v5053_v35  ;;  %v1286_v43 = vshra.s32 %v5045_v49, 16 }
 0x1d0   :  { %vm1054_vm11 = vcmp.eq.f32.partialorder %v4766_v58, %v936_v36  ;;  %v938_v34 = vpop.xlane.xlu0 %937  ;;  %v5051_v29 = vcvt.s32.f32 %v1272_v52 }
 0x1d1   :  { %v5057_v55 = vsel %vm1054_vm11, %v4986_v44, 128  ;;  %vm1055_vm12 = vcmp.eq.f32.partialorder %v4770_v61, %v938_v34  ;;  %v5069_v49 = vcvt.s32.f32 %v1286_v43 }
 0x1d2   :  { %v5061_v46 = vsel %vm1055_vm12, %v4986_v44, 128  ;;  %1275 = vmin.xlane.f32.xlu1 %v5051_v29  ;;  %1261 = vmin.xlane.f32.xlu0 %v5053_v35  ;;  %v1300_v58 = vshra.s32 %v5057_v55, 16 }
 0x1d3   :  { %6659 = vst [vmem:[#allocation28_spill] sm:$0xff] %v5061_v46  ;;  %v940_v52 = vpop.xlane.xlu1 %939  ;;  %6660 = vst [vmem:[#allocation29_spill] sm:$0xff] %v5069_v49  ;;  %v1314_v41 = vshra.s32 %v5061_v46, 16 }
 0x1d4   :  { %vm1056_vm13 = vcmp.eq.f32.partialorder %v4774_v0, %v940_v52  ;;  %v942_v14 = vpop.xlane.xlu0 %941  ;;  %v5067_v36 = vcvt.s32.f32 %v1300_v58 }
 0x1d5   :  { %v5073_v61 = vsel %vm1056_vm13, %v4986_v44, 128  ;;  %vm1057_vm14 = vcmp.eq.f32.partialorder %v4778_v3, %v942_v14  ;;  %v5085_v46 = vcvt.s32.f32 %v1314_v41 }
 0x1d6   :  { %v5077_v34 = vsel %vm1057_vm14, %v4986_v44, 128  ;;  %1303 = vmin.xlane.f32.xlu1 %v5067_v36  ;;  %1289 = vmin.xlane.f32.xlu0 %v5069_v49  ;;  %v1328_v0 = vshra.s32 %v5073_v61, 16 }
 0x1d7   :  { %6661 = vst [vmem:[#allocation30_spill] sm:$0xff] %v5077_v34  ;;  %v944_v58 = vpop.xlane.xlu1 %943  ;;  %6662 = vst [vmem:[#allocation31_spill] sm:$0xff] %v5085_v46  ;;  %v1342_v35 = vshra.s32 %v5077_v34, 16 }
 0x1d8   :  { %vm1058_vm15 = vcmp.eq.f32.partialorder %v4782_v6, %v944_v58  ;;  %v946_v43 = vpop.xlane.xlu0 %945  ;;  %v5083_v52 = vcvt.s32.f32 %v1328_v0 }
 0x1d9   :  { %v5089_v3 = vsel %vm1058_vm15, %v4986_v44, 128  ;;  %vm1059_vm1 = vcmp.eq.f32.partialorder %v4786_v9, %v946_v43  ;;  %v5101_v34 = vcvt.s32.f32 %v1342_v35 }
 0x1da   :  { %v5093_v14 = vsel %vm1059_vm1, %v4986_v44, 128  ;;  %1331 = vmin.xlane.f32.xlu1 %v5083_v52  ;;  %1317 = vmin.xlane.f32.xlu0 %v5085_v46  ;;  %v1356_v6 = vshra.s32 %v5089_v3, 16 }
 0x1db   :  { %6663 = vst [vmem:[#allocation32_spill] sm:$0xff] %v5093_v14  ;;  %v948_v0 = vpop.xlane.xlu1 %947  ;;  %6664 = vst [vmem:[#allocation33_spill] sm:$0xff] %v5101_v34  ;;  %v1370_v49 = vshra.s32 %v5093_v14, 16 }
 0x1dc   :  { %vm1060_vm2 = vcmp.eq.f32.partialorder %v4790_v12, %v948_v0  ;;  %v950_v41 = vpop.xlane.xlu0 %949  ;;  %v5099_v58 = vcvt.s32.f32 %v1356_v6 }
 0x1dd   :  { %v5105_v9 = vsel %vm1060_vm2, %v4986_v44, 128  ;;  %vm1061_vm3 = vcmp.eq.f32.partialorder %v4794_v15, %v950_v41  ;;  %v5117_v14 = vcvt.s32.f32 %v1370_v49 }
 0x1de   :  { %v5109_v43 = vsel %vm1061_vm3, %v4986_v44, 128  ;;  %1359 = vmin.xlane.f32.xlu1 %v5099_v58  ;;  %1345 = vmin.xlane.f32.xlu0 %v5101_v34  ;;  %v1384_v12 = vshra.s32 %v5105_v9, 16 }
 0x1df   :  { %6665 = vst [vmem:[#allocation34_spill] sm:$0xff] %v5109_v43  ;;  %v952_v6 = vpop.xlane.xlu1 %951  ;;  %6666 = vst [vmem:[#allocation35_spill] sm:$0xff] %v5117_v14  ;;  %v1398_v46 = vshra.s32 %v5109_v43, 16 }
 0x1e0   :  { %vm1062_vm4 = vcmp.eq.f32.partialorder %v4798_v18, %v952_v6  ;;  %v954_v35 = vpop.xlane.xlu0 %953  ;;  %v5115_v0 = vcvt.s32.f32 %v1384_v12 }
 0x1e1   :  { %v5121_v15 = vsel %vm1062_vm4, %v4986_v44, 128  ;;  %vm1063_vm5 = vcmp.eq.f32.partialorder %v4802_v21, %v954_v35  ;;  %v5133_v43 = vcvt.s32.f32 %v1398_v46 }
 0x1e2   :  { %v5125_v41 = vsel %vm1063_vm5, %v4986_v44, 128  ;;  %1387 = vmin.xlane.f32.xlu1 %v5115_v0  ;;  %1373 = vmin.xlane.f32.xlu0 %v5117_v14  ;;  %v1412_v18 = vshra.s32 %v5121_v15, 16 }
 0x1e3   :  { %6667 = vst [vmem:[#allocation36_spill] sm:$0xff] %v5125_v41  ;;  %v956_v12 = vpop.xlane.xlu1 %955  ;;  %6668 = vst [vmem:[#allocation37_spill] sm:$0xff] %v5133_v43  ;;  %v1426_v34 = vshra.s32 %v5125_v41, 16 }
 0x1e4   :  { %vm1064_vm6 = vcmp.eq.f32.partialorder %v4806_v24, %v956_v12  ;;  %v958_v49 = vpop.xlane.xlu0 %957  ;;  %v5131_v6 = vcvt.s32.f32 %v1412_v18 }
 0x1e5   :  { %v5137_v21 = vsel %vm1064_vm6, %v4986_v44, 128  ;;  %vm1065_vm7 = vcmp.eq.f32.partialorder %v4810_v28, %v958_v49  ;;  %v5149_v41 = vcvt.s32.f32 %v1426_v34 }
 0x1e6   :  { %v5141_v35 = vsel %vm1065_vm7, %v4986_v44, 128  ;;  %1415 = vmin.xlane.f32.xlu1 %v5131_v6  ;;  %1401 = vmin.xlane.f32.xlu0 %v5133_v43  ;;  %v1440_v24 = vshra.s32 %v5137_v21, 16 }
 0x1e7   :  { %6669 = vst [vmem:[#allocation38_spill] sm:$0xff] %v5141_v35  ;;  %v960_v18 = vpop.xlane.xlu1 %959  ;;  %6670 = vst [vmem:[#allocation39_spill] sm:$0xff] %v5149_v41  ;;  %v1454_v14 = vshra.s32 %v5141_v35, 16 }
 0x1e8   :  { %vm1066_vm8 = vcmp.eq.f32.partialorder %v4814_v32, %v960_v18  ;;  %v962_v46 = vpop.xlane.xlu0 %961  ;;  %v5147_v12 = vcvt.s32.f32 %v1440_v24 }
 0x1e9   :  { %v5153_v28 = vsel %vm1066_vm8, %v4986_v44, 128  ;;  %vm1067_vm9 = vcmp.eq.f32.partialorder %v4818_v37, %v962_v46  ;;  %v5165_v35 = vcvt.s32.f32 %v1454_v14 }
 0x1ea   :  { %v5157_v49 = vsel %vm1067_vm9, %v4986_v44, 128  ;;  %1443 = vmin.xlane.f32.xlu1 %v5147_v12  ;;  %1429 = vmin.xlane.f32.xlu0 %v5149_v41  ;;  %v1468_v32 = vshra.s32 %v5153_v28, 16 }
 0x1eb   :  { %6671 = vst [vmem:[#allocation40_spill] sm:$0xff] %v5157_v49  ;;  %v964_v24 = vpop.xlane.xlu1 %963  ;;  %6672 = vst [vmem:[#allocation41_spill] sm:$0xff] %v5165_v35  ;;  %v1482_v43 = vshra.s32 %v5157_v49, 16 }
 0x1ec   :  { %vm1068_vm10 = vcmp.eq.f32.partialorder %v4822_v40, %v964_v24  ;;  %v966_v34 = vpop.xlane.xlu0 %965  ;;  %v5163_v18 = vcvt.s32.f32 %v1468_v32 }
 0x1ed   :  { %v5169_v37 = vsel %vm1068_vm10, %v4986_v44, 128  ;;  %vm1069_vm11 = vcmp.eq.f32.partialorder %v4826_v45, %v966_v34  ;;  %v5181_v49 = vcvt.s32.f32 %v1482_v43 }
 0x1ee   :  { %v5173_v46 = vsel %vm1069_vm11, %v4986_v44, 128  ;;  %1471 = vmin.xlane.f32.xlu1 %v5163_v18  ;;  %1457 = vmin.xlane.f32.xlu0 %v5165_v35  ;;  %v1496_v40 = vshra.s32 %v5169_v37, 16 }
 0x1ef   :  { %6673 = vst [vmem:[#allocation42_spill] sm:$0xff] %v5173_v46  ;;  %v968_v32 = vpop.xlane.xlu1 %967  ;;  %6674 = vst [vmem:[#allocation43_spill] sm:$0xff] %v5181_v49  ;;  %v1510_v41 = vshra.s32 %v5173_v46, 16 }
 0x1f0   :  { %vm1070_vm12 = vcmp.eq.f32.partialorder %v4830_v50, %v968_v32  ;;  %v970_v14 = vpop.xlane.xlu0 %969  ;;  %v5179_v24 = vcvt.s32.f32 %v1496_v40 }
 0x1f1   :  { %v5185_v45 = vsel %vm1070_vm12, %v4986_v44, 128  ;;  %vm1071_vm13 = vcmp.eq.f32.partialorder %v4834_v54, %v970_v14  ;;  %v5197_v46 = vcvt.s32.f32 %v1510_v41 }
 0x1f2   :  { %v5189_v34 = vsel %vm1071_vm13, %v4986_v44, 128  ;;  %1499 = vmin.xlane.f32.xlu1 %v5179_v24  ;;  %1485 = vmin.xlane.f32.xlu0 %v5181_v49  ;;  %v1524_v50 = vshra.s32 %v5185_v45, 16 }
 0x1f3   :  { %6675 = vst [vmem:[#allocation44_spill] sm:$0xff] %v5189_v34  ;;  %v972_v40 = vpop.xlane.xlu1 %971  ;;  %6676 = vst [vmem:[#allocation45_spill] sm:$0xff] %v5197_v46  ;;  %v1538_v35 = vshra.s32 %v5189_v34, 16 }
 0x1f4   :  { %vm1072_vm14 = vcmp.eq.f32.partialorder %v4838_v59, %v972_v40  ;;  %v974_v43 = vpop.xlane.xlu0 %973  ;;  %v5195_v32 = vcvt.s32.f32 %v1524_v50 }
 0x1f5   :  { %v5201_v54 = vsel %vm1072_vm14, %v4986_v44, 128  ;;  %vm1073_vm15 = vcmp.eq.f32.partialorder %v4842_v63, %v974_v43  ;;  %v5213_v34 = vcvt.s32.f32 %v1538_v35 }
 0x1f6   :  { %v5205_v14 = vsel %vm1073_vm15, %v4986_v44, 128  ;;  %1527 = vmin.xlane.f32.xlu1 %v5195_v32  ;;  %1513 = vmin.xlane.f32.xlu0 %v5197_v46  ;;  %v1552_v59 = vshra.s32 %v5201_v54, 16 }
 0x1f7   :  { %6677 = vst [vmem:[#allocation46_spill] sm:$0xff] %v5205_v14  ;;  %v976_v50 = vpop.xlane.xlu1 %975  ;;  %6678 = vst [vmem:[#allocation47_spill] sm:$0xff] %v5213_v34  ;;  %v1566_v49 = vshra.s32 %v5205_v14, 16 }
 0x1f8   :  { %vm1074_vm1 = vcmp.eq.f32.partialorder %v4846_v4, %v976_v50  ;;  %v978_v41 = vpop.xlane.xlu0 %977  ;;  %v5211_v40 = vcvt.s32.f32 %v1552_v59 }
 0x1f9   :  { %v5217_v63 = vsel %vm1074_vm1, %v4986_v44, 128  ;;  %vm1075_vm2 = vcmp.eq.f32.partialorder %v4850_v8, %v978_v41  ;;  %v5229_v14 = vcvt.s32.f32 %v1566_v49 }
 0x1fa   :  { %v5221_v43 = vsel %vm1075_vm2, %v4986_v44, 128  ;;  %1555 = vmin.xlane.f32.xlu1 %v5211_v40  ;;  %1541 = vmin.xlane.f32.xlu0 %v5213_v34  ;;  %v1580_v4 = vshra.s32 %v5217_v63, 16 }
 0x1fb   :  { %6679 = vst [vmem:[#allocation48_spill] sm:$0xff] %v5221_v43  ;;  %v980_v59 = vpop.xlane.xlu1 %979  ;;  %6680 = vst [vmem:[#allocation49_spill] sm:$0xff] %v5229_v14  ;;  %v1594_v46 = vshra.s32 %v5221_v43, 16 }
 0x1fc   :  { %vm1076_vm3 = vcmp.eq.f32.partialorder %v4854_v13, %v980_v59  ;;  %v982_v35 = vpop.xlane.xlu0 %981  ;;  %v5227_v50 = vcvt.s32.f32 %v1580_v4 }
 0x1fd   :  { %v5233_v8 = vsel %vm1076_vm3, %v4986_v44, 128  ;;  %vm1077_vm4 = vcmp.eq.f32.partialorder %v4858_v17, %v982_v35  ;;  %v5245_v43 = vcvt.s32.f32 %v1594_v46 }
 0x1fe   :  { %v5237_v41 = vsel %vm1077_vm4, %v4986_v44, 128  ;;  %1583 = vmin.xlane.f32.xlu1 %v5227_v50  ;;  %1569 = vmin.xlane.f32.xlu0 %v5229_v14  ;;  %v1608_v13 = vshra.s32 %v5233_v8, 16 }
 0x1ff   :  { %6681 = vst [vmem:[#allocation50_spill] sm:$0xff] %v5237_v41  ;;  %v984_v4 = vpop.xlane.xlu1 %983  ;;  %6682 = vst [vmem:[#allocation51_spill] sm:$0xff] %v5245_v43  ;;  %v1622_v34 = vshra.s32 %v5237_v41, 16 }
 0x200   :  { %vm1078_vm5 = vcmp.eq.f32.partialorder %v4862_v22, %v984_v4  ;;  %v986_v49 = vpop.xlane.xlu0 %985  ;;  %v5243_v59 = vcvt.s32.f32 %v1608_v13 }
 0x201   :  { %v5249_v17 = vsel %vm1078_vm5, %v4986_v44, 128  ;;  %vm1079_vm6 = vcmp.eq.f32.partialorder %v4866_v27, %v986_v49  ;;  %v5262_v14 = vcvt.s32.f32 %v1622_v34 }
 0x202   :  { %v5253_v35 = vsel %vm1079_vm6, %v4986_v44, 128  ;;  %1611 = vmin.xlane.f32.xlu1 %v5243_v59  ;;  %1597 = vmin.xlane.f32.xlu0 %v5245_v43  ;;  %v1636_v22 = vshra.s32 %v5249_v17, 16 }
 0x203   :  { %6683 = vst [vmem:[#allocation52_spill] sm:$0xff] %v5253_v35  ;;  %v988_v13 = vpop.xlane.xlu1 %987  ;;  %v1650_v46 = vshra.s32 %v5253_v35, 16 }
 0x204   :  { %vm1080_vm7 = vcmp.eq.f32.partialorder %v4870_v33, %v988_v13  ;;  %v990_v4 = vpop.xlane.xlu0 %989  ;;  %v5260_v41 = vcvt.s32.f32 %v1636_v22 }
 0x205   :  { %v5265_v27 = vsel %vm1080_vm7, %v4986_v44, 128  ;;  %vm1081_vm8 = vcmp.eq.f32.partialorder %v4874_v39, %v990_v4  ;;  %v5278_v35 = vcvt.s32.f32 %v1650_v46 }
 0x206   :  { %6684 = vst [vmem:[#allocation53_spill] sm:$0xff] %v5260_v41  ;;  %v1664_v49 = vshra.s32 %v5265_v27, 16  ;;  %v5270_v43 = vsel %vm1081_vm8, %v4986_v44, 128  ;;  %1639 = vmin.xlane.f32.xlu1 %v5260_v41  ;;  %1625 = vmin.xlane.f32.xlu0 %v5262_v14 }
 0x207   :  { %6685 = vst [vmem:[#allocation54_spill] sm:$0xff] %v5270_v43  ;;  %v992_v33 = vpop.xlane.xlu1 %991  ;;  %v1678_v22 = vshra.s32 %v5270_v43, 16 }
 0x208   :  { %vm1082_vm9 = vcmp.eq.f32.partialorder %v4878_v47, %v992_v33  ;;  %v994_v34 = vpop.xlane.xlu0 %993  ;;  %v5276_v13 = vcvt.s32.f32 %v1664_v49 }
 0x209   :  { %v5281_v39 = vsel %vm1082_vm9, %v4986_v44, 128  ;;  %vm1083_vm10 = vcmp.eq.f32.partialorder %v4882_v53, %v994_v34  ;;  %v5294_v43 = vcvt.s32.f32 %v1678_v22 }
 0x20a   :  { %6686 = vst [vmem:[#allocation55_spill] sm:$0xff] %v5276_v13  ;;  %v1692_v4 = vshra.s32 %v5281_v39, 16  ;;  %v5286_v41 = vsel %vm1083_vm10, %v4986_v44, 128  ;;  %1667 = vmin.xlane.f32.xlu1 %v5276_v13  ;;  %1653 = vmin.xlane.f32.xlu0 %v5278_v35 }
 0x20b   :  { %6687 = vst [vmem:[#allocation56_spill] sm:$0xff] %v5286_v41  ;;  %v996_v47 = vpop.xlane.xlu1 %995  ;;  %v1706_v49 = vshra.s32 %v5286_v41, 16 }
 0x20c   :  { %vm1084_vm11 = vcmp.eq.f32.partialorder %v4886_v60, %v996_v47  ;;  %v998_v46 = vpop.xlane.xlu0 %997  ;;  %v5292_v33 = vcvt.s32.f32 %v1692_v4 }
 0x20d   :  { %v5297_v53 = vsel %vm1084_vm11, %v4986_v44, 128  ;;  %vm1085_vm12 = vcmp.eq.f32.partialorder %v4890_v2, %v998_v46  ;;  %v5310_v41 = vcvt.s32.f32 %v1706_v49 }
 0x20e   :  { %6688 = vst [vmem:[#allocation57_spill] sm:$0xff] %v5292_v33  ;;  %v1720_v34 = vshra.s32 %v5297_v53, 16  ;;  %v5302_v13 = vsel %vm1085_vm12, %v4986_v44, 128  ;;  %1695 = vmin.xlane.f32.xlu1 %v5292_v33  ;;  %1681 = vmin.xlane.f32.xlu0 %v5294_v43 }
 0x20f   :  { %6689 = vst [vmem:[#allocation58_spill] sm:$0xff] %v5302_v13  ;;  %v1000_v60 = vpop.xlane.xlu1 %999  ;;  %v1734_v4 = vshra.s32 %v5302_v13, 16 }
 0x210   :  { %vm1086_vm13 = vcmp.eq.f32.partialorder %v4894_v10, %v1000_v60  ;;  %v1002_v22 = vpop.xlane.xlu0 %1001  ;;  %v5308_v47 = vcvt.s32.f32 %v1720_v34 }
 0x211   :  { %v5313_v2 = vsel %vm1086_vm13, %v4986_v44, 128  ;;  %vm1087_vm14 = vcmp.eq.f32.partialorder %v4898_v16, %v1002_v22  ;;  %v5326_v13 = vcvt.s32.f32 %v1734_v4 }
 0x212   :  { %6690 = vst [vmem:[#allocation59_spill] sm:$0xff] %v5308_v47  ;;  %v1748_v46 = vshra.s32 %v5313_v2, 16  ;;  %v5318_v33 = vsel %vm1087_vm14, %v4986_v44, 128  ;;  %1723 = vmin.xlane.f32.xlu1 %v5308_v47  ;;  %1709 = vmin.xlane.f32.xlu0 %v5310_v41 }
 0x213   :  { %6691 = vst [vmem:[#allocation60_spill] sm:$0xff] %v5318_v33  ;;  %v1004_v10 = vpop.xlane.xlu1 %1003  ;;  %v1762_v34 = vshra.s32 %v5318_v33, 16 }
 0x214   :  { %vm1088_vm15 = vcmp.eq.f32.partialorder %v4902_v23, %v1004_v10  ;;  %v1006_v49 = vpop.xlane.xlu0 %1005  ;;  %v5324_v60 = vcvt.s32.f32 %v1748_v46 }
 0x215   :  { %v5329_v16 = vsel %vm1088_vm15, %v4986_v44, 128  ;;  %vm1089_vm1 = vcmp.eq.f32.partialorder %v4906_v31, %v1006_v49  ;;  %v5342_v33 = vcvt.s32.f32 %v1762_v34 }
 0x216   :  { %6692 = vst [vmem:[#allocation61_spill] sm:$0xff] %v5324_v60  ;;  %v1776_v22 = vshra.s32 %v5329_v16, 16  ;;  %v5334_v47 = vsel %vm1089_vm1, %v4986_v44, 128  ;;  %1751 = vmin.xlane.f32.xlu1 %v5324_v60  ;;  %1737 = vmin.xlane.f32.xlu0 %v5326_v13 }
 0x217   :  { %6693 = vst [vmem:[#allocation62_spill] sm:$0xff] %v5334_v47  ;;  %v1008_v23 = vpop.xlane.xlu1 %1007  ;;  %v1790_v46 = vshra.s32 %v5334_v47, 16 }
 0x218   :  { %vm1090_vm2 = vcmp.eq.f32.partialorder %v4910_v42, %v1008_v23  ;;  %v1010_v4 = vpop.xlane.xlu0 %1009  ;;  %v5340_v10 = vcvt.s32.f32 %v1776_v22 }
 0x219   :  { %v5345_v31 = vsel %vm1090_vm2, %v4986_v44, 128  ;;  %vm1091_vm3 = vcmp.eq.f32.partialorder %v4914_v51, %v1010_v4  ;;  %v5358_v47 = vcvt.s32.f32 %v1790_v46 }
 0x21a   :  { %6694 = vst [vmem:[#allocation63_spill] sm:$0xff] %v5340_v10  ;;  %v1804_v49 = vshra.s32 %v5345_v31, 16  ;;  %v5350_v60 = vsel %vm1091_vm3, %v4986_v44, 128  ;;  %1779 = vmin.xlane.f32.xlu1 %v5340_v10  ;;  %1765 = vmin.xlane.f32.xlu0 %v5342_v33 }
 0x21b   :  { %6695 = vst [vmem:[#allocation64_spill] sm:$0xff] %v5350_v60  ;;  %v1012_v42 = vpop.xlane.xlu1 %1011  ;;  %v1818_v22 = vshra.s32 %v5350_v60, 16  ;;  %6697 = vst [vmem:[#allocation66_spill] sm:$0xff] %v5358_v47 }
 0x21c   :  { %vm1092_vm4 = vcmp.eq.f32.partialorder %v4918_v62, %v1012_v42  ;;  %v1014_v34 = vpop.xlane.xlu0 %1013  ;;  %v5356_v23 = vcvt.s32.f32 %v1804_v49 }
 0x21d   :  { %v5361_v51 = vsel %vm1092_vm4, %v4986_v44, 128  ;;  %vm1093_vm5 = vcmp.eq.f32.partialorder %v4922_v7, %v1014_v34  ;;  %v5374_v60 = vcvt.s32.f32 %v1818_v22  ;;  %v6703_v34 = vld [vmem:[#allocation8_spill] sm:$0xff] }
 0x21e   :  { %6696 = vst [vmem:[#allocation65_spill] sm:$0xff] %v5356_v23  ;;  %6698 = vst [vmem:[#allocation67_spill] sm:$0xff] %v5361_v51  ;;  %v1832_v4 = vshra.s32 %v5361_v51, 16  ;;  %v5366_v10 = vsel %vm1093_vm5, %v4986_v44, 128  ;;  %1807 = vmin.xlane.f32.xlu1 %v5356_v23  ;;  %1793 = vmin.xlane.f32.xlu0 %v5358_v47 }
 0x21f   :  { %6699 = vst [vmem:[#allocation68_spill] sm:$0xff] %v5366_v10  ;;  %v1016_v62 = vpop.xlane.xlu1 %1015  ;;  %v1846_v49 = vshra.s32 %v5366_v10, 16  ;;  %6701 = vst [vmem:[#allocation70_spill] sm:$0xff] %v5374_v60 }
 0x220   :  { %vm1094_vm6 = vcmp.eq.f32.partialorder %v4926_v19, %v1016_v62  ;;  %v1018_v46 = vpop.xlane.xlu0 %1017  ;;  %v5372_v42 = vcvt.s32.f32 %v1832_v4  ;;  %v6705_v62 = vld [vmem:[#allocation9_spill] sm:$0xff] }
 0x221   :  { %v5377_v7 = vsel %vm1094_vm6, %v4986_v44, 128  ;;  %vm1095_vm7 = vcmp.eq.f32.partialorder %v6703_v34, %v1018_v46  ;;  %v5390_v47 = vcvt.s32.f32 %v1846_v49  ;;  %v6709_v34 = vld [vmem:[#allocation10_spill] sm:$0xff] }
 0x222   :  { %6700 = vst [vmem:[#allocation69_spill] sm:$0xff] %v5372_v42  ;;  %6702 = vst [vmem:[#allocation71_spill] sm:$0xff] %v5377_v7  ;;  %v1860_v51 = vshra.s32 %v5377_v7, 16  ;;  %v5382_v23 = vsel %vm1095_vm7, %v4986_v44, 128  ;;  %1835 = vmin.xlane.f32.xlu1 %v5372_v42  ;;  %1821 = vmin.xlane.f32.xlu0 %v5374_v60 }
 0x223   :  { %6704 = vst [vmem:[#allocation8_spill] sm:$0xff] %v5382_v23  ;;  %v1020_v19 = vpop.xlane.xlu1 %1019  ;;  %v1874_v4 = vshra.s32 %v5382_v23, 16  ;;  %6707 = vst [vmem:[#allocation72_spill] sm:$0xff] %v5390_v47 }
 0x224   :  { %vm1096_vm8 = vcmp.eq.f32.partialorder %v6705_v62, %v1020_v19  ;;  %v1022_v22 = vpop.xlane.xlu0 %1021  ;;  %v5388_v10 = vcvt.s32.f32 %v1860_v51  ;;  %v6711_v62 = vld [vmem:[#allocation11_spill] sm:$0xff] }
 0x225   :  { %v5393_v46 = vsel %vm1096_vm8, %v4986_v44, 128  ;;  %vm1097_vm9 = vcmp.eq.f32.partialorder %v6709_v34, %v1022_v22  ;;  %v5406_v60 = vcvt.s32.f32 %v1874_v4  ;;  %v6714_v34 = vld [vmem:[#allocation12_spill] sm:$0xff] }
 0x226   :  { %6706 = vst [vmem:[#allocation9_spill] sm:$0xff] %v5388_v10  ;;  %6708 = vst [vmem:[#allocation73_spill] sm:$0xff] %v5393_v46  ;;  %v1888_v7 = vshra.s32 %v5393_v46, 16  ;;  %v5398_v42 = vsel %vm1097_vm9, %v4986_v44, 128  ;;  %1863 = vmin.xlane.f32.xlu1 %v5388_v10  ;;  %1849 = vmin.xlane.f32.xlu0 %v5390_v47 }
 0x227   :  { %6710 = vst [vmem:[#allocation10_spill] sm:$0xff] %v5398_v42  ;;  %v1024_v19 = vpop.xlane.xlu1 %1023  ;;  %v1902_v51 = vshra.s32 %v5398_v42, 16 }
 0x228   :  { %vm1098_vm10 = vcmp.eq.f32.partialorder %v6711_v62, %v1024_v19  ;;  %v1026_v49 = vpop.xlane.xlu0 %1025  ;;  %v5404_v23 = vcvt.s32.f32 %v1888_v7  ;;  %v6716_v62 = vld [vmem:[#allocation13_spill] sm:$0xff] }
 0x229   :  { %v5409_v22 = vsel %vm1098_vm10, %v4986_v44, 128  ;;  %vm1099_vm11 = vcmp.eq.f32.partialorder %v6714_v34, %v1026_v49  ;;  %v5422_v47 = vcvt.s32.f32 %v1902_v51  ;;  %v6718_v34 = vld [vmem:[#allocation14_spill] sm:$0xff] }
 0x22a   :  { %6712 = vst [vmem:[#allocation11_spill] sm:$0xff] %v5404_v23  ;;  %6713 = vst [vmem:[#allocation74_spill] sm:$0xff] %v5409_v22  ;;  %v1916_v46 = vshra.s32 %v5409_v22, 16  ;;  %v5414_v10 = vsel %vm1099_vm11, %v4986_v44, 128  ;;  %1891 = vmin.xlane.f32.xlu1 %v5404_v23  ;;  %1877 = vmin.xlane.f32.xlu0 %v5406_v60 }
 0x22b   :  { %6715 = vst [vmem:[#allocation12_spill] sm:$0xff] %v5414_v10  ;;  %v1028_v19 = vpop.xlane.xlu1 %1027  ;;  %v1930_v7 = vshra.s32 %v5414_v10, 16 }
 0x22c   :  { %vm1100_vm12 = vcmp.eq.f32.partialorder %v6716_v62, %v1028_v19  ;;  %v1030_v4 = vpop.xlane.xlu0 %1029  ;;  %v5420_v42 = vcvt.s32.f32 %v1916_v46 }
 0x22d   :  { %v5425_v49 = vsel %vm1100_vm12, %v4986_v44, 128  ;;  %vm1101_vm13 = vcmp.eq.f32.partialorder %v6718_v34, %v1030_v4  ;;  %v5438_v10 = vcvt.s32.f32 %v1930_v7 }
 0x22e   :  { %6717 = vst [vmem:[#allocation13_spill] sm:$0xff] %v5420_v42  ;;  %v1944_v22 = vshra.s32 %v5425_v49, 16  ;;  %v5430_v23 = vsel %vm1101_vm13, %v4986_v44, 128  ;;  %1919 = vmin.xlane.f32.xlu1 %v5420_v42  ;;  %1905 = vmin.xlane.f32.xlu0 %v5422_v47 }
 0x22f   :  { %6719 = vst [vmem:[#allocation14_spill] sm:$0xff] %v5430_v23  ;;  %v1032_v19 = vpop.xlane.xlu1 %1031  ;;  %v1958_v46 = vshra.s32 %v5430_v23, 16  ;;  %6721 = vst [vmem:[#allocation76_spill] sm:$0xff] %v5438_v10 }
 0x230   :  { %vm1102_vm14 = vcmp.eq.f32.partialorder %v4958_v20, %v1032_v19  ;;  %v1034_v51 = vpop.xlane.xlu0 %1033  ;;  %v5436_v62 = vcvt.s32.f32 %v1944_v22 }
 0x231   :  { %v5441_v4 = vsel %vm1102_vm14, %v4986_v44, 128  ;;  %vm1103_vm15 = vcmp.eq.f32.partialorder %v4962_v1, %v1034_v51  ;;  %v5454_v23 = vcvt.s32.f32 %v1958_v46  ;;  %v6725_v51 = vld [vmem:[#allocation15_spill] sm:$0xff] }
 0x232   :  { %6720 = vst [vmem:[#allocation75_spill] sm:$0xff] %v5436_v62  ;;  %6722 = vst [vmem:[#allocation77_spill] sm:$0xff] %v5441_v4  ;;  %v1972_v34 = vshra.s32 %v5441_v4, 16  ;;  %v5446_v42 = vsel %vm1103_vm15, %v4986_v44, 128  ;;  %1947 = vmin.xlane.f32.xlu1 %v5436_v62  ;;  %1933 = vmin.xlane.f32.xlu0 %v5438_v10 }
 0x233   :  { %6723 = vst [vmem:[#allocation78_spill] sm:$0xff] %v5446_v42  ;;  %v1036_v20 = vpop.xlane.xlu1 %1035  ;;  %v1986_v22 = vshra.s32 %v5446_v42, 16 }
 0x234   :  { %vm1104_vm1 = vcmp.eq.f32.partialorder %v4966_v57, %v1036_v20  ;;  %v1038_v7 = vpop.xlane.xlu0 %1037  ;;  %v5452_v19 = vcvt.s32.f32 %v1972_v34  ;;  %v6726_v20 = vld [vmem:[#allocation16_spill] sm:$0xff] }
 0x235   :  { %v5457_v1 = vsel %vm1104_vm1, %v4986_v44, 128  ;;  %vm1105_vm2 = vcmp.eq.f32.partialorder %v6725_v51, %v1038_v7  ;;  %v5470_v10 = vcvt.s32.f32 %v1986_v22 }
 0x236   :  { %6724 = vst [vmem:[#allocation79_spill] sm:$0xff] %v5452_v19  ;;  %v2000_v4 = vshra.s32 %v5457_v1, 16  ;;  %v5462_v62 = vsel %vm1105_vm2, %v4986_v44, 128  ;;  %1975 = vmin.xlane.f32.xlu1 %v5452_v19  ;;  %1961 = vmin.xlane.f32.xlu0 %v5454_v23 }
 0x237   :  { %v1040_v57 = vpop.xlane.xlu1 %1039  ;;  %v2014_v34 = vshra.s32 %v5462_v62, 16  ;;  %6728 = vst [vmem:[#allocation16_spill] sm:$0xff] %v5470_v10 }
 0x238   :  { %vm1106_vm3 = vcmp.eq.f32.partialorder %v6726_v20, %v1040_v57  ;;  %v1042_v46 = vpop.xlane.xlu0 %1041  ;;  %v5468_v42 = vcvt.s32.f32 %v2000_v4 }
 0x239   :  { %v5473_v7 = vsel %vm1106_vm3, %v4986_v44, 128  ;;  %vm1107_vm4 = vcmp.eq.f32.partialorder %v4978_v5, %v1042_v46  ;;  %v5486_v20 = vcvt.s32.f32 %v2014_v34 }
 0x23a   :  { %6727 = vst [vmem:[#allocation15_spill] sm:$0xff] %v5468_v42  ;;  %6729 = vst [vmem:[#allocation80_spill] sm:$0xff] %v5473_v7  ;;  %v2028_v51 = vshra.s32 %v5473_v7, 16  ;;  %v5478_v19 = vsel %vm1107_vm4, %v4986_v44, 128  ;;  %2003 = vmin.xlane.f32.xlu1 %v5468_v42  ;;  %1989 = vmin.xlane.f32.xlu0 %v5470_v10 }
 0x23b   :  { %6730 = vst [vmem:[#allocation81_spill] sm:$0xff] %v5478_v19  ;;  %v1044_v57 = vpop.xlane.xlu1 %1043  ;;  %v2042_v4 = vshra.s32 %v5478_v19, 16  ;;  %6732 = vst [vmem:[#allocation83_spill] sm:$0xff] %v5486_v20 }
 0x23c   :  { %vm1108_vm5 = vcmp.eq.f32.partialorder %v4982_v11, %v1044_v57  ;;  %v5484_v22 = vcvt.s32.f32 %v2028_v51  ;;  %v6736_v11 = vld [vmem:[#allocation18_spill] sm:$0xff]  ;;  %v1173_v51 = vand.u32 65535, %v4998_v56  ;;  %v6737_v57 = vld [vmem:[#allocation20_spill] sm:$0xff]  ;;  %v6740_v56 = vld [vmem:[#allocation21_spill] sm:$0xff] }
 0x23d   :  { %v5489_v5 = vsel %vm1108_vm5, %v4986_v44, 128  ;;  %v5496_v10 = vcvt.s32.f32 %v2042_v4  ;;  %v1187_v34 = vand.u32 65535, %v6736_v11  ;;  %v1215_v44 = vand.u32 65535, %v6737_v57  ;;  %v6741_v57 = vld [vmem:[#allocation22_spill] sm:$0xff] }
 0x23e   :  { %6731 = vst [vmem:[#allocation82_spill] sm:$0xff] %v5484_v22  ;;  %6733 = vst [vmem:[#allocation84_spill] sm:$0xff] %v5489_v5  ;;  %v2056_v46 = vshra.s32 %v5489_v5, 16  ;;  %2031 = vmin.xlane.f32.xlu1 %v5484_v22  ;;  %2017 = vmin.xlane.f32.xlu0 %v5486_v20  ;;  %v6739_v22 = vld [vmem:[#allocation19_spill] sm:$0xff]  ;;  %v1201_v4 = vand.u32 65535, %v5012_v25  ;;  %v1175_v11 = vcvt.s32.f32 %v1173_v51  ;;  %v1243_v25 = vand.u32 65535, %v5026_v48 }
 0x23f   :  { %6735 = vst [vmem:[#allocation86_spill] sm:$0xff] %v5496_v10  ;;  %v1189_v5 = vcvt.s32.f32 %v1187_v34  ;;  %v6743_v51 = vld [vmem:[#allocation24_spill] sm:$0xff]  ;;  %v6744_v48 = vld [vmem:[#allocation25_spill] sm:$0xff] }
 0x240   :  { %v5494_v42 = vcvt.s32.f32 %v2056_v46 }
 0x242   :  { %6734 = vst [vmem:[#allocation85_spill] sm:$0xff] %v5494_v42  ;;  %2059 = vmin.xlane.f32.xlu1 %v5494_v42  ;;  %2045 = vmin.xlane.f32.xlu0 %v5496_v10  ;;  %v1217_v10 = vcvt.s32.f32 %v1215_v44 }
 0x24f   :  { %v5503_v19 = vpop.xlane.xlu1 %1191 }
 0x250   :  { %6738 = vst [vmem:[#allocation18_spill] sm:$0xff] %v5503_v19  ;;  %vm1193_vm6 = vcmp.eq.f32.partialorder %v6739_v22, %v5503_v19  ;;  %v6742_v22 = vld [vmem:[#allocation23_spill] sm:$0xff]  ;;  %v1203_v19 = vcvt.s32.f32 %v1201_v4 }
 0x251   :  { %v1194_v46 = vsel %vm1193_vm6, %v1189_v5, inf  ;;  %v1229_v5 = vand.u32 65535, %v6742_v22 }
 0x252   :  { %1195 = vmin.xlane.f32.xlu1 %v1194_v46 }
 0x253   :  { %v5508_v20 = vpop.xlane.xlu1 %1219  ;;  %v5510_v42 = vpop.xlane.xlu0 %1177 }
 0x254   :  { %vm1221_vm7 = vcmp.eq.f32.partialorder %v6740_v56, %v5508_v20  ;;  %vm1179_vm8 = vcmp.eq.f32.partialorder %v6741_v57, %v5510_v42  ;;  %v1257_v56 = vand.u32 65535, %v6743_v51  ;;  %v1271_v57 = vand.u32 65535, %v5041_v38 }
 0x255   :  { %v1222_v34 = vsel %vm1221_vm7, %v1217_v10, inf  ;;  %v1180_v7 = vsel %vm1179_vm8, %v1175_v11, inf  ;;  %v1299_v38 = vand.u32 65535, %v5057_v55  ;;  %v1327_v55 = vand.u32 65535, %v5073_v61  ;;  %v6749_v61 = vld [vmem:[#allocation30_spill] sm:$0xff] }
 0x256   :  { %1223 = vmin.xlane.f32.xlu1 %v1222_v34  ;;  %1181 = vmin.xlane.f32.xlu0 %v1180_v7  ;;  %v1245_v7 = vcvt.s32.f32 %v1243_v25  ;;  %v1231_v34 = vcvt.s32.f32 %v1229_v5  ;;  %v1273_v25 = vcvt.s32.f32 %v1271_v57  ;;  %v1259_v5 = vcvt.s32.f32 %v1257_v56 }
 0x257   :  { %v5518_v46 = vpop.xlane.xlu0 %1205  ;;  %v1301_v57 = vcvt.s32.f32 %v1299_v38 }
 0x258   :  { %vm1207_vm9 = vcmp.eq.f32.partialorder %v5022_v30, %v5518_v46 }
 0x259   :  { %v1208_v44 = vsel %vm1207_vm9, %v1203_v19, inf  ;;  %v6745_v19 = vld [vmem:[#allocation26_spill] sm:$0xff] }
 0x25a   :  { %1209 = vmin.xlane.f32.xlu0 %v1208_v44  ;;  %v1285_v22 = vand.u32 65535, %v6745_v19 }
 0x25b   :  { %v5524_v10 = vpop.xlane.xlu1 %1247  ;;  %v5526_v11 = vpop.xlane.xlu0 %1233 }
 0x25c   :  { %vm1249_vm10 = vcmp.eq.f32.partialorder %v5035_v26, %v5524_v10  ;;  %vm1235_vm11 = vcmp.eq.f32.partialorder %v6744_v48, %v5526_v11  ;;  %v6746_v26 = vld [vmem:[#allocation27_spill] sm:$0xff]  ;;  %v6747_v48 = vld [vmem:[#allocation28_spill] sm:$0xff]  ;;  %v1287_v56 = vcvt.s32.f32 %v1285_v22  ;;  %v1355_v22 = vand.u32 65535, %v5089_v3 }
 0x25d   :  { %v1250_v4 = vsel %vm1249_vm10, %v1245_v7, inf  ;;  %v1236_v30 = vsel %vm1235_vm11, %v1231_v34, inf  ;;  %v1383_v3 = vand.u32 65535, %v5105_v9  ;;  %v1411_v9 = vand.u32 65535, %v5121_v15 }
 0x25e   :  { %1251 = vmin.xlane.f32.xlu1 %v1250_v4  ;;  %1237 = vmin.xlane.f32.xlu0 %v1236_v30  ;;  %v1313_v4 = vand.u32 65535, %v6747_v48  ;;  %v1439_v15 = vand.u32 65535, %v5137_v21  ;;  %v1467_v21 = vand.u32 65535, %v5153_v28  ;;  %v1495_v28 = vand.u32 65535, %v5169_v37 }
 0x25f   :  { %v5534_v44 = vpop.xlane.xlu1 %1275  ;;  %v5536_v51 = vpop.xlane.xlu0 %1261  ;;  %v1523_v37 = vand.u32 65535, %v5185_v45  ;;  %v1551_v45 = vand.u32 65535, %v5201_v54  ;;  %v1579_v54 = vand.u32 65535, %v5217_v63  ;;  %v1607_v63 = vand.u32 65535, %v5233_v8 }
 0x260   :  { %vm1277_vm12 = vcmp.eq.f32.partialorder %v5051_v29, %v5534_v44  ;;  %vm1263_vm13 = vcmp.eq.f32.partialorder %v6746_v26, %v5536_v51  ;;  %v6748_v29 = vld [vmem:[#allocation29_spill] sm:$0xff]  ;;  %v6618_v26 = vmov 0.0   ;;  %v1315_v48 = vcvt.s32.f32 %v1313_v4 }
 0x261   :  { %v1278_v7 = vsel %vm1277_vm12, %v1273_v25, inf  ;;  %v1264_v34 = vsel %vm1263_vm13, %v1259_v5, inf  ;;  %73 = vst [vmem:[%s6527_s6] sm:$0x1] %v6618_v26  ;;  %v1635_v8 = vand.u32 65535, %v5249_v17  ;;  %v1663_v17 = vand.u32 65535, %v5265_v27 }
 0x262   :  { %1279 = vmin.xlane.f32.xlu1 %v1278_v7  ;;  %1265 = vmin.xlane.f32.xlu0 %v1264_v34  ;;  %v1341_v7 = vand.u32 65535, %v6749_v61  ;;  %v1329_v34 = vcvt.s32.f32 %v1327_v55  ;;  %v1357_v55 = vcvt.s32.f32 %v1355_v22  ;;  %v1385_v22 = vcvt.s32.f32 %v1383_v3 }
 0x263   :  { %v5544_v30 = vpop.xlane.xlu1 %1303  ;;  %v5546_v19 = vpop.xlane.xlu0 %1289  ;;  %v1413_v3 = vcvt.s32.f32 %v1411_v9  ;;  %v1441_v9 = vcvt.s32.f32 %v1439_v15  ;;  %v1469_v15 = vcvt.s32.f32 %v1467_v21  ;;  %v1497_v21 = vcvt.s32.f32 %v1495_v28 }
 0x264   :  { %vm1305_vm14 = vcmp.eq.f32.partialorder %v5067_v36, %v5544_v30  ;;  %vm1291_vm15 = vcmp.eq.f32.partialorder %v6748_v29, %v5546_v19  ;;  %v1343_v4 = vcvt.s32.f32 %v1341_v7  ;;  %v1525_v28 = vcvt.s32.f32 %v1523_v37 }
 0x265   :  { %v1306_v25 = vsel %vm1305_vm14, %v1301_v57, inf  ;;  %v1292_v5 = vsel %vm1291_vm15, %v1287_v56, inf  ;;  %v6750_v57 = vld [vmem:[#allocation31_spill] sm:$0xff]  ;;  %v1553_v37 = vcvt.s32.f32 %v1551_v45  ;;  %v1581_v45 = vcvt.s32.f32 %v1579_v54 }
 0x266   :  { %1307 = vmin.xlane.f32.xlu1 %v1306_v25  ;;  %1293 = vmin.xlane.f32.xlu0 %v1292_v5  ;;  %v6751_v25 = vld [vmem:[#allocation32_spill] sm:$0xff]  ;;  %v1609_v54 = vcvt.s32.f32 %v1607_v63  ;;  %v1637_v63 = vcvt.s32.f32 %v1635_v8  ;;  %v1691_v27 = vand.u32 65535, %v5281_v39  ;;  %v1665_v8 = vcvt.s32.f32 %v1663_v17 }
 0x267   :  { %v5558_v38 = vpop.xlane.xlu1 %1331  ;;  %v5560_v36 = vpop.xlane.xlu0 %1317  ;;  %v1369_v5 = vand.u32 65535, %v6751_v25  ;;  %v1719_v39 = vand.u32 65535, %v5297_v53  ;;  %v1747_v53 = vand.u32 65535, %v5313_v2  ;;  %v1775_v2 = vand.u32 65535, %v5329_v16 }
 0x268   :  { %vm1333_vm1 = vcmp.eq.f32.partialorder %v5083_v52, %v5558_v38  ;;  %vm1319_vm2 = vcmp.eq.f32.partialorder %v6750_v57, %v5560_v36  ;;  %v6752_v52 = vld [vmem:[#allocation33_spill] sm:$0xff]  ;;  %v6753_v57 = vld [vmem:[#allocation34_spill] sm:$0xff]  ;;  %v1693_v17 = vcvt.s32.f32 %v1691_v27  ;;  %v1803_v16 = vand.u32 65535, %v5345_v31 }
 0x269   :  { %v1334_v56 = vsel %vm1333_vm1, %v1329_v34, inf  ;;  %v1320_v29 = vsel %vm1319_vm2, %v1315_v48, inf  ;;  %v1371_v7 = vcvt.s32.f32 %v1369_v5  ;;  %v1721_v27 = vcvt.s32.f32 %v1719_v39 }
 0x26a   :  { %1335 = vmin.xlane.f32.xlu1 %v1334_v56  ;;  %1321 = vmin.xlane.f32.xlu0 %v1320_v29  ;;  %v1397_v56 = vand.u32 65535, %v6753_v57  ;;  %v1749_v39 = vcvt.s32.f32 %v1747_v53  ;;  %v1777_v53 = vcvt.s32.f32 %v1775_v2  ;;  %v1805_v2 = vcvt.s32.f32 %v1803_v16 }
 0x26b   :  { %v5568_v61 = vpop.xlane.xlu1 %1359  ;;  %v5570_v26 = vpop.xlane.xlu0 %1345 }
 0x26c   :  { %vm1361_vm3 = vcmp.eq.f32.partialorder %v5099_v58, %v5568_v61  ;;  %vm1347_vm4 = vcmp.eq.f32.partialorder %v6752_v52, %v5570_v26  ;;  %v6754_v58 = vld [vmem:[#allocation35_spill] sm:$0xff]  ;;  %v6755_v52 = vld [vmem:[#allocation36_spill] sm:$0xff]  ;;  %v1399_v5 = vcvt.s32.f32 %v1397_v56 }
 0x26d   :  { %v1362_v34 = vsel %vm1361_vm3, %v1357_v55, inf  ;;  %v1348_v48 = vsel %vm1347_vm4, %v1343_v4, inf }
 0x26e   :  { %1363 = vmin.xlane.f32.xlu1 %v1362_v34  ;;  %1349 = vmin.xlane.f32.xlu0 %v1348_v48  ;;  %v1425_v34 = vand.u32 65535, %v6755_v52 }
 0x26f   :  { %v5578_v29 = vpop.xlane.xlu1 %1387  ;;  %v5580_v25 = vpop.xlane.xlu0 %1373 }
 0x270   :  { %vm1389_vm5 = vcmp.eq.f32.partialorder %v5115_v0, %v5578_v29  ;;  %vm1375_vm6 = vcmp.eq.f32.partialorder %v6754_v58, %v5580_v25  ;;  %v6756_v0 = vld [vmem:[#allocation37_spill] sm:$0xff]  ;;  %v6757_v58 = vld [vmem:[#allocation38_spill] sm:$0xff]  ;;  %v1427_v56 = vcvt.s32.f32 %v1425_v34 }
 0x271   :  { %v1390_v55 = vsel %vm1389_vm5, %v1385_v22, inf  ;;  %v1376_v4 = vsel %vm1375_vm6, %v1371_v7, inf }
 0x272   :  { %1391 = vmin.xlane.f32.xlu1 %v1390_v55  ;;  %1377 = vmin.xlane.f32.xlu0 %v1376_v4  ;;  %v1453_v55 = vand.u32 65535, %v6757_v58 }
 0x273   :  { %v5588_v48 = vpop.xlane.xlu1 %1415  ;;  %v5590_v57 = vpop.xlane.xlu0 %1401 }
 0x274   :  { %vm1417_vm7 = vcmp.eq.f32.partialorder %v5131_v6, %v5588_v48  ;;  %vm1403_vm8 = vcmp.eq.f32.partialorder %v6756_v0, %v5590_v57  ;;  %v6758_v6 = vld [vmem:[#allocation39_spill] sm:$0xff]  ;;  %v6759_v0 = vld [vmem:[#allocation40_spill] sm:$0xff]  ;;  %v1455_v34 = vcvt.s32.f32 %v1453_v55 }
 0x275   :  { %v1418_v22 = vsel %vm1417_vm7, %v1413_v3, inf  ;;  %v1404_v7 = vsel %vm1403_vm8, %v1399_v5, inf }
 0x276   :  { %1419 = vmin.xlane.f32.xlu1 %v1418_v22  ;;  %1405 = vmin.xlane.f32.xlu0 %v1404_v7  ;;  %v1481_v22 = vand.u32 65535, %v6759_v0 }
 0x277   :  { %v5598_v4 = vpop.xlane.xlu1 %1443  ;;  %v5600_v52 = vpop.xlane.xlu0 %1429 }
 0x278   :  { %vm1445_vm9 = vcmp.eq.f32.partialorder %v5147_v12, %v5598_v4  ;;  %vm1431_vm10 = vcmp.eq.f32.partialorder %v6758_v6, %v5600_v52  ;;  %v6760_v12 = vld [vmem:[#allocation41_spill] sm:$0xff]  ;;  %v6761_v6 = vld [vmem:[#allocation42_spill] sm:$0xff]  ;;  %v1483_v55 = vcvt.s32.f32 %v1481_v22 }
 0x279   :  { %v1446_v3 = vsel %vm1445_vm9, %v1441_v9, inf  ;;  %v1432_v5 = vsel %vm1431_vm10, %v1427_v56, inf }
 0x27a   :  { %1447 = vmin.xlane.f32.xlu1 %v1446_v3  ;;  %1433 = vmin.xlane.f32.xlu0 %v1432_v5  ;;  %v1509_v3 = vand.u32 65535, %v6761_v6 }
 0x27b   :  { %v5608_v7 = vpop.xlane.xlu1 %1471  ;;  %v5610_v58 = vpop.xlane.xlu0 %1457 }
 0x27c   :  { %vm1473_vm11 = vcmp.eq.f32.partialorder %v5163_v18, %v5608_v7  ;;  %vm1459_vm12 = vcmp.eq.f32.partialorder %v6760_v12, %v5610_v58  ;;  %v6762_v18 = vld [vmem:[#allocation43_spill] sm:$0xff]  ;;  %v6763_v12 = vld [vmem:[#allocation44_spill] sm:$0xff]  ;;  %v1511_v22 = vcvt.s32.f32 %v1509_v3 }
 0x27d   :  { %v1474_v9 = vsel %vm1473_vm11, %v1469_v15, inf  ;;  %v1460_v56 = vsel %vm1459_vm12, %v1455_v34, inf }
 0x27e   :  { %1475 = vmin.xlane.f32.xlu1 %v1474_v9  ;;  %1461 = vmin.xlane.f32.xlu0 %v1460_v56  ;;  %v1537_v9 = vand.u32 65535, %v6763_v12 }
 0x27f   :  { %v5618_v5 = vpop.xlane.xlu1 %1499  ;;  %v5620_v0 = vpop.xlane.xlu0 %1485 }
 0x280   :  { %vm1501_vm13 = vcmp.eq.f32.partialorder %v5179_v24, %v5618_v5  ;;  %vm1487_vm14 = vcmp.eq.f32.partialorder %v6762_v18, %v5620_v0  ;;  %v6764_v24 = vld [vmem:[#allocation45_spill] sm:$0xff]  ;;  %v6765_v18 = vld [vmem:[#allocation46_spill] sm:$0xff]  ;;  %v1539_v3 = vcvt.s32.f32 %v1537_v9 }
 0x281   :  { %v1502_v15 = vsel %vm1501_vm13, %v1497_v21, inf  ;;  %v1488_v34 = vsel %vm1487_vm14, %v1483_v55, inf }
 0x282   :  { %1503 = vmin.xlane.f32.xlu1 %v1502_v15  ;;  %1489 = vmin.xlane.f32.xlu0 %v1488_v34  ;;  %v1565_v15 = vand.u32 65535, %v6765_v18 }
 0x283   :  { %v5628_v56 = vpop.xlane.xlu1 %1527  ;;  %v5630_v6 = vpop.xlane.xlu0 %1513 }
 0x284   :  { %vm1529_vm15 = vcmp.eq.f32.partialorder %v5195_v32, %v5628_v56  ;;  %vm1515_vm1 = vcmp.eq.f32.partialorder %v6764_v24, %v5630_v6  ;;  %v6766_v32 = vld [vmem:[#allocation47_spill] sm:$0xff]  ;;  %v6767_v24 = vld [vmem:[#allocation48_spill] sm:$0xff]  ;;  %v1567_v9 = vcvt.s32.f32 %v1565_v15 }
 0x285   :  { %v1530_v21 = vsel %vm1529_vm15, %v1525_v28, inf  ;;  %v1516_v55 = vsel %vm1515_vm1, %v1511_v22, inf }
 0x286   :  { %1531 = vmin.xlane.f32.xlu1 %v1530_v21  ;;  %1517 = vmin.xlane.f32.xlu0 %v1516_v55  ;;  %v1593_v21 = vand.u32 65535, %v6767_v24 }
 0x287   :  { %v5638_v34 = vpop.xlane.xlu1 %1555  ;;  %v5640_v12 = vpop.xlane.xlu0 %1541 }
 0x288   :  { %vm1557_vm2 = vcmp.eq.f32.partialorder %v5211_v40, %v5638_v34  ;;  %vm1543_vm3 = vcmp.eq.f32.partialorder %v6766_v32, %v5640_v12  ;;  %v6769_v40 = vld [vmem:[#allocation49_spill] sm:$0xff]  ;;  %v6770_v32 = vld [vmem:[#allocation50_spill] sm:$0xff]  ;;  %v1595_v15 = vcvt.s32.f32 %v1593_v21 }
 0x289   :  { %v1558_v28 = vsel %vm1557_vm2, %v1553_v37, inf  ;;  %v1544_v22 = vsel %vm1543_vm3, %v1539_v3, inf }
 0x28a   :  { %1559 = vmin.xlane.f32.xlu1 %v1558_v28  ;;  %1545 = vmin.xlane.f32.xlu0 %v1544_v22  ;;  %v1621_v28 = vand.u32 65535, %v6770_v32 }
 0x28b   :  { %v5648_v55 = vpop.xlane.xlu1 %1583  ;;  %v5650_v18 = vpop.xlane.xlu0 %1569 }
 0x28c   :  { %6768 = vst [vmem:[#allocation20_spill] sm:$0xff] %v5650_v18  ;;  %vm1585_vm4 = vcmp.eq.f32.partialorder %v5227_v50, %v5648_v55  ;;  %vm1571_vm5 = vcmp.eq.f32.partialorder %v6769_v40, %v5650_v18  ;;  %v6771_v50 = vld [vmem:[#allocation51_spill] sm:$0xff]  ;;  %v6772_v40 = vld [vmem:[#allocation52_spill] sm:$0xff]  ;;  %v1623_v21 = vcvt.s32.f32 %v1621_v28  ;;  %v6773_v18 = vld [vmem:[#allocation53_spill] sm:$0xff] }
 0x28d   :  { %v1586_v37 = vsel %vm1585_vm4, %v1581_v45, inf  ;;  %v1572_v3 = vsel %vm1571_vm5, %v1567_v9, inf }
 0x28e   :  { %1587 = vmin.xlane.f32.xlu1 %v1586_v37  ;;  %1573 = vmin.xlane.f32.xlu0 %v1572_v3  ;;  %v1649_v37 = vand.u32 65535, %v6772_v40  ;;  %v6775_v40 = vld [vmem:[#allocation55_spill] sm:$0xff] }
 0x28f   :  { %v5658_v22 = vpop.xlane.xlu1 %1611  ;;  %v5660_v24 = vpop.xlane.xlu0 %1597 }
 0x290   :  { %vm1613_vm6 = vcmp.eq.f32.partialorder %v5243_v59, %v5658_v22  ;;  %vm1599_vm7 = vcmp.eq.f32.partialorder %v6771_v50, %v5660_v24  ;;  %v1651_v28 = vcvt.s32.f32 %v1649_v37 }
 0x291   :  { %v1614_v45 = vsel %vm1613_vm6, %v1609_v54, inf  ;;  %v1600_v9 = vsel %vm1599_vm7, %v1595_v15, inf  ;;  %v6774_v15 = vld [vmem:[#allocation54_spill] sm:$0xff] }
 0x292   :  { %1615 = vmin.xlane.f32.xlu1 %v1614_v45  ;;  %1601 = vmin.xlane.f32.xlu0 %v1600_v9  ;;  %v1677_v50 = vand.u32 65535, %v6774_v15  ;;  %v6777_v15 = vld [vmem:[#allocation57_spill] sm:$0xff] }
 0x293   :  { %v5668_v3 = vpop.xlane.xlu1 %1639  ;;  %v5670_v32 = vpop.xlane.xlu0 %1625 }
 0x294   :  { %vm1641_vm8 = vcmp.eq.f32.partialorder %v6773_v18, %v5668_v3  ;;  %vm1627_vm9 = vcmp.eq.f32.partialorder %v5262_v14, %v5670_v32  ;;  %v1679_v37 = vcvt.s32.f32 %v1677_v50 }
 0x295   :  { %v1642_v59 = vsel %vm1641_vm8, %v1637_v63, inf  ;;  %v1628_v54 = vsel %vm1627_vm9, %v1623_v21, inf  ;;  %v6776_v63 = vld [vmem:[#allocation56_spill] sm:$0xff] }
 0x296   :  { %1643 = vmin.xlane.f32.xlu1 %v1642_v59  ;;  %1629 = vmin.xlane.f32.xlu0 %v1628_v54  ;;  %v1705_v21 = vand.u32 65535, %v6776_v63  ;;  %v6779_v63 = vld [vmem:[#allocation59_spill] sm:$0xff] }
 0x297   :  { %v5678_v45 = vpop.xlane.xlu1 %1667  ;;  %v5680_v9 = vpop.xlane.xlu0 %1653 }
 0x298   :  { %vm1669_vm10 = vcmp.eq.f32.partialorder %v6775_v40, %v5678_v45  ;;  %vm1655_vm11 = vcmp.eq.f32.partialorder %v5278_v35, %v5680_v9  ;;  %v1707_v50 = vcvt.s32.f32 %v1705_v21 }
 0x299   :  { %v1670_v14 = vsel %vm1669_vm10, %v1665_v8, inf  ;;  %v1656_v18 = vsel %vm1655_vm11, %v1651_v28, inf  ;;  %v6778_v28 = vld [vmem:[#allocation58_spill] sm:$0xff] }
 0x29a   :  { %1671 = vmin.xlane.f32.xlu1 %v1670_v14  ;;  %1657 = vmin.xlane.f32.xlu0 %v1656_v18  ;;  %v1733_v40 = vand.u32 65535, %v6778_v28  ;;  %v6782_v28 = vld [vmem:[#allocation61_spill] sm:$0xff] }
 0x29b   :  { %v5688_v59 = vpop.xlane.xlu1 %1695  ;;  %v5690_v54 = vpop.xlane.xlu0 %1681 }
 0x29c   :  { %vm1697_vm12 = vcmp.eq.f32.partialorder %v6777_v15, %v5688_v59  ;;  %vm1683_vm13 = vcmp.eq.f32.partialorder %v5294_v43, %v5690_v54  ;;  %v1735_v21 = vcvt.s32.f32 %v1733_v40 }
 0x29d   :  { %v1698_v35 = vsel %vm1697_vm12, %v1693_v17, inf  ;;  %v1684_v8 = vsel %vm1683_vm13, %v1679_v37, inf  ;;  %v6780_v37 = vld [vmem:[#allocation60_spill] sm:$0xff] }
 0x29e   :  { %1699 = vmin.xlane.f32.xlu1 %v1698_v35  ;;  %1685 = vmin.xlane.f32.xlu0 %v1684_v8  ;;  %v1761_v15 = vand.u32 65535, %v6780_v37  ;;  %v6786_v37 = vld [vmem:[#allocation63_spill] sm:$0xff] }
 0x29f   :  { %v5698_v14 = vpop.xlane.xlu1 %1723  ;;  %v5700_v18 = vpop.xlane.xlu0 %1709 }
 0x2a0   :  { %vm1725_vm14 = vcmp.eq.f32.partialorder %v6779_v63, %v5698_v14  ;;  %vm1711_vm15 = vcmp.eq.f32.partialorder %v5310_v41, %v5700_v18  ;;  %v1763_v40 = vcvt.s32.f32 %v1761_v15 }
 0x2a1   :  { %v1726_v43 = vsel %vm1725_vm14, %v1721_v27, inf  ;;  %v1712_v17 = vsel %vm1711_vm15, %v1707_v50, inf  ;;  %v6783_v50 = vld [vmem:[#allocation62_spill] sm:$0xff] }
 0x2a2   :  { %1727 = vmin.xlane.f32.xlu1 %v1726_v43  ;;  %1713 = vmin.xlane.f32.xlu0 %v1712_v17  ;;  %v1789_v63 = vand.u32 65535, %v6783_v50 }
 0x2a3   :  { %v5708_v35 = vpop.xlane.xlu1 %1751  ;;  %v5710_v8 = vpop.xlane.xlu0 %1737 }
 0x2a4   :  { %6781 = vst [vmem:[#allocation19_spill] sm:$0xff] %v5710_v8  ;;  %vm1753_vm1 = vcmp.eq.f32.partialorder %v6782_v28, %v5708_v35  ;;  %vm1739_vm2 = vcmp.eq.f32.partialorder %v5326_v13, %v5710_v8  ;;  %v1791_v15 = vcvt.s32.f32 %v1789_v63  ;;  %v6791_v8 = vld [vmem:[#allocation65_spill] sm:$0xff] }
 0x2a5   :  { %v1754_v41 = vsel %vm1753_vm1, %v1749_v39, inf  ;;  %v1740_v27 = vsel %vm1739_vm2, %v1735_v21, inf  ;;  %v6787_v21 = vld [vmem:[#allocation64_spill] sm:$0xff] }
 0x2a6   :  { %1755 = vmin.xlane.f32.xlu1 %v1754_v41  ;;  %1741 = vmin.xlane.f32.xlu0 %v1740_v27  ;;  %v1817_v28 = vand.u32 65535, %v6787_v21  ;;  %v6788_v41 = vld [vmem:[#allocation67_spill] sm:$0xff] }
 0x2a7   :  { %v5718_v43 = vpop.xlane.xlu1 %1779  ;;  %v5720_v17 = vpop.xlane.xlu0 %1765  ;;  %v1831_v31 = vand.u32 65535, %v6788_v41 }
 0x2a8   :  { %6784 = vst [vmem:[#allocation21_spill] sm:$0xff] %v5718_v43  ;;  %6785 = vst [vmem:[#allocation22_spill] sm:$0xff] %v5720_v17  ;;  %vm1781_vm3 = vcmp.eq.f32.partialorder %v6786_v37, %v5718_v43  ;;  %vm1767_vm4 = vcmp.eq.f32.partialorder %v5342_v33, %v5720_v17  ;;  %v6792_v37 = vld [vmem:[#allocation66_spill] sm:$0xff]  ;;  %v1819_v63 = vcvt.s32.f32 %v1817_v28  ;;  %v6797_v43 = vld [vmem:[#allocation69_spill] sm:$0xff] }
 0x2a9   :  { %v1782_v13 = vsel %vm1781_vm3, %v1777_v53, inf  ;;  %v1768_v39 = vsel %vm1767_vm4, %v1763_v40, inf  ;;  %v6793_v40 = vld [vmem:[#allocation68_spill] sm:$0xff]  ;;  %v1833_v16 = vcvt.s32.f32 %v1831_v31 }
 0x2aa   :  { %1783 = vmin.xlane.f32.xlu1 %v1782_v13  ;;  %1769 = vmin.xlane.f32.xlu0 %v1768_v39  ;;  %v1845_v13 = vand.u32 65535, %v6793_v40  ;;  %v6794_v39 = vld [vmem:[#allocation71_spill] sm:$0xff] }
 0x2ab   :  { %v5728_v27 = vpop.xlane.xlu1 %1807  ;;  %v5730_v50 = vpop.xlane.xlu0 %1793  ;;  %v1859_v21 = vand.u32 65535, %v6794_v39 }
 0x2ac   :  { %6789 = vst [vmem:[#allocation23_spill] sm:$0xff] %v5728_v27  ;;  %6790 = vst [vmem:[#allocation24_spill] sm:$0xff] %v5730_v50  ;;  %vm1809_vm5 = vcmp.eq.f32.partialorder %v6791_v8, %v5728_v27  ;;  %vm1795_vm6 = vcmp.eq.f32.partialorder %v6792_v37, %v5730_v50  ;;  %v6798_v8 = vld [vmem:[#allocation70_spill] sm:$0xff]  ;;  %v6799_v37 = vld [vmem:[#allocation8_spill] sm:$0xff]  ;;  %v1847_v28 = vcvt.s32.f32 %v1845_v13 }
 0x2ad   :  { %v1810_v33 = vsel %vm1809_vm5, %v1805_v2, inf  ;;  %v1796_v53 = vsel %vm1795_vm6, %v1791_v15, inf  ;;  %v1861_v31 = vcvt.s32.f32 %v1859_v21  ;;  %v6801_v27 = vld [vmem:[#allocation9_spill] sm:$0xff] }
 0x2ae   :  { %1811 = vmin.xlane.f32.xlu1 %v1810_v33  ;;  %1797 = vmin.xlane.f32.xlu0 %v1796_v53  ;;  %v1873_v33 = vand.u32 65535, %v6799_v37  ;;  %v6800_v53 = vld [vmem:[#allocation73_spill] sm:$0xff] }
 0x2af   :  { %v5738_v41 = vpop.xlane.xlu1 %1835  ;;  %v5740_v17 = vpop.xlane.xlu0 %1821  ;;  %v1887_v40 = vand.u32 65535, %v6800_v53 }
 0x2b0   :  { %6795 = vst [vmem:[#allocation25_spill] sm:$0xff] %v5738_v41  ;;  %6796 = vst [vmem:[#allocation26_spill] sm:$0xff] %v5740_v17  ;;  %vm1837_vm7 = vcmp.eq.f32.partialorder %v6797_v43, %v5738_v41  ;;  %vm1823_vm8 = vcmp.eq.f32.partialorder %v6798_v8, %v5740_v17  ;;  %v6802_v43 = vld [vmem:[#allocation72_spill] sm:$0xff]  ;;  %v6803_v8 = vld [vmem:[#allocation10_spill] sm:$0xff]  ;;  %v1875_v13 = vcvt.s32.f32 %v1873_v33 }
 0x2b1   :  { %v1838_v2 = vsel %vm1837_vm7, %v1833_v16, inf  ;;  %v1824_v15 = vsel %vm1823_vm8, %v1819_v63, inf  ;;  %v1889_v21 = vcvt.s32.f32 %v1887_v40  ;;  %v6806_v41 = vld [vmem:[#allocation11_spill] sm:$0xff] }
 0x2b2   :  { %1839 = vmin.xlane.f32.xlu1 %v1838_v2  ;;  %1825 = vmin.xlane.f32.xlu0 %v1824_v15  ;;  %v1901_v2 = vand.u32 65535, %v6803_v8  ;;  %v6804_v15 = vld [vmem:[#allocation74_spill] sm:$0xff] }
 0x2b3   :  { %v5748_v39 = vpop.xlane.xlu1 %1863  ;;  %v5750_v50 = vpop.xlane.xlu0 %1849  ;;  %v1915_v37 = vand.u32 65535, %v6804_v15  ;;  %v6809_v15 = vld [vmem:[#allocation13_spill] sm:$0xff] }
 0x2b4   :  { %vm1865_vm9 = vcmp.eq.f32.partialorder %v6801_v27, %v5748_v39  ;;  %vm1851_vm10 = vcmp.eq.f32.partialorder %v6802_v43, %v5750_v50  ;;  %v1903_v33 = vcvt.s32.f32 %v1901_v2 }
 0x2b5   :  { %v1866_v16 = vsel %vm1865_vm9, %v1861_v31, inf  ;;  %v1852_v63 = vsel %vm1851_vm10, %v1847_v28, inf  ;;  %v6807_v28 = vld [vmem:[#allocation12_spill] sm:$0xff]  ;;  %v1917_v40 = vcvt.s32.f32 %v1915_v37 }
 0x2b6   :  { %1867 = vmin.xlane.f32.xlu1 %v1866_v16  ;;  %1853 = vmin.xlane.f32.xlu0 %v1852_v63  ;;  %v1929_v43 = vand.u32 65535, %v6807_v28  ;;  %v1943_v16 = vand.u32 65535, %v5425_v49 }
 0x2b7   :  { %v5758_v53 = vpop.xlane.xlu1 %1891  ;;  %v5760_v17 = vpop.xlane.xlu0 %1877 }
 0x2b8   :  { %6805 = vst [vmem:[#allocation27_spill] sm:$0xff] %v5760_v17  ;;  %vm1893_vm11 = vcmp.eq.f32.partialorder %v6806_v41, %v5758_v53  ;;  %vm1879_vm12 = vcmp.eq.f32.partialorder %v5406_v60, %v5760_v17  ;;  %v1945_v37 = vcvt.s32.f32 %v1943_v16  ;;  %v1931_v2 = vcvt.s32.f32 %v1929_v43  ;;  %v6812_v17 = vld [vmem:[#allocation75_spill] sm:$0xff] }
 0x2b9   :  { %v1894_v27 = vsel %vm1893_vm11, %v1889_v21, inf  ;;  %v1880_v31 = vsel %vm1879_vm12, %v1875_v13, inf  ;;  %v6810_v21 = vld [vmem:[#allocation14_spill] sm:$0xff] }
 0x2ba   :  { %1895 = vmin.xlane.f32.xlu1 %v1894_v27  ;;  %1881 = vmin.xlane.f32.xlu0 %v1880_v31  ;;  %v1957_v13 = vand.u32 65535, %v6810_v21  ;;  %v6811_v27 = vld [vmem:[#allocation77_spill] sm:$0xff] }
 0x2bb   :  { %v5768_v63 = vpop.xlane.xlu1 %1919  ;;  %v5770_v8 = vpop.xlane.xlu0 %1905  ;;  %v1971_v49 = vand.u32 65535, %v6811_v27 }
 0x2bc   :  { %6808 = vst [vmem:[#allocation28_spill] sm:$0xff] %v5770_v8  ;;  %vm1921_vm13 = vcmp.eq.f32.partialorder %v6809_v15, %v5768_v63  ;;  %vm1907_vm14 = vcmp.eq.f32.partialorder %v5422_v47, %v5770_v8  ;;  %v6813_v15 = vld [vmem:[#allocation76_spill] sm:$0xff]  ;;  %v1959_v43 = vcvt.s32.f32 %v1957_v13  ;;  %v6817_v8 = vld [vmem:[#allocation79_spill] sm:$0xff] }
 0x2bd   :  { %v1922_v60 = vsel %vm1921_vm13, %v1917_v40, inf  ;;  %v1908_v41 = vsel %vm1907_vm14, %v1903_v33, inf  ;;  %v6814_v33 = vld [vmem:[#allocation78_spill] sm:$0xff]  ;;  %v1973_v16 = vcvt.s32.f32 %v1971_v49 }
 0x2be   :  { %1923 = vmin.xlane.f32.xlu1 %v1922_v60  ;;  %1909 = vmin.xlane.f32.xlu0 %v1908_v41  ;;  %v1985_v60 = vand.u32 65535, %v6814_v33  ;;  %v1999_v41 = vand.u32 65535, %v5457_v1  ;;  %v6820_v33 = vld [vmem:[#allocation15_spill] sm:$0xff] }
 0x2bf   :  { %v5778_v31 = vpop.xlane.xlu1 %1947  ;;  %v5780_v28 = vpop.xlane.xlu0 %1933 }
 0x2c0   :  { %vm1949_vm15 = vcmp.eq.f32.partialorder %v6812_v17, %v5778_v31  ;;  %vm1935_vm1 = vcmp.eq.f32.partialorder %v6813_v15, %v5780_v28  ;;  %v6818_v15 = vld [vmem:[#allocation80_spill] sm:$0xff]  ;;  %v2001_v49 = vcvt.s32.f32 %v1999_v41  ;;  %v1987_v13 = vcvt.s32.f32 %v1985_v60 }
 0x2c1   :  { %v1950_v47 = vsel %vm1949_vm15, %v1945_v37, inf  ;;  %v1936_v40 = vsel %vm1935_vm1, %v1931_v2, inf  ;;  %v2013_v2 = vand.u32 65535, %v5462_v62  ;;  %v2027_v1 = vand.u32 65535, %v6818_v15 }
 0x2c2   :  { %1951 = vmin.xlane.f32.xlu1 %v1950_v47  ;;  %1937 = vmin.xlane.f32.xlu0 %v1936_v40 }
 0x2c3   :  { %v5788_v21 = vpop.xlane.xlu1 %1975  ;;  %v5790_v27 = vpop.xlane.xlu0 %1961  ;;  %v2029_v41 = vcvt.s32.f32 %v2027_v1  ;;  %v2015_v60 = vcvt.s32.f32 %v2013_v2  ;;  %v6831_v2 = vld [vmem:[#allocation86_spill] sm:$0xff] }
 0x2c4   :  { %6815 = vst [vmem:[#allocation29_spill] sm:$0xff] %v5788_v21  ;;  %6816 = vst [vmem:[#allocation30_spill] sm:$0xff] %v5790_v27  ;;  %vm1977_vm2 = vcmp.eq.f32.partialorder %v6817_v8, %v5788_v21  ;;  %vm1963_vm3 = vcmp.eq.f32.partialorder %v5454_v23, %v5790_v27  ;;  %v6821_v8 = vld [vmem:[#allocation16_spill] sm:$0xff]  ;;  %v6826_v21 = vld [vmem:[#allocation82_spill] sm:$0xff] }
 0x2c5   :  { %v1978_v17 = vsel %vm1977_vm2, %v1973_v16, inf  ;;  %v1964_v37 = vsel %vm1963_vm3, %v1959_v43, inf  ;;  %v6822_v43 = vld [vmem:[#allocation81_spill] sm:$0xff] }
 0x2c6   :  { %1979 = vmin.xlane.f32.xlu1 %v1978_v17  ;;  %1965 = vmin.xlane.f32.xlu0 %v1964_v37  ;;  %v2041_v62 = vand.u32 65535, %v6822_v43  ;;  %v6823_v17 = vld [vmem:[#allocation84_spill] sm:$0xff] }
 0x2c7   :  { %v5798_v47 = vpop.xlane.xlu1 %2003  ;;  %v5800_v40 = vpop.xlane.xlu0 %1989  ;;  %v2055_v37 = vand.u32 65535, %v6823_v17  ;;  %v6830_v17 = vld [vmem:[#allocation85_spill] sm:$0xff] }
 0x2c8   :  { %6819 = vst [vmem:[#allocation31_spill] sm:$0xff] %v5800_v40  ;;  %vm2005_vm4 = vcmp.eq.f32.partialorder %v6820_v33, %v5798_v47  ;;  %vm1991_vm5 = vcmp.eq.f32.partialorder %v6821_v8, %v5800_v40  ;;  %v6827_v33 = vld [vmem:[#allocation83_spill] sm:$0xff]  ;;  %v2043_v43 = vcvt.s32.f32 %v2041_v62 }
 0x2c9   :  { %v2006_v23 = vsel %vm2005_vm4, %v2001_v49, inf  ;;  %v1992_v16 = vsel %vm1991_vm5, %v1987_v13, inf }
 0x2ca   :  { %2007 = vmin.xlane.f32.xlu1 %v2006_v23  ;;  %1993 = vmin.xlane.f32.xlu0 %v1992_v16  ;;  %v2057_v16 = vcvt.s32.f32 %v2055_v37 }
 0x2cb   :  { %v5808_v15 = vpop.xlane.xlu1 %2031  ;;  %v5810_v27 = vpop.xlane.xlu0 %2017 }
 0x2cc   :  { %6824 = vst [vmem:[#allocation32_spill] sm:$0xff] %v5808_v15  ;;  %6825 = vst [vmem:[#allocation33_spill] sm:$0xff] %v5810_v27  ;;  %vm2033_vm6 = vcmp.eq.f32.partialorder %v6826_v21, %v5808_v15  ;;  %vm2019_vm7 = vcmp.eq.f32.partialorder %v6827_v33, %v5810_v27  ;;  %v1226_v33 = vcvt.f32.s32 %v5508_v20  ;;  %v1184_v27 = vcvt.f32.s32 %v5510_v42 }
 0x2cd   :  { %v2034_v49 = vsel %vm2033_vm6, %v2029_v41, inf  ;;  %v2020_v13 = vsel %vm2019_vm7, %v2015_v60, inf  ;;  %v6832_v41 = vld [vmem:[#allocation18_spill] sm:$0xff]  ;;  %v1254_v20 = vcvt.f32.s32 %v5524_v10 }
 0x2ce   :  { %2035 = vmin.xlane.f32.xlu1 %v2034_v49  ;;  %2021 = vmin.xlane.f32.xlu0 %v2020_v13  ;;  %v1198_v60 = vcvt.f32.s32 %v6832_v41  ;;  %v1227_v15 = vshll.u32 %v1226_v33, 16  ;;  %v1240_v41 = vcvt.f32.s32 %v5526_v11  ;;  %v6834_v33 = vmov 0.0  }
 0x2cf   :  { %v5816_v8 = vpop.xlane.xlu1 %2059  ;;  %v5818_v23 = vpop.xlane.xlu0 %2045  ;;  %v1255_v10 = vshll.u32 %v1254_v20, 16 }
 0x2d0   :  { %6828 = vst [vmem:[#allocation34_spill] sm:$0xff] %v5816_v8  ;;  %6829 = vst [vmem:[#allocation35_spill] sm:$0xff] %v5818_v23  ;;  %vm2061_vm8 = vcmp.eq.f32.partialorder %v6830_v17, %v5816_v8  ;;  %vm2047_vm9 = vcmp.eq.f32.partialorder %v6831_v2, %v5818_v23  ;;  %v1199_v13 = vshll.u32 %v1198_v60, 16  ;;  %v1185_v8 = vshll.u32 %v1184_v27, 16  ;;  %v6833_v23 = vld [vmem:[#allocation17_spill] sm:$0xff] }
 0x2d1   :  { %v2062_v21 = vsel %vm2061_vm8, %v2057_v16, inf  ;;  %v2048_v1 = vsel %vm2047_vm9, %v2043_v43, inf  ;;  %v1212_v2 = vcvt.f32.s32 %v5518_v46  ;;  %v4526_v46 = vmov 1.0  }
 0x2d2   :  { %2063 = vmin.xlane.f32.xlu1 %v2062_v21  ;;  %2049 = vmin.xlane.f32.xlu0 %v2048_v1  ;;  %v1241_v11 = vshll.u32 %v1240_v41, 16 }
 0x2d3   :  { %v1213_v42 = vshll.u32 %v1212_v2, 16 }
 0x2df   :  { %v1196_v49 = vpop.xlane.xlu1 %1195 }
 0x2e0   :  { %v1197_v37 = vcvt.f32.s32 %v1196_v49 }
 0x2e2   :  { %v1200_v62 = vadd.s32 %v1199_v13, %v1197_v37  ;;  %v1268_v37 = vcvt.f32.s32 %v5536_v51 }
 0x2e3   :  { %v1224_v40 = vpop.xlane.xlu1 %1223  ;;  %v1182_v17 = vpop.xlane.xlu0 %1181 }
 0x2e4   :  { %v1225_v16 = vcvt.f32.s32 %v1224_v40  ;;  %v1183_v43 = vcvt.f32.s32 %v1182_v17  ;;  %vm2070_vm10 = vcmp.eq.s32.totalorder %v6833_v23, %v1200_v62 }
 0x2e5   :  { %v3524_v27 = vsel %vm2070_vm10, 1.0, %v6834_v33 }
 0x2e6   :  { %v1228_v21 = vadd.s32 %v1227_v15, %v1225_v16  ;;  %v1186_v1 = vadd.s32 %v1185_v8, %v1183_v43  ;;  %v1282_v8 = vcvt.f32.s32 %v5534_v44 }
 0x2e7   :  { %v1210_v60 = vpop.xlane.xlu0 %1209 }
 0x2e8   :  { %v1211_v49 = vcvt.f32.s32 %v1210_v60  ;;  %vm2069_vm11 = vcmp.eq.s32.totalorder %v6833_v23, %v1186_v1  ;;  %vm2072_vm12 = vcmp.eq.s32.totalorder %v6833_v23, %v1228_v21  ;;  %v1310_v1 = vcvt.f32.s32 %v5544_v30 }
 0x2e9   :  { %v3523_v13 = vsel %vm2069_vm11, 1.0, %v6834_v33  ;;  %4226 = vmatprep.mubr.msk.f32.mxu1 %vm2069_vm11, %v4526_v46  ;;  %v3526_v44 = vsel %vm2072_vm12, 1.0, %v6834_v33  ;;  %v1296_v30 = vcvt.f32.s32 %v5546_v19 }
 0x2ea   :  { %v1214_v40 = vadd.s32 %v1213_v42, %v1211_v49  ;;  %v3780_v15 = vpack.c.bf16 %v3524_v27, %v3523_v13  ;;  %4227 = vmatmul.mubr.msk.f32.vlgmr.msra.gmra.mrb[0].mxu1 %vm2070_vm10, %v4526_v46  ;;  %v3300_v2 = vadd.f32 %v3524_v27, %v3523_v13  ;;  %v1283_v49 = vshll.u32 %v1282_v8, 16 }
 0x2eb   :  { %v1252_v62 = vpop.xlane.xlu1 %1251  ;;  %v1238_v17 = vpop.xlane.xlu0 %1237  ;;  %v1269_v13 = vshll.u32 %v1268_v37, 16 }
 0x2ec   :  { %3781 = vst [vmem:[%s6524_s3] sm:$0xff] %v3780_v15   ;;  %v1253_v16 = vcvt.f32.s32 %v1252_v62  ;;  %v1239_v43 = vcvt.f32.s32 %v1238_v17  ;;  %vm2071_vm13 = vcmp.eq.s32.totalorder %v6833_v23, %v1214_v40 }
 0x2ed   :  { %v3525_v20 = vsel %vm2071_vm13, 1.0, %v6834_v33  ;;  %4229 = vmatprep.mubr.msk.f32.mxu1 %vm2071_vm13, %v4526_v46 }
 0x2ee   :  { %v1256_v51 = vadd.s32 %v1255_v10, %v1253_v16  ;;  %v1242_v41 = vadd.s32 %v1241_v11, %v1239_v43  ;;  %v3301_v60 = vadd.f32 %v3525_v20, %v3300_v2  ;;  %v3783_v42 = vpack.c.bf16 %v3526_v44, %v3525_v20  ;;  %4230 = vmatmul.mubr.msk.f32.gmra.mrb[2].mxu1 %vm2072_vm12, %v4526_v46 }
 0x2ef   :  { %v1280_v27 = vpop.xlane.xlu1 %1279  ;;  %v1266_v40 = vpop.xlane.xlu0 %1265  ;;  %v1311_v11 = vshll.u32 %v1310_v1, 16  ;;  %v1297_v2 = vshll.u32 %v1296_v30, 16  ;;  %v1338_v16 = vcvt.f32.s32 %v5558_v38  ;;  %v1324_v43 = vcvt.f32.s32 %v5560_v36 }
 0x2f0   :  { %3875 = vst [vmem:[%s6524_s3 + $0x8] sm:$0xff] %v3783_v42   ;;  %v3302_v15 = vadd.f32 %v3526_v44, %v3301_v60  ;;  %v1281_v62 = vcvt.f32.s32 %v1280_v27  ;;  %v1267_v10 = vcvt.f32.s32 %v1266_v40  ;;  %vm2073_vm14 = vcmp.eq.s32.totalorder %v6833_v23, %v1242_v41 }
 0x2f1   :  { %v3527_v17 = vsel %vm2073_vm14, 1.0, %v6834_v33  ;;  %4232 = vmatprep.mubr.msk.f32.mxu1 %vm2073_vm14, %v4526_v46  ;;  %vm2074_vm15 = vcmp.eq.s32.totalorder %v6833_v23, %v1256_v51  ;;  %v1366_v51 = vcvt.f32.s32 %v5568_v61  ;;  %v1339_v27 = vshll.u32 %v1338_v16, 16 }
 0x2f2   :  { %v1284_v21 = vadd.s32 %v1283_v49, %v1281_v62  ;;  %v1270_v19 = vadd.s32 %v1269_v13, %v1267_v10  ;;  %v3303_v8 = vadd.f32 %v3527_v17, %v3302_v15  ;;  %v3528_v37 = vsel %vm2074_vm15, 1.0, %v6834_v33  ;;  %4233 = vmatmul.mubr.msk.f32.gmra.mrb[4].mxu1 %vm2074_vm15, %v4526_v46 }
 0x2f3   :  { %v3786_v20 = vpack.c.bf16 %v3528_v37, %v3527_v17  ;;  %v1308_v1 = vpop.xlane.xlu1 %1307  ;;  %v1294_v44 = vpop.xlane.xlu0 %1293  ;;  %v1325_v40 = vshll.u32 %v1324_v43, 16  ;;  %v1352_v61 = vcvt.f32.s32 %v5570_v26 }
 0x2f4   :  { %v3304_v41 = vadd.f32 %v3528_v37, %v3303_v8  ;;  %v1309_v60 = vcvt.f32.s32 %v1308_v1  ;;  %v1295_v42 = vcvt.f32.s32 %v1294_v44  ;;  %vm2075_vm1 = vcmp.eq.s32.totalorder %v6833_v23, %v1270_v19 }
 0x2f5   :  { %3876 = vst [vmem:[%s6524_s3 + $0x10] sm:$0xff] %v3786_v20   ;;  %v3529_v49 = vsel %vm2075_vm1, 1.0, %v6834_v33  ;;  %4235 = vmatprep.mubr.msk.f32.mxu1 %vm2075_vm1, %v4526_v46  ;;  %vm2076_vm2 = vcmp.eq.s32.totalorder %v6833_v23, %v1284_v21  ;;  %v1367_v21 = vshll.u32 %v1366_v51, 16  ;;  %v1353_v43 = vshll.u32 %v1352_v61, 16 }
 0x2f6   :  { %v1312_v38 = vadd.s32 %v1311_v11, %v1309_v60  ;;  %v1298_v36 = vadd.s32 %v1297_v2, %v1295_v42  ;;  %v3305_v13 = vadd.f32 %v3529_v49, %v3304_v41  ;;  %v3530_v30 = vsel %vm2076_vm2, 1.0, %v6834_v33  ;;  %4236 = vmatmul.mubr.msk.f32.gmra.mrb[6].mxu1 %vm2076_vm2, %v4526_v46 }
 0x2f7   :  { %v3789_v15 = vpack.c.bf16 %v3530_v30, %v3529_v49  ;;  %v1336_v62 = vpop.xlane.xlu1 %1335  ;;  %v1322_v10 = vpop.xlane.xlu0 %1321  ;;  %v1394_v20 = vcvt.f32.s32 %v5578_v29  ;;  %v1380_v1 = vcvt.f32.s32 %v5580_v25 }
 0x2f8   :  { %v3306_v17 = vadd.f32 %v3530_v30, %v3305_v13  ;;  %v1337_v19 = vcvt.f32.s32 %v1336_v62  ;;  %v1323_v8 = vcvt.f32.s32 %v1322_v10  ;;  %vm2077_vm3 = vcmp.eq.s32.totalorder %v6833_v23, %v1298_v36 }
 0x2f9   :  { %3877 = vst [vmem:[%s6524_s3 + $0x18] sm:$0xff] %v3789_v15   ;;  %v3531_v11 = vsel %vm2077_vm3, 1.0, %v6834_v33  ;;  %4238 = vmatprep.mubr.msk.f32.mxu1 %vm2077_vm3, %v4526_v46  ;;  %vm2078_vm4 = vcmp.eq.s32.totalorder %v6833_v23, %v1312_v38  ;;  %v1422_v38 = vcvt.f32.s32 %v5588_v48  ;;  %v1408_v48 = vcvt.f32.s32 %v5590_v57 }
 0x2fa   :  { %v1340_v26 = vadd.s32 %v1339_v27, %v1337_v19  ;;  %v1326_v37 = vadd.s32 %v1325_v40, %v1323_v8  ;;  %v3307_v2 = vadd.f32 %v3531_v11, %v3306_v17  ;;  %v3532_v16 = vsel %vm2078_vm4, 1.0, %v6834_v33  ;;  %4239 = vmatmul.mubr.msk.f32.gmra.mrb[8].mxu1 %vm2078_vm4, %v4526_v46 }
 0x2fb   :  { %v3792_v44 = vpack.c.bf16 %v3532_v16, %v3531_v11  ;;  %v1364_v41 = vpop.xlane.xlu1 %1363  ;;  %v1350_v60 = vpop.xlane.xlu0 %1349  ;;  %v1395_v27 = vshll.u32 %v1394_v20, 16  ;;  %v1381_v40 = vshll.u32 %v1380_v1, 16  ;;  %v1423_v8 = vshll.u32 %v1422_v38, 16 }
 0x2fc   :  { %v3308_v42 = vadd.f32 %v3532_v16, %v3307_v2  ;;  %v1365_v51 = vcvt.f32.s32 %v1364_v41  ;;  %v1351_v49 = vcvt.f32.s32 %v1350_v60  ;;  %vm2079_vm5 = vcmp.eq.s32.totalorder %v6833_v23, %v1326_v37 }
 0x2fd   :  { %3878 = vst [vmem:[%s6524_s3 + $0x20] sm:$0xff] %v3792_v44   ;;  %v3533_v36 = vsel %vm2079_vm5, 1.0, %v6834_v33  ;;  %4241 = vmatprep.mubr.msk.f32.mxu1 %vm2079_vm5, %v4526_v46  ;;  %vm2080_vm6 = vcmp.eq.s32.totalorder %v6833_v23, %v1340_v26  ;;  %v1409_v2 = vshll.u32 %v1408_v48, 16  ;;  %v1450_v16 = vcvt.f32.s32 %v5598_v4 }
 0x2fe   :  { %v1368_v29 = vadd.s32 %v1367_v21, %v1365_v51  ;;  %v1354_v25 = vadd.s32 %v1353_v43, %v1351_v49  ;;  %v3309_v13 = vadd.f32 %v3533_v36, %v3308_v42  ;;  %v3534_v30 = vsel %vm2080_vm6, 1.0, %v6834_v33  ;;  %4242 = vmatmul.mubr.msk.f32.gmra.mrb[10].mxu1 %vm2080_vm6, %v4526_v46 }
 0x2ff   :  { %v3795_v61 = vpack.c.bf16 %v3534_v30, %v3533_v36  ;;  %v1392_v15 = vpop.xlane.xlu1 %1391  ;;  %v1378_v62 = vpop.xlane.xlu0 %1377  ;;  %v1436_v43 = vcvt.f32.s32 %v5600_v52  ;;  %v1478_v51 = vcvt.f32.s32 %v5608_v7  ;;  %v1464_v7 = vcvt.f32.s32 %v5610_v58 }
 0x300   :  { %v3310_v10 = vadd.f32 %v3534_v30, %v3309_v13  ;;  %v1393_v17 = vcvt.f32.s32 %v1392_v15  ;;  %v1379_v19 = vcvt.f32.s32 %v1378_v62  ;;  %vm2081_vm7 = vcmp.eq.s32.totalorder %v6833_v23, %v1354_v25 }
 0x301   :  { %3879 = vst [vmem:[%s6524_s3 + $0x28] sm:$0xff] %v3795_v61   ;;  %v3535_v21 = vsel %vm2081_vm7, 1.0, %v6834_v33  ;;  %4244 = vmatprep.mubr.msk.f32.mxu1 %vm2081_vm7, %v4526_v46  ;;  %vm2082_vm8 = vcmp.eq.s32.totalorder %v6833_v23, %v1368_v29  ;;  %v1451_v29 = vshll.u32 %v1450_v16, 16  ;;  %v1437_v25 = vshll.u32 %v1436_v43, 16 }
 0x302   :  { %v1396_v57 = vadd.s32 %v1395_v27, %v1393_v17  ;;  %v1382_v11 = vadd.s32 %v1381_v40, %v1379_v19  ;;  %v3311_v26 = vadd.f32 %v3535_v21, %v3310_v10  ;;  %v3536_v37 = vsel %vm2082_vm8, 1.0, %v6834_v33  ;;  %4245 = vmatmul.mubr.msk.f32.gmra.mrb[12].mxu1 %vm2082_vm8, %v4526_v46 }
 0x303   :  { %v3798_v20 = vpack.c.bf16 %v3536_v37, %v3535_v21  ;;  %v1420_v1 = vpop.xlane.xlu1 %1419  ;;  %v1406_v44 = vpop.xlane.xlu0 %1405  ;;  %v1479_v15 = vshll.u32 %v1478_v51, 16  ;;  %v1506_v21 = vcvt.f32.s32 %v5618_v5 }
 0x304   :  { %v3312_v41 = vadd.f32 %v3536_v37, %v3311_v26  ;;  %v1421_v60 = vcvt.f32.s32 %v1420_v1  ;;  %v1407_v42 = vcvt.f32.s32 %v1406_v44  ;;  %vm2083_vm9 = vcmp.eq.s32.totalorder %v6833_v23, %v1382_v11 }
 0x305   :  { %3880 = vst [vmem:[%s6524_s3 + $0x30] sm:$0xff] %v3798_v20   ;;  %v3537_v49 = vsel %vm2083_vm9, 1.0, %v6834_v33  ;;  %4247 = vmatprep.mubr.msk.f32.mxu1 %vm2083_vm9, %v4526_v46  ;;  %vm2084_vm10 = vcmp.eq.s32.totalorder %v6833_v23, %v1396_v57  ;;  %v1492_v57 = vcvt.f32.s32 %v5620_v0  ;;  %v1534_v20 = vcvt.f32.s32 %v5628_v56 }
 0x306   :  { %v1424_v4 = vadd.s32 %v1423_v8, %v1421_v60  ;;  %v1410_v52 = vadd.s32 %v1409_v2, %v1407_v42  ;;  %v3313_v38 = vadd.f32 %v3537_v49, %v3312_v41  ;;  %v3538_v36 = vsel %vm2084_vm10, 1.0, %v6834_v33  ;;  %4248 = vmatmul.mubr.msk.f32.gmra.mrb[14].mxu1 %vm2084_vm10, %v4526_v46 }
 0x307   :  { %v3801_v13 = vpack.c.bf16 %v3538_v36, %v3537_v49  ;;  %v1448_v30 = vpop.xlane.xlu1 %1447  ;;  %v1434_v27 = vpop.xlane.xlu0 %1433  ;;  %v1465_v8 = vshll.u32 %v1464_v7, 16  ;;  %v1507_v60 = vshll.u32 %v1506_v21, 16  ;;  %v1493_v42 = vshll.u32 %v1492_v57, 16 }
 0x308   :  { %v3314_v40 = vadd.f32 %v3538_v36, %v3313_v38  ;;  %v1449_v48 = vcvt.f32.s32 %v1448_v30  ;;  %v1435_v61 = vcvt.f32.s32 %v1434_v27  ;;  %vm2085_vm11 = vcmp.eq.s32.totalorder %v6833_v23, %v1410_v52 }
 0x309   :  { %3881 = vst [vmem:[%s6524_s3 + $0x38] sm:$0xff] %v3801_v13   ;;  %v3539_v62 = vsel %vm2085_vm11, 1.0, %v6834_v33  ;;  %4250 = vmatprep.mubr.msk.f32.mxu1 %vm2085_vm11, %v4526_v46  ;;  %vm2086_vm12 = vcmp.eq.s32.totalorder %v6833_v23, %v1424_v4  ;;  %v1520_v56 = vcvt.f32.s32 %v5630_v6 }
 0x30a   :  { %v1452_v58 = vadd.s32 %v1451_v29, %v1449_v48  ;;  %v1438_v10 = vadd.s32 %v1437_v25, %v1435_v61  ;;  %v3315_v17 = vadd.f32 %v3539_v62, %v3314_v40  ;;  %v3540_v19 = vsel %vm2086_vm12, 1.0, %v6834_v33  ;;  %4251 = vmatmul.mubr.msk.f32.gmra.mrb[16].mxu1 %vm2086_vm12, %v4526_v46 }
 0x30b   :  { %v3804_v11 = vpack.c.bf16 %v3540_v19, %v3539_v62  ;;  %v1476_v26 = vpop.xlane.xlu1 %1475  ;;  %v1462_v37 = vpop.xlane.xlu0 %1461  ;;  %v1535_v29 = vshll.u32 %v1534_v20, 16  ;;  %v1521_v27 = vshll.u32 %v1520_v56, 16  ;;  %v1562_v40 = vcvt.f32.s32 %v5638_v34 }
 0x30c   :  { %v3316_v2 = vadd.f32 %v3540_v19, %v3315_v17  ;;  %v1477_v16 = vcvt.f32.s32 %v1476_v26  ;;  %v1463_v43 = vcvt.f32.s32 %v1462_v37  ;;  %vm2087_vm13 = vcmp.eq.s32.totalorder %v6833_v23, %v1438_v10 }
 0x30d   :  { %3882 = vst [vmem:[%s6524_s3 + $0x40] sm:$0xff] %v3804_v11   ;;  %v3541_v1 = vsel %vm2087_vm13, 1.0, %v6834_v33  ;;  %4253 = vmatprep.mubr.msk.f32.mxu1 %vm2087_vm13, %v4526_v46  ;;  %vm2088_vm14 = vcmp.eq.s32.totalorder %v6833_v23, %v1452_v58  ;;  %v1548_v48 = vcvt.f32.s32 %v5640_v12  ;;  %v1590_v19 = vcvt.f32.s32 %v5648_v55  ;;  %v6835_v55 = vld [vmem:[#allocation20_spill] sm:$0xff] }
 0x30e   :  { %v1480_v5 = vadd.s32 %v1479_v15, %v1477_v16  ;;  %v1466_v0 = vadd.s32 %v1465_v8, %v1463_v43  ;;  %v3317_v44 = vadd.f32 %v3541_v1, %v3316_v2  ;;  %v3542_v41 = vsel %vm2088_vm14, 1.0, %v6834_v33  ;;  %4254 = vmatmul.mubr.msk.f32.gmra.mrb[18].mxu1 %vm2088_vm14, %v4526_v46 }
 0x30f   :  { %v3807_v51 = vpack.c.bf16 %v3542_v41, %v3541_v1  ;;  %v1504_v49 = vpop.xlane.xlu1 %1503  ;;  %v1490_v4 = vpop.xlane.xlu0 %1489  ;;  %v1563_v11 = vshll.u32 %v1562_v40, 16  ;;  %v1549_v26 = vshll.u32 %v1548_v48, 16  ;;  %v1576_v37 = vcvt.f32.s32 %v6835_v55 }
 0x310   :  { %v3318_v52 = vadd.f32 %v3542_v41, %v3317_v44  ;;  %v1505_v38 = vcvt.f32.s32 %v1504_v49  ;;  %v1491_v36 = vcvt.f32.s32 %v1490_v4  ;;  %vm2089_vm15 = vcmp.eq.s32.totalorder %v6833_v23, %v1466_v0 }
 0x311   :  { %3883 = vst [vmem:[%s6524_s3 + $0x48] sm:$0xff] %v3807_v51   ;;  %v3543_v25 = vsel %vm2089_vm15, 1.0, %v6834_v33  ;;  %4256 = vmatprep.mubr.msk.f32.mxu1 %vm2089_vm15, %v4526_v46  ;;  %vm2090_vm1 = vcmp.eq.s32.totalorder %v6833_v23, %v1480_v5  ;;  %v1591_v0 = vshll.u32 %v1590_v19, 16  ;;  %v1577_v51 = vshll.u32 %v1576_v37, 16 }
 0x312   :  { %v1508_v6 = vadd.s32 %v1507_v60, %v1505_v38  ;;  %v1494_v7 = vadd.s32 %v1493_v42, %v1491_v36  ;;  %v3319_v13 = vadd.f32 %v3543_v25, %v3318_v52  ;;  %v3544_v30 = vsel %vm2090_vm1, 1.0, %v6834_v33  ;;  %4257 = vmatmul.mubr.msk.f32.gmra.mrb[20].mxu1 %vm2090_vm1, %v4526_v46 }
 0x313   :  { %v3810_v61 = vpack.c.bf16 %v3544_v30, %v3543_v25  ;;  %v1532_v15 = vpop.xlane.xlu1 %1531  ;;  %v1518_v62 = vpop.xlane.xlu0 %1517  ;;  %v1618_v49 = vcvt.f32.s32 %v5658_v22  ;;  %v1604_v4 = vcvt.f32.s32 %v5660_v24 }
 0x314   :  { %v3320_v58 = vadd.f32 %v3544_v30, %v3319_v13  ;;  %v1533_v10 = vcvt.f32.s32 %v1532_v15  ;;  %v1519_v17 = vcvt.f32.s32 %v1518_v62  ;;  %vm2091_vm2 = vcmp.eq.s32.totalorder %v6833_v23, %v1494_v7 }
 0x315   :  { %3884 = vst [vmem:[%s6524_s3 + $0x50] sm:$0xff] %v3810_v61   ;;  %v3545_v8 = vsel %vm2091_vm2, 1.0, %v6834_v33  ;;  %4259 = vmatprep.mubr.msk.f32.mxu1 %vm2091_vm2, %v4526_v46  ;;  %vm2092_vm3 = vcmp.eq.s32.totalorder %v6833_v23, %v1508_v6  ;;  %v1646_v7 = vcvt.f32.s32 %v5668_v3  ;;  %v1619_v40 = vshll.u32 %v1618_v49, 16 }
 0x316   :  { %v1536_v34 = vadd.s32 %v1535_v29, %v1533_v10  ;;  %v1522_v12 = vadd.s32 %v1521_v27, %v1519_v17  ;;  %v3321_v21 = vadd.f32 %v3545_v8, %v3320_v58  ;;  %v3546_v57 = vsel %vm2092_vm3, 1.0, %v6834_v33  ;;  %4260 = vmatmul.mubr.msk.f32.gmra.mrb[22].mxu1 %vm2092_vm3, %v4526_v46 }
 0x317   :  { %v3813_v2 = vpack.c.bf16 %v3546_v57, %v3545_v8  ;;  %v1560_v16 = vpop.xlane.xlu1 %1559  ;;  %v1546_v43 = vpop.xlane.xlu0 %1545  ;;  %v1605_v48 = vshll.u32 %v1604_v4, 16  ;;  %v1632_v3 = vcvt.f32.s32 %v5670_v32  ;;  %v1647_v19 = vshll.u32 %v1646_v7, 16 }
 0x318   :  { %v3322_v20 = vadd.f32 %v3546_v57, %v3321_v21  ;;  %v1561_v1 = vcvt.f32.s32 %v1560_v16  ;;  %v1547_v5 = vcvt.f32.s32 %v1546_v43  ;;  %vm2093_vm4 = vcmp.eq.s32.totalorder %v6833_v23, %v1522_v12 }
 0x319   :  { %3885 = vst [vmem:[%s6524_s3 + $0x58] sm:$0xff] %v3813_v2   ;;  %v3547_v44 = vsel %vm2093_vm4, 1.0, %v6834_v33  ;;  %4262 = vmatprep.mubr.msk.f32.mxu1 %vm2093_vm4, %v4526_v46  ;;  %vm2094_vm5 = vcmp.eq.s32.totalorder %v6833_v23, %v1536_v34  ;;  %v1633_v57 = vshll.u32 %v1632_v3, 16 }
 0x31a   :  { %v1564_v41 = vadd.s32 %v1563_v11, %v1561_v1  ;;  %v1550_v60 = vadd.s32 %v1549_v26, %v1547_v5  ;;  %v3323_v42 = vadd.f32 %v3547_v44, %v3322_v20  ;;  %v3548_v56 = vsel %vm2094_vm5, 1.0, %v6834_v33  ;;  %4263 = vmatmul.mubr.msk.f32.gmra.mrb[24].mxu1 %vm2094_vm5, %v4526_v46 }
 0x31b   :  { %v3816_v52 = vpack.c.bf16 %v3548_v56, %v3547_v44  ;;  %v1588_v38 = vpop.xlane.xlu1 %1587  ;;  %v1574_v36 = vpop.xlane.xlu0 %1573  ;;  %v1674_v11 = vcvt.f32.s32 %v5678_v45  ;;  %v1660_v26 = vcvt.f32.s32 %v5680_v9  ;;  %v1702_v1 = vcvt.f32.s32 %v5688_v59 }
 0x31c   :  { %v3324_v29 = vadd.f32 %v3548_v56, %v3323_v42  ;;  %v1589_v25 = vcvt.f32.s32 %v1588_v38  ;;  %v1575_v6 = vcvt.f32.s32 %v1574_v36  ;;  %vm2095_vm6 = vcmp.eq.s32.totalorder %v6833_v23, %v1550_v60 }
 0x31d   :  { %3886 = vst [vmem:[%s6524_s3 + $0x60] sm:$0xff] %v3816_v52   ;;  %v3549_v13 = vsel %vm2095_vm6, 1.0, %v6834_v33  ;;  %4265 = vmatprep.mubr.msk.f32.mxu1 %vm2095_vm6, %v4526_v46  ;;  %vm2096_vm7 = vcmp.eq.s32.totalorder %v6833_v23, %v1564_v41  ;;  %v1675_v41 = vshll.u32 %v1674_v11, 16  ;;  %v1661_v60 = vshll.u32 %v1660_v26, 16 }
 0x31e   :  { %v1592_v22 = vadd.s32 %v1591_v0, %v1589_v25  ;;  %v1578_v24 = vadd.s32 %v1577_v51, %v1575_v6  ;;  %v3325_v30 = vadd.f32 %v3549_v13, %v3324_v29  ;;  %v3550_v27 = vsel %vm2096_vm7, 1.0, %v6834_v33  ;;  %4266 = vmatmul.mubr.msk.f32.gmra.mrb[26].mxu1 %vm2096_vm7, %v4526_v46 }
 0x31f   :  { %v3819_v61 = vpack.c.bf16 %v3550_v27, %v3549_v13  ;;  %v1616_v15 = vpop.xlane.xlu1 %1615  ;;  %v1602_v62 = vpop.xlane.xlu0 %1601  ;;  %v1688_v59 = vcvt.f32.s32 %v5690_v54  ;;  %v1703_v38 = vshll.u32 %v1702_v1, 16  ;;  %v1730_v13 = vcvt.f32.s32 %v5698_v14 }
 0x320   :  { %v3326_v58 = vadd.f32 %v3550_v27, %v3325_v30  ;;  %v1617_v10 = vcvt.f32.s32 %v1616_v15  ;;  %v1603_v17 = vcvt.f32.s32 %v1602_v62  ;;  %vm2097_vm8 = vcmp.eq.s32.totalorder %v6833_v23, %v1578_v24 }
 0x321   :  { %3887 = vst [vmem:[%s6524_s3 + $0x68] sm:$0xff] %v3819_v61   ;;  %v3551_v8 = vsel %vm2097_vm8, 1.0, %v6834_v33  ;;  %4268 = vmatprep.mubr.msk.f32.mxu1 %vm2097_vm8, %v4526_v46  ;;  %vm2098_vm9 = vcmp.eq.s32.totalorder %v6833_v23, %v1592_v22  ;;  %v1689_v7 = vshll.u32 %v1688_v59, 16  ;;  %v1716_v22 = vcvt.f32.s32 %v5700_v18 }
 0x322   :  { %v1620_v32 = vadd.s32 %v1619_v40, %v1617_v10  ;;  %v1606_v34 = vadd.s32 %v1605_v48, %v1603_v17  ;;  %v3327_v12 = vadd.f32 %v3551_v8, %v3326_v58  ;;  %v3552_v21 = vsel %vm2098_vm9, 1.0, %v6834_v33  ;;  %4269 = vmatmul.mubr.msk.f32.gmra.mrb[28].mxu1 %vm2098_vm9, %v4526_v46 }
 0x323   :  { %v3822_v55 = vpack.c.bf16 %v3552_v21, %v3551_v8  ;;  %v1644_v37 = vpop.xlane.xlu1 %1643  ;;  %v1630_v2 = vpop.xlane.xlu0 %1629  ;;  %v1758_v61 = vcvt.f32.s32 %v5708_v35  ;;  %v1731_v10 = vshll.u32 %v1730_v13, 16  ;;  %v1717_v17 = vshll.u32 %v1716_v22, 16  ;;  %v6836_v35 = vld [vmem:[#allocation19_spill] sm:$0xff] }
 0x324   :  { %v3328_v16 = vadd.f32 %v3552_v21, %v3327_v12  ;;  %v1645_v43 = vcvt.f32.s32 %v1644_v37  ;;  %v1631_v20 = vcvt.f32.s32 %v1630_v2  ;;  %vm2099_vm10 = vcmp.eq.s32.totalorder %v6833_v23, %v1606_v34 }
 0x325   :  { %3888 = vst [vmem:[%s6524_s3 + $0x70] sm:$0xff] %v3822_v55   ;;  %v3553_v5 = vsel %vm2099_vm10, 1.0, %v6834_v33  ;;  %4271 = vmatprep.mubr.msk.f32.mxu1 %vm2099_vm10, %v4526_v46  ;;  %vm2100_vm11 = vcmp.eq.s32.totalorder %v6833_v23, %v1620_v32  ;;  %v1759_v11 = vshll.u32 %v1758_v61, 16 }
 0x326   :  { %v1648_v45 = vadd.s32 %v1647_v19, %v1645_v43  ;;  %v1634_v9 = vadd.s32 %v1633_v57, %v1631_v20  ;;  %v3329_v0 = vadd.f32 %v3553_v5, %v3328_v16  ;;  %v3554_v44 = vsel %vm2100_vm11, 1.0, %v6834_v33  ;;  %4272 = vmatmul.mubr.msk.f32.gmra.mrb[30].mxu1 %vm2100_vm11, %v4526_v46  ;;  %v6837_v20 = vld [vmem:[#allocation21_spill] sm:$0xff] }
 0x327   :  { %v3825_v42 = vpack.c.bf16 %v3554_v44, %v3553_v5  ;;  %v1672_v56 = vpop.xlane.xlu1 %1671  ;;  %v1658_v51 = vpop.xlane.xlu0 %1657  ;;  %v1744_v19 = vcvt.f32.s32 %v6836_v35  ;;  %v1786_v1 = vcvt.f32.s32 %v6837_v20  ;;  %v6838_v5 = vld [vmem:[#allocation22_spill] sm:$0xff] }
 0x328   :  { %v3330_v49 = vadd.f32 %v3554_v44, %v3329_v0  ;;  %v1673_v4 = vcvt.f32.s32 %v1672_v56  ;;  %v1659_v52 = vcvt.f32.s32 %v1658_v51  ;;  %vm2101_vm12 = vcmp.eq.s32.totalorder %v6833_v23, %v1634_v9 }
 0x329   :  { %3889 = vst [vmem:[%s6524_s3 + $0x78] sm:$0xff] %v3825_v42   ;;  %v3555_v36 = vsel %vm2101_vm12, 1.0, %v6834_v33  ;;  %4274 = vmatprep.mubr.msk.f32.mxu1 %vm2101_vm12, %v4526_v46  ;;  %vm2102_vm13 = vcmp.eq.s32.totalorder %v6833_v23, %v1648_v45  ;;  %v1745_v43 = vshll.u32 %v1744_v19, 16  ;;  %v1772_v45 = vcvt.f32.s32 %v6838_v5  ;;  %v6839_v42 = vld [vmem:[#allocation23_spill] sm:$0xff] }
 0x32a   :  { %v1676_v54 = vadd.s32 %v1675_v41, %v1673_v4  ;;  %v1662_v29 = vadd.s32 %v1661_v60, %v1659_v52  ;;  %v3331_v25 = vadd.f32 %v3555_v36, %v3330_v49  ;;  %v3556_v6 = vsel %vm2102_vm13, 1.0, %v6834_v33  ;;  %4275 = vmatmul.mubr.msk.f32.gmra.mrb[32].mxu1 %vm2102_vm13, %v4526_v46 }
 0x32b   :  { %v3828_v24 = vpack.c.bf16 %v3556_v6, %v3555_v36  ;;  %v1700_v30 = vpop.xlane.xlu1 %1699  ;;  %v1686_v27 = vpop.xlane.xlu0 %1685  ;;  %v1814_v56 = vcvt.f32.s32 %v6839_v42  ;;  %v1787_v36 = vshll.u32 %v1786_v1, 16  ;;  %v1898_v42 = vcvt.f32.s32 %v5758_v53 }
 0x32c   :  { %v3332_v40 = vadd.f32 %v3556_v6, %v3331_v25  ;;  %v1701_v48 = vcvt.f32.s32 %v1700_v30  ;;  %v1687_v3 = vcvt.f32.s32 %v1686_v27  ;;  %vm2103_vm14 = vcmp.eq.s32.totalorder %v6833_v23, %v1662_v29  ;;  %v6840_v29 = vld [vmem:[#allocation24_spill] sm:$0xff] }
 0x32d   :  { %3890 = vst [vmem:[%s6524_s3 + $0x80] sm:$0xff] %v3828_v24   ;;  %v3557_v15 = vsel %vm2103_vm14, 1.0, %v6834_v33  ;;  %4277 = vmatprep.mubr.msk.f32.mxu1 %vm2103_vm14, %v4526_v46  ;;  %vm2104_vm15 = vcmp.eq.s32.totalorder %v6833_v23, %v1676_v54  ;;  %v1773_v54 = vshll.u32 %v1772_v45, 16  ;;  %v1800_v25 = vcvt.f32.s32 %v6840_v29 }
 0x32e   :  { %v1704_v14 = vadd.s32 %v1703_v38, %v1701_v48  ;;  %v1690_v18 = vadd.s32 %v1689_v7, %v1687_v3  ;;  %v3333_v62 = vadd.f32 %v3557_v15, %v3332_v40  ;;  %v3558_v58 = vsel %vm2104_vm15, 1.0, %v6834_v33  ;;  %4278 = vmatmul.mubr.msk.f32.gmra.mrb[34].mxu1 %vm2104_vm15, %v4526_v46 }
 0x32f   :  { %v3831_v8 = vpack.c.bf16 %v3558_v58, %v3557_v15  ;;  %v1728_v32 = vpop.xlane.xlu1 %1727  ;;  %v1714_v34 = vpop.xlane.xlu0 %1713  ;;  %v1815_v27 = vshll.u32 %v1814_v56, 16  ;;  %v6843_v56 = vld [vmem:[#allocation27_spill] sm:$0xff]  ;;  %v1926_v29 = vcvt.f32.s32 %v5768_v63  ;;  %v6844_v63 = vld [vmem:[#allocation28_spill] sm:$0xff] }
 0x330   :  { %v3334_v12 = vadd.f32 %v3558_v58, %v3333_v62  ;;  %v1729_v21 = vcvt.f32.s32 %v1728_v32  ;;  %v1715_v57 = vcvt.f32.s32 %v1714_v34  ;;  %vm2105_vm1 = vcmp.eq.s32.totalorder %v6833_v23, %v1690_v18  ;;  %v6841_v18 = vld [vmem:[#allocation25_spill] sm:$0xff]  ;;  %v6842_v58 = vld [vmem:[#allocation26_spill] sm:$0xff] }
 0x331   :  { %3891 = vst [vmem:[%s6524_s3 + $0x88] sm:$0xff] %v3831_v8   ;;  %v3559_v26 = vsel %vm2105_vm1, 1.0, %v6834_v33  ;;  %4280 = vmatprep.mubr.msk.f32.mxu1 %vm2105_vm1, %v4526_v46  ;;  %vm2106_vm2 = vcmp.eq.s32.totalorder %v6833_v23, %v1704_v14  ;;  %v1801_v14 = vshll.u32 %v1800_v25, 16  ;;  %v1842_v62 = vcvt.f32.s32 %v6841_v18 }
 0x332   :  { %v1732_v55 = vadd.s32 %v1731_v10, %v1729_v21  ;;  %v1718_v37 = vadd.s32 %v1717_v17, %v1715_v57  ;;  %v3335_v2 = vadd.f32 %v3559_v26, %v3334_v12  ;;  %v3560_v16 = vsel %vm2106_vm2, 1.0, %v6834_v33  ;;  %4281 = vmatmul.mubr.msk.f32.gmra.mrb[36].mxu1 %vm2106_vm2, %v4526_v46 }
 0x333   :  { %v3834_v9 = vpack.c.bf16 %v3560_v16, %v3559_v26  ;;  %v1756_v0 = vpop.xlane.xlu1 %1755  ;;  %v1742_v44 = vpop.xlane.xlu0 %1741  ;;  %v1828_v10 = vcvt.f32.s32 %v6842_v58  ;;  %v1870_v12 = vcvt.f32.s32 %v5748_v39  ;;  %v1856_v39 = vcvt.f32.s32 %v5750_v50 }
 0x334   :  { %v3336_v41 = vadd.f32 %v3560_v16, %v3335_v2  ;;  %v1757_v60 = vcvt.f32.s32 %v1756_v0  ;;  %v1743_v59 = vcvt.f32.s32 %v1742_v44  ;;  %vm2107_vm3 = vcmp.eq.s32.totalorder %v6833_v23, %v1718_v37 }
 0x335   :  { %3892 = vst [vmem:[%s6524_s3 + $0x90] sm:$0xff] %v3834_v9   ;;  %v3561_v51 = vsel %vm2107_vm3, 1.0, %v6834_v33  ;;  %4283 = vmatprep.mubr.msk.f32.mxu1 %vm2107_vm3, %v4526_v46  ;;  %vm2108_vm4 = vcmp.eq.s32.totalorder %v6833_v23, %v1732_v55  ;;  %v1843_v37 = vshll.u32 %v1842_v62, 16  ;;  %v1829_v2 = vshll.u32 %v1828_v10, 16 }
 0x336   :  { %v1760_v49 = vadd.s32 %v1759_v11, %v1757_v60  ;;  %v1746_v4 = vadd.s32 %v1745_v43, %v1743_v59  ;;  %v3337_v52 = vadd.f32 %v3561_v51, %v3336_v41  ;;  %v3562_v38 = vsel %vm2108_vm4, 1.0, %v6834_v33  ;;  %4284 = vmatmul.mubr.msk.f32.gmra.mrb[38].mxu1 %vm2108_vm4, %v4526_v46 }
 0x337   :  { %v3837_v6 = vpack.c.bf16 %v3562_v38, %v3561_v51  ;;  %v1784_v7 = vpop.xlane.xlu1 %1783  ;;  %v1770_v13 = vpop.xlane.xlu0 %1769  ;;  %v1871_v9 = vshll.u32 %v1870_v12, 16  ;;  %v1857_v59 = vshll.u32 %v1856_v39, 16  ;;  %v1884_v51 = vcvt.f32.s32 %v6843_v56 }
 0x338   :  { %v3338_v22 = vadd.f32 %v3562_v38, %v3337_v52  ;;  %v1785_v24 = vcvt.f32.s32 %v1784_v7  ;;  %v1771_v30 = vcvt.f32.s32 %v1770_v13  ;;  %vm2109_vm5 = vcmp.eq.s32.totalorder %v6833_v23, %v1746_v4 }
 0x339   :  { %3893 = vst [vmem:[%s6524_s3 + $0x98] sm:$0xff] %v3837_v6   ;;  %v3563_v40 = vsel %vm2109_vm5, 1.0, %v6834_v33  ;;  %4286 = vmatprep.mubr.msk.f32.mxu1 %vm2109_vm5, %v4526_v46  ;;  %vm2110_vm6 = vcmp.eq.s32.totalorder %v6833_v23, %v1760_v49 }
 0x33a   :  { %v1788_v48 = vadd.s32 %v1787_v36, %v1785_v24  ;;  %v1774_v3 = vadd.s32 %v1773_v54, %v1771_v30  ;;  %v3339_v61 = vadd.f32 %v3563_v40, %v3338_v22  ;;  %v3564_v15 = vsel %vm2110_vm6, 1.0, %v6834_v33  ;;  %4287 = vmatmul.mubr.msk.f32.gmra.mrb[40].mxu1 %vm2110_vm6, %v4526_v46 }
 0x33b   :  { %v3840_v17 = vpack.c.bf16 %v3564_v15, %v3563_v40  ;;  %v1812_v35 = vpop.xlane.xlu1 %1811  ;;  %v1798_v19 = vpop.xlane.xlu0 %1797  ;;  %v1899_v22 = vshll.u32 %v1898_v42, 16  ;;  %v1885_v24 = vshll.u32 %v1884_v51, 16  ;;  %v1912_v30 = vcvt.f32.s32 %v6844_v63 }
 0x33c   :  { %v3340_v8 = vadd.f32 %v3564_v15, %v3339_v61  ;;  %v1813_v32 = vcvt.f32.s32 %v1812_v35  ;;  %v1799_v34 = vcvt.f32.s32 %v1798_v19  ;;  %vm2111_vm7 = vcmp.eq.s32.totalorder %v6833_v23, %v1774_v3 }
 0x33d   :  { %3894 = vst [vmem:[%s6524_s3 + $0xa0] sm:$0xff] %v3840_v17   ;;  %v3565_v21 = vsel %vm2111_vm7, 1.0, %v6834_v33  ;;  %4289 = vmatprep.mubr.msk.f32.mxu1 %vm2111_vm7, %v4526_v46  ;;  %vm2112_vm8 = vcmp.eq.s32.totalorder %v6833_v23, %v1788_v48  ;;  %v1913_v35 = vshll.u32 %v1912_v30, 16  ;;  %v1954_v19 = vcvt.f32.s32 %v5778_v31 }
 0x33e   :  { %v1816_v57 = vadd.s32 %v1815_v27, %v1813_v32  ;;  %v1802_v11 = vadd.s32 %v1801_v14, %v1799_v34  ;;  %v3341_v26 = vadd.f32 %v3565_v21, %v3340_v8  ;;  %v3566_v55 = vsel %vm2112_vm8, 1.0, %v6834_v33  ;;  %4290 = vmatmul.mubr.msk.f32.gmra.mrb[42].mxu1 %vm2112_vm8, %v4526_v46 }
 0x33f   :  { %v3843_v16 = vpack.c.bf16 %v3566_v55, %v3565_v21  ;;  %v1840_v43 = vpop.xlane.xlu1 %1839  ;;  %v1826_v20 = vpop.xlane.xlu0 %1825  ;;  %v1927_v14 = vshll.u32 %v1926_v29, 16  ;;  %v1940_v8 = vcvt.f32.s32 %v5780_v28 }
 0x340   :  { %v3342_v1 = vadd.f32 %v3566_v55, %v3341_v26  ;;  %v1841_v5 = vcvt.f32.s32 %v1840_v43  ;;  %v1827_v45 = vcvt.f32.s32 %v1826_v20  ;;  %vm2113_vm9 = vcmp.eq.s32.totalorder %v6833_v23, %v1802_v11  ;;  %v6845_v26 = vld [vmem:[#allocation29_spill] sm:$0xff]  ;;  %v6846_v20 = vld [vmem:[#allocation30_spill] sm:$0xff] }
 0x341   :  { %3895 = vst [vmem:[%s6524_s3 + $0xa8] sm:$0xff] %v3843_v16   ;;  %v3567_v0 = vsel %vm2113_vm9, 1.0, %v6834_v33  ;;  %4292 = vmatprep.mubr.msk.f32.mxu1 %vm2113_vm9, %v4526_v46  ;;  %vm2114_vm10 = vcmp.eq.s32.totalorder %v6833_v23, %v1816_v57  ;;  %v1982_v55 = vcvt.f32.s32 %v6845_v26  ;;  %v1955_v16 = vshll.u32 %v1954_v19, 16 }
 0x342   :  { %v1844_v50 = vadd.s32 %v1843_v37, %v1841_v5  ;;  %v1830_v44 = vadd.s32 %v1829_v2, %v1827_v45  ;;  %v3343_v41 = vadd.f32 %v3567_v0, %v3342_v1  ;;  %v3568_v60 = vsel %vm2114_vm10, 1.0, %v6834_v33  ;;  %4293 = vmatmul.mubr.msk.f32.gmra.mrb[44].mxu1 %vm2114_vm10, %v4526_v46 }
 0x343   :  { %v3846_v49 = vpack.c.bf16 %v3568_v60, %v3567_v0  ;;  %v1868_v4 = vpop.xlane.xlu1 %1867  ;;  %v1854_v52 = vpop.xlane.xlu0 %1853  ;;  %v1941_v43 = vshll.u32 %v1940_v8, 16  ;;  %v1968_v1 = vcvt.f32.s32 %v6846_v20 }
 0x344   :  { %v3344_v38 = vadd.f32 %v3568_v60, %v3343_v41  ;;  %v1869_v36 = vcvt.f32.s32 %v1868_v4  ;;  %v1855_v54 = vcvt.f32.s32 %v1854_v52  ;;  %vm2115_vm11 = vcmp.eq.s32.totalorder %v6833_v23, %v1830_v44  ;;  %v6847_v52 = vld [vmem:[#allocation31_spill] sm:$0xff] }
 0x345   :  { %3896 = vst [vmem:[%s6524_s3 + $0xb0] sm:$0xff] %v3846_v49   ;;  %v3569_v25 = vsel %vm2115_vm11, 1.0, %v6834_v33  ;;  %4295 = vmatprep.mubr.msk.f32.mxu1 %vm2115_vm11, %v4526_v46  ;;  %vm2116_vm12 = vcmp.eq.s32.totalorder %v6833_v23, %v1844_v50  ;;  %v1983_v41 = vshll.u32 %v1982_v55, 16  ;;  %v1969_v49 = vshll.u32 %v1968_v1, 16 }
 0x346   :  { %v1872_v53 = vadd.s32 %v1871_v9, %v1869_v36  ;;  %v1858_v6 = vadd.s32 %v1857_v59, %v1855_v54  ;;  %v3345_v7 = vadd.f32 %v3569_v25, %v3344_v38  ;;  %v3570_v13 = vsel %vm2116_vm12, 1.0, %v6834_v33  ;;  %4296 = vmatmul.mubr.msk.f32.gmra.mrb[46].mxu1 %vm2116_vm12, %v4526_v46 }
 0x347   :  { %v3849_v27 = vpack.c.bf16 %v3570_v13, %v3569_v25  ;;  %v1896_v40 = vpop.xlane.xlu1 %1895  ;;  %v1882_v48 = vpop.xlane.xlu0 %1881  ;;  %v2010_v4 = vcvt.f32.s32 %v5798_v47  ;;  %v1996_v38 = vcvt.f32.s32 %v6847_v52 }
 0x348   :  { %v3346_v3 = vadd.f32 %v3570_v13, %v3345_v7  ;;  %v1897_v61 = vcvt.f32.s32 %v1896_v40  ;;  %v1883_v15 = vcvt.f32.s32 %v1882_v48  ;;  %vm2117_vm13 = vcmp.eq.s32.totalorder %v6833_v23, %v1858_v6  ;;  %v6848_v7 = vld [vmem:[#allocation32_spill] sm:$0xff]  ;;  %v6849_v48 = vld [vmem:[#allocation33_spill] sm:$0xff] }
 0x349   :  { %3897 = vst [vmem:[%s6524_s3 + $0xb8] sm:$0xff] %v3849_v27   ;;  %v3571_v18 = vsel %vm2117_vm13, 1.0, %v6834_v33  ;;  %4298 = vmatprep.mubr.msk.f32.mxu1 %vm2117_vm13, %v4526_v46  ;;  %vm2118_vm14 = vcmp.eq.s32.totalorder %v6833_v23, %v1872_v53  ;;  %v2038_v13 = vcvt.f32.s32 %v6848_v7  ;;  %v2011_v27 = vshll.u32 %v2010_v4, 16 }
 0x34a   :  { %v1900_v62 = vadd.s32 %v1899_v22, %v1897_v61  ;;  %v1886_v58 = vadd.s32 %v1885_v24, %v1883_v15  ;;  %v3347_v10 = vadd.f32 %v3571_v18, %v3346_v3  ;;  %v3572_v17 = vsel %vm2118_vm14, 1.0, %v6834_v33  ;;  %4299 = vmatmul.mubr.msk.f32.gmra.mrb[48].mxu1 %vm2118_vm14, %v4526_v46 }
 0x34b   :  { %v3852_v32 = vpack.c.bf16 %v3572_v17, %v3571_v18  ;;  %v1924_v34 = vpop.xlane.xlu1 %1923  ;;  %v1910_v12 = vpop.xlane.xlu0 %1909  ;;  %v1997_v40 = vshll.u32 %v1996_v38, 16  ;;  %v2024_v3 = vcvt.f32.s32 %v6849_v48  ;;  %vm71_vm14 = vcmask 0  }
 0x34c   :  { %v3348_v21 = vadd.f32 %v3572_v17, %v3347_v10  ;;  %v1925_v57 = vcvt.f32.s32 %v1924_v34  ;;  %v1911_v11 = vcvt.f32.s32 %v1910_v12  ;;  %vm2119_vm15 = vcmp.eq.s32.totalorder %v6833_v23, %v1886_v58  ;;  %v6850_v12 = vld [vmem:[#allocation34_spill] sm:$0xff]  ;;  %72 = vst.msk [vmem:[#allocation5] sm:$0x1] %vm71_vm14, %v6834_v33 }
 0x34d   :  { %3898 = vst [vmem:[%s6524_s3 + $0xc0] sm:$0xff] %v3852_v32   ;;  %v3573_v37 = vsel %vm2119_vm15, 1.0, %v6834_v33  ;;  %4301 = vmatprep.mubr.msk.f32.mxu1 %vm2119_vm15, %v4526_v46  ;;  %vm2120_vm1 = vcmp.eq.s32.totalorder %v6833_v23, %v1900_v62  ;;  %v2039_v10 = vshll.u32 %v2038_v13, 16  ;;  %v2025_v34 = vshll.u32 %v2024_v3, 16 }
 0x34e   :  { %v1928_v31 = vadd.s32 %v1927_v14, %v1925_v57  ;;  %v1914_v28 = vadd.s32 %v1913_v35, %v1911_v11  ;;  %v3349_v2 = vadd.f32 %v3573_v37, %v3348_v21  ;;  %v3574_v39 = vsel %vm2120_vm1, 1.0, %v6834_v33  ;;  %4302 = vmatmul.mubr.msk.f32.gmra.mrb[50].mxu1 %vm2120_vm1, %v4526_v46  ;;  %v6851_v57 = vld [vmem:[#allocation35_spill] sm:$0xff] }
 0x34f   :  { %v3855_v5 = vpack.c.bf16 %v3574_v39, %v3573_v37  ;;  %v1952_v45 = vpop.xlane.xlu1 %1951  ;;  %v1938_v9 = vpop.xlane.xlu0 %1937  ;;  %v2066_v21 = vcvt.f32.s32 %v6850_v12  ;;  %v2052_v11 = vcvt.f32.s32 %v6851_v57  ;;  %v4414_v12 = vld [vmem:[#allocation2 + $0x28] sm:$0xff] }
 0x350   :  { %v3350_v0 = vadd.f32 %v3574_v39, %v3349_v2  ;;  %v1953_v50 = vcvt.f32.s32 %v1952_v45  ;;  %v1939_v44 = vcvt.f32.s32 %v1938_v9  ;;  %vm2121_vm2 = vcmp.eq.s32.totalorder %v6833_v23, %v1914_v28 }
 0x351   :  { %3899 = vst [vmem:[%s6524_s3 + $0xc8] sm:$0xff] %v3855_v5   ;;  %v3575_v60 = vsel %vm2121_vm2, 1.0, %v6834_v33  ;;  %4304 = vmatprep.mubr.msk.f32.mxu1 %vm2121_vm2, %v4526_v46  ;;  %vm2122_vm3 = vcmp.eq.s32.totalorder %v6833_v23, %v1928_v31  ;;  %v2067_v5 = vshll.u32 %v2066_v21, 16  ;;  %v2053_v45 = vshll.u32 %v2052_v11, 16 }
 0x352   :  { %v1956_v59 = vadd.s32 %v1955_v16, %v1953_v50  ;;  %v1942_v42 = vadd.s32 %v1941_v43, %v1939_v44  ;;  %v3351_v56 = vadd.f32 %v3575_v60, %v3350_v0  ;;  %v3576_v51 = vsel %vm2122_vm3, 1.0, %v6834_v33  ;;  %4305 = vmatmul.mubr.msk.f32.gmra.mrb[52].mxu1 %vm2122_vm3, %v4526_v46 }
 0x353   :  { %v3858_v36 = vpack.c.bf16 %v3576_v51, %v3575_v60  ;;  %v1980_v54 = vpop.xlane.xlu1 %1979  ;;  %v1966_v29 = vpop.xlane.xlu0 %1965 }
 0x354   :  { %v3352_v25 = vadd.f32 %v3576_v51, %v3351_v56  ;;  %v1981_v53 = vcvt.f32.s32 %v1980_v54  ;;  %v1967_v6 = vcvt.f32.s32 %v1966_v29  ;;  %vm2123_vm4 = vcmp.eq.s32.totalorder %v6833_v23, %v1942_v42 }
 0x355   :  { %3900 = vst [vmem:[%s6524_s3 + $0xd0] sm:$0xff] %v3858_v36   ;;  %v3577_v22 = vsel %vm2123_vm4, 1.0, %v6834_v33  ;;  %4307 = vmatprep.mubr.msk.f32.mxu1 %vm2123_vm4, %v4526_v46  ;;  %vm2124_vm5 = vcmp.eq.s32.totalorder %v6833_v23, %v1956_v59 }
 0x356   :  { %v1984_v47 = vadd.s32 %v1983_v41, %v1981_v53  ;;  %v1970_v24 = vadd.s32 %v1969_v49, %v1967_v6  ;;  %v3353_v63 = vadd.f32 %v3577_v22, %v3352_v25  ;;  %v3578_v30 = vsel %vm2124_vm5, 1.0, %v6834_v33  ;;  %4308 = vmatmul.mubr.msk.f32.gmra.mrb[54].mxu1 %vm2124_vm5, %v4526_v46 }
 0x357   :  { %v3861_v61 = vpack.c.bf16 %v3578_v30, %v3577_v22  ;;  %v2008_v15 = vpop.xlane.xlu1 %2007  ;;  %v1994_v14 = vpop.xlane.xlu0 %1993  ;;  %v3299_v22 = vld [vmem:[%s6527_s6] sm:$0x1] }
 0x358   :  { %v3354_v18 = vadd.f32 %v3578_v30, %v3353_v63  ;;  %v2009_v62 = vcvt.f32.s32 %v2008_v15  ;;  %v1995_v58 = vcvt.f32.s32 %v1994_v14  ;;  %vm2125_vm6 = vcmp.eq.s32.totalorder %v6833_v23, %v1970_v24  ;;  %v4410_v63 = vld [vmem:[#allocation2 + $0x8] sm:$0xff] }
 0x359   :  { %3901 = vst [vmem:[%s6524_s3 + $0xd8] sm:$0xff] %v3861_v61   ;;  %v3579_v17 = vsel %vm2125_vm6, 1.0, %v6834_v33  ;;  %4310 = vmatprep.mubr.msk.f32.mxu1 %vm2125_vm6, %v4526_v46  ;;  %vm2126_vm7 = vcmp.eq.s32.totalorder %v6833_v23, %v1984_v47 }
 0x35a   :  { %v2012_v35 = vadd.s32 %v2011_v27, %v2009_v62  ;;  %v1998_v19 = vadd.s32 %v1997_v40, %v1995_v58  ;;  %v3355_v8 = vadd.f32 %v3579_v17, %v3354_v18  ;;  %v3580_v32 = vsel %vm2126_vm7, 1.0, %v6834_v33  ;;  %4311 = vmatmul.mubr.msk.f32.gmra.mrb[56].mxu1 %vm2126_vm7, %v4526_v46  ;;  %v4411_v40 = vld [vmem:[#allocation2] sm:$0xff]  ;;  %v4412_v18 = vld [vmem:[#allocation2 + $0x18] sm:$0xff] }
 0x35b   :  { %v3864_v26 = vpack.c.bf16 %v3580_v32, %v3579_v17  ;;  %v2036_v55 = vpop.xlane.xlu1 %2035  ;;  %v2022_v37 = vpop.xlane.xlu0 %2021  ;;  %v4413_v17 = vld [vmem:[#allocation2 + $0x10] sm:$0xff] }
 0x35c   :  { %v3356_v31 = vadd.f32 %v3580_v32, %v3355_v8  ;;  %v2037_v28 = vcvt.f32.s32 %v2036_v55  ;;  %v2023_v2 = vcvt.f32.s32 %v2022_v37  ;;  %vm2127_vm8 = vcmp.eq.s32.totalorder %v6833_v23, %v1998_v19 }
 0x35d   :  { %3902 = vst [vmem:[%s6524_s3 + $0xe0] sm:$0xff] %v3864_v26   ;;  %v3581_v39 = vsel %vm2127_vm8, 1.0, %v6834_v33  ;;  %4313 = vmatprep.mubr.msk.f32.mxu1 %vm2127_vm8, %v4526_v46  ;;  %vm2128_vm9 = vcmp.eq.s32.totalorder %v6833_v23, %v2012_v35  ;;  %v4415_v26 = vld [vmem:[#allocation2 + $0x20] sm:$0xff] }
 0x35e   :  { %v2040_v16 = vadd.s32 %v2039_v10, %v2037_v28  ;;  %v2026_v43 = vadd.s32 %v2025_v34, %v2023_v2  ;;  %v3357_v20 = vadd.f32 %v3581_v39, %v3356_v31  ;;  %v3582_v1 = vsel %vm2128_vm9, 1.0, %v6834_v33  ;;  %4314 = vmatmul.mubr.msk.f32.gmra.mrb[58].mxu1 %vm2128_vm9, %v4526_v46 }
 0x35f   :  { %v3867_v9 = vpack.c.bf16 %v3582_v1, %v3581_v39  ;;  %v2064_v0 = vpop.xlane.xlu1 %2063  ;;  %v2050_v50 = vpop.xlane.xlu0 %2049 }
 0x360   :  { %v3358_v44 = vadd.f32 %v3582_v1, %v3357_v20  ;;  %v2065_v41 = vcvt.f32.s32 %v2064_v0  ;;  %v2051_v60 = vcvt.f32.s32 %v2050_v50  ;;  %vm2129_vm10 = vcmp.eq.s32.totalorder %v6833_v23, %v2026_v43  ;;  %v4416_v43 = vld [vmem:[#allocation2 + $0x38] sm:$0xff] }
 0x361   :  { %3903 = vst [vmem:[%s6524_s3 + $0xe8] sm:$0xff] %v3867_v9   ;;  %v3583_v59 = vsel %vm2129_vm10, 1.0, %v6834_v33  ;;  %4316 = vmatprep.mubr.msk.f32.mxu1 %vm2129_vm10, %v4526_v46  ;;  %vm2130_vm11 = vcmp.eq.s32.totalorder %v6833_v23, %v2040_v16 }
 0x362   :  { %v2068_v42 = vadd.s32 %v2067_v5, %v2065_v41  ;;  %v2054_v56 = vadd.s32 %v2053_v45, %v2051_v60  ;;  %v3359_v51 = vadd.f32 %v3583_v59, %v3358_v44  ;;  %v3584_v49 = vsel %vm2130_vm11, 1.0, %v6834_v33  ;;  %4317 = vmatmul.mubr.msk.f32.gmra.mrb[60].mxu1 %vm2130_vm11, %v4526_v46  ;;  %v4417_v45 = vld [vmem:[#allocation2 + $0x30] sm:$0xff] }
 0x363   :  { %v3870_v4 = vpack.c.bf16 %v3584_v49, %v3583_v59 }
 0x364   :  { %v3360_v52 = vadd.f32 %v3584_v49, %v3359_v51  ;;  %vm2131_vm12 = vcmp.eq.s32.totalorder %v6833_v23, %v2054_v56  ;;  %vm2132_vm13 = vcmp.eq.s32.totalorder %v6833_v23, %v2068_v42  ;;  %v4418_v42 = vld [vmem:[#allocation2 + $0x48] sm:$0xff] }
 0x365   :  { %3904 = vst [vmem:[%s6524_s3 + $0xf0] sm:$0xff] %v3870_v4   ;;  %v3585_v38 = vsel %vm2131_vm12, 1.0, %v6834_v33  ;;  %4319 = vmatprep.mubr.msk.f32.mxu1 %vm2131_vm12, %v4526_v46  ;;  %v3586_v36 = vsel %vm2132_vm13, 1.0, %v6834_v33  ;;  %v4419_v4 = vld [vmem:[#allocation2 + $0x40] sm:$0xff] }
 0x366   :  { %v3361_v54 = vadd.f32 %v3585_v38, %v3360_v52  ;;  %v3873_v29 = vpack.c.bf16 %v3586_v36, %v3585_v38  ;;  %4320 = vmatmul.mubr.msk.f32.gmra.mrb[62].mxu1 %vm2132_vm13, %v4526_v46 }
 0x368   :  { %3905 = vst [vmem:[%s6524_s3 + $0xf8] sm:$0xff] %v3873_v29   ;;  %v3362_v25 = vadd.f32 %v3586_v36, %v3361_v54 }
 0x36a   :  { %v3363_v23 = vrot.slane %v3362_v25, 4 }
 0x36c   :  { %v3364_v53 = vadd.f32 %v3363_v23, %v3362_v25 }
 0x36e   :  { %v3365_v6 = vrot.slane %v3364_v53, 2 }
 0x370   :  { %v3366_v7 = vadd.f32 %v3365_v6, %v3364_v53  ;;  %v4420_v53 = vld [vmem:[#allocation2 + $0x58] sm:$0xff] }
 0x372   :  { %v3367_v13 = vrot.slane %v3366_v7, 1 }
 0x374   :  { %v3368_v47 = vadd.f32 %v3367_v13, %v3366_v7 }
 0x376   :  { %v3369_v24 = vadd.f32 %v3368_v47, %v3299_v22  ;;  %v4421_v22 = vld [vmem:[#allocation2 + $0x50] sm:$0xff] }
 0x378   :  { %3370 = vst [vmem:[%s6527_s6] sm:$0x1] %v3369_v24 }
 0x3bd   :  { %v4228_v46 = vpop.f32.mrb[0].mxu1 }
 0x3be   :  { %2967 = vst.msk [vmem:[%s6525_s4 + $0x8] sm:$0xff] %vm154_vm0, %v4228_v46  ;;  %v3031_v30 = vsub.f32 %v4228_v46, %v4410_v63  ;;  %v2647_v27 = vpop.f32.mrb[1].mxu1 }
 0x3bf   :  { %2966 = vst.msk [vmem:[%s6525_s4] sm:$0xff] %vm154_vm0, %v2647_v27  ;;  %v3030_v48 = vsub.f32 %v2647_v27, %v4411_v40 }
 0x3c0   :  { %v3096_v3 = vmul.f32 %v3031_v30, %v3031_v30 }
 0x3c1   :  { %v3095_v61 = vmul.f32 %v3030_v48, %v3030_v48  ;;  %v4231_v15 = vpop.f32.mrb[2].mxu1  ;;  %v4422_v48 = vld [vmem:[#allocation2 + $0x68] sm:$0xff] }
 0x3c2   :  { %v3160_v14 = vsel %vm154_vm0, %v3096_v3, 0.0  ;;  %2969 = vst.msk [vmem:[%s6525_s4 + $0x18] sm:$0xff] %vm154_vm0, %v4231_v15  ;;  %v3033_v62 = vsub.f32 %v4231_v15, %v4412_v18  ;;  %v2657_v58 = vpop.f32.mrb[3].mxu1 }
 0x3c3   :  { %v3159_v10 = vsel %vm154_vm0, %v3095_v61, 0.0  ;;  %2968 = vst.msk [vmem:[%s6525_s4 + $0x10] sm:$0xff] %vm154_vm0, %v2657_v58  ;;  %v3032_v35 = vsub.f32 %v2657_v58, %v4413_v17 }
 0x3c4   :  { %v3161_v19 = vadd.f32 %v3160_v14, %v3159_v10  ;;  %v3098_v8 = vmul.f32 %v3033_v62, %v3033_v62  ;;  %v4423_v14 = vld [vmem:[#allocation2 + $0x60] sm:$0xff] }
 0x3c5   :  { %v3097_v32 = vmul.f32 %v3032_v35, %v3032_v35  ;;  %v4234_v34 = vpop.f32.mrb[4].mxu1 }
 0x3c6   :  { %2971 = vst.msk [vmem:[%s6525_s4 + $0x28] sm:$0xff] %vm154_vm0, %v4234_v34  ;;  %v3035_v21 = vsub.f32 %v4234_v34, %v4414_v12  ;;  %v2667_v57 = vpop.f32.mrb[5].mxu1  ;;  %v3164_v31 = vsel %vm154_vm0, %v3098_v8, 0.0  ;;  %v4424_v8 = vld [vmem:[#allocation2 + $0x78] sm:$0xff] }
 0x3c7   :  { %v3162_v11 = vsel %vm154_vm0, %v3097_v32, 0.0  ;;  %2970 = vst.msk [vmem:[%s6525_s4 + $0x20] sm:$0xff] %vm154_vm0, %v2667_v57  ;;  %v3034_v55 = vsub.f32 %v2667_v57, %v4415_v26 }
 0x3c8   :  { %v3163_v37 = vadd.f32 %v3162_v11, %v3161_v19  ;;  %v3100_v28 = vmul.f32 %v3035_v21, %v3035_v21  ;;  %v4425_v21 = vld [vmem:[#allocation2 + $0x70] sm:$0xff] }
 0x3c9   :  { %v3099_v2 = vmul.f32 %v3034_v55, %v3034_v55  ;;  %v4237_v39 = vpop.f32.mrb[6].mxu1 }
 0x3ca   :  { %v3165_v16 = vadd.f32 %v3164_v31, %v3163_v37  ;;  %2973 = vst.msk [vmem:[%s6525_s4 + $0x38] sm:$0xff] %vm154_vm0, %v4237_v39  ;;  %v3037_v20 = vsub.f32 %v4237_v39, %v4416_v43  ;;  %v2677_v1 = vpop.f32.mrb[7].mxu1  ;;  %v3168_v50 = vsel %vm154_vm0, %v3100_v28, 0.0 }
 0x3cb   :  { %v3166_v5 = vsel %vm154_vm0, %v3099_v2, 0.0  ;;  %2972 = vst.msk [vmem:[%s6525_s4 + $0x30] sm:$0xff] %vm154_vm0, %v2677_v1  ;;  %v3036_v9 = vsub.f32 %v2677_v1, %v4417_v45  ;;  %v4426_v2 = vld [vmem:[#allocation2 + $0x88] sm:$0xff] }
 0x3cc   :  { %v3167_v0 = vadd.f32 %v3166_v5, %v3165_v16  ;;  %v3102_v44 = vmul.f32 %v3037_v20, %v3037_v20  ;;  %v4427_v20 = vld [vmem:[#allocation2 + $0x80] sm:$0xff] }
 0x3cd   :  { %v3101_v41 = vmul.f32 %v3036_v9, %v3036_v9  ;;  %v4240_v60 = vpop.f32.mrb[8].mxu1 }
 0x3ce   :  { %v3169_v59 = vadd.f32 %v3168_v50, %v3167_v0  ;;  %2975 = vst.msk [vmem:[%s6525_s4 + $0x48] sm:$0xff] %vm154_vm0, %v4240_v60  ;;  %v3039_v56 = vsub.f32 %v4240_v60, %v4418_v42  ;;  %v2687_v51 = vpop.f32.mrb[9].mxu1  ;;  %v3172_v36 = vsel %vm154_vm0, %v3102_v44, 0.0 }
 0x3cf   :  { %v3170_v49 = vsel %vm154_vm0, %v3101_v41, 0.0  ;;  %2974 = vst.msk [vmem:[%s6525_s4 + $0x40] sm:$0xff] %vm154_vm0, %v2687_v51  ;;  %v3038_v52 = vsub.f32 %v2687_v51, %v4419_v4  ;;  %v4428_v41 = vld [vmem:[#allocation2 + $0x98] sm:$0xff] }
 0x3d0   :  { %v3171_v38 = vadd.f32 %v3170_v49, %v3169_v59  ;;  %v3104_v54 = vmul.f32 %v3039_v56, %v3039_v56  ;;  %v4429_v56 = vld [vmem:[#allocation2 + $0x90] sm:$0xff] }
 0x3d1   :  { %v3103_v29 = vmul.f32 %v3038_v52, %v3038_v52  ;;  %v4243_v25 = vpop.f32.mrb[10].mxu1 }
 0x3d2   :  { %v3173_v23 = vadd.f32 %v3172_v36, %v3171_v38  ;;  %2977 = vst.msk [vmem:[%s6525_s4 + $0x58] sm:$0xff] %vm154_vm0, %v4243_v25  ;;  %v3041_v6 = vsub.f32 %v4243_v25, %v4420_v53  ;;  %v2697_v7 = vpop.f32.mrb[11].mxu1  ;;  %v3176_v46 = vsel %vm154_vm0, %v3104_v54, 0.0 }
 0x3d3   :  { %v3174_v13 = vsel %vm154_vm0, %v3103_v29, 0.0  ;;  %2976 = vst.msk [vmem:[%s6525_s4 + $0x50] sm:$0xff] %vm154_vm0, %v2697_v7  ;;  %v3040_v47 = vsub.f32 %v2697_v7, %v4421_v22  ;;  %v4430_v29 = vld [vmem:[#allocation2 + $0xa8] sm:$0xff] }
 0x3d4   :  { %v3175_v24 = vadd.f32 %v3174_v13, %v3173_v23  ;;  %v3106_v63 = vmul.f32 %v3041_v6, %v3041_v6  ;;  %v4431_v6 = vld [vmem:[#allocation2 + $0xa0] sm:$0xff] }
 0x3d5   :  { %v3105_v30 = vmul.f32 %v3040_v47, %v3040_v47  ;;  %v4246_v27 = vpop.f32.mrb[12].mxu1 }
 0x3d6   :  { %v3177_v40 = vadd.f32 %v3176_v46, %v3175_v24  ;;  %2979 = vst.msk [vmem:[%s6525_s4 + $0x68] sm:$0xff] %vm154_vm0, %v4246_v27  ;;  %v3043_v3 = vsub.f32 %v4246_v27, %v4422_v48  ;;  %v2707_v61 = vpop.f32.mrb[13].mxu1  ;;  %v3180_v58 = vsel %vm154_vm0, %v3106_v63, 0.0 }
 0x3d7   :  { %v3178_v15 = vsel %vm154_vm0, %v3105_v30, 0.0  ;;  %2978 = vst.msk [vmem:[%s6525_s4 + $0x60] sm:$0xff] %vm154_vm0, %v2707_v61  ;;  %v3042_v18 = vsub.f32 %v2707_v61, %v4423_v14  ;;  %v4432_v30 = vld [vmem:[#allocation2 + $0xb8] sm:$0xff] }
 0x3d8   :  { %v3179_v62 = vadd.f32 %v3178_v15, %v3177_v40  ;;  %v3108_v10 = vmul.f32 %v3043_v3, %v3043_v3  ;;  %v4433_v3 = vld [vmem:[#allocation2 + $0xb0] sm:$0xff] }
 0x3d9   :  { %v3107_v17 = vmul.f32 %v3042_v18, %v3042_v18  ;;  %v4249_v35 = vpop.f32.mrb[14].mxu1 }
 0x3da   :  { %v3181_v19 = vadd.f32 %v3180_v58, %v3179_v62  ;;  %2981 = vst.msk [vmem:[%s6525_s4 + $0x78] sm:$0xff] %vm154_vm0, %v4249_v35  ;;  %v3045_v32 = vsub.f32 %v4249_v35, %v4424_v8  ;;  %v2717_v34 = vpop.f32.mrb[15].mxu1  ;;  %v3184_v26 = vsel %vm154_vm0, %v3108_v10, 0.0 }
 0x3db   :  { %v3182_v12 = vsel %vm154_vm0, %v3107_v17, 0.0  ;;  %2980 = vst.msk [vmem:[%s6525_s4 + $0x70] sm:$0xff] %vm154_vm0, %v2717_v34  ;;  %v3044_v57 = vsub.f32 %v2717_v34, %v4425_v21  ;;  %v4434_v17 = vld [vmem:[#allocation2 + $0xc8] sm:$0xff] }
 0x3dc   :  { %v3183_v11 = vadd.f32 %v3182_v12, %v3181_v19  ;;  %v3110_v55 = vmul.f32 %v3045_v32, %v3045_v32  ;;  %v4435_v32 = vld [vmem:[#allocation2 + $0xc0] sm:$0xff] }
 0x3dd   :  { %v3109_v37 = vmul.f32 %v3044_v57, %v3044_v57  ;;  %v4252_v31 = vpop.f32.mrb[16].mxu1 }
 0x3de   :  { %v3185_v28 = vadd.f32 %v3184_v26, %v3183_v11  ;;  %2983 = vst.msk [vmem:[%s6525_s4 + $0x88] sm:$0xff] %vm154_vm0, %v4252_v31  ;;  %v3047_v39 = vsub.f32 %v4252_v31, %v4426_v2  ;;  %v2727_v16 = vpop.f32.mrb[17].mxu1  ;;  %v3188_v45 = vsel %vm154_vm0, %v3110_v55, 0.0 }
 0x3df   :  { %v3186_v43 = vsel %vm154_vm0, %v3109_v37, 0.0  ;;  %2982 = vst.msk [vmem:[%s6525_s4 + $0x80] sm:$0xff] %vm154_vm0, %v2727_v16  ;;  %v3046_v1 = vsub.f32 %v2727_v16, %v4427_v20  ;;  %v4436_v37 = vld [vmem:[#allocation2 + $0xd8] sm:$0xff] }
 0x3e0   :  { %v3187_v5 = vadd.f32 %v3186_v43, %v3185_v28  ;;  %v3112_v9 = vmul.f32 %v3047_v39, %v3047_v39  ;;  %v4437_v39 = vld [vmem:[#allocation2 + $0xd0] sm:$0xff] }
 0x3e1   :  { %v3111_v0 = vmul.f32 %v3046_v1, %v3046_v1  ;;  %v4255_v50 = vpop.f32.mrb[18].mxu1 }
 0x3e2   :  { %v3189_v44 = vadd.f32 %v3188_v45, %v3187_v5  ;;  %2985 = vst.msk [vmem:[%s6525_s4 + $0x98] sm:$0xff] %vm154_vm0, %v4255_v50  ;;  %v3049_v60 = vsub.f32 %v4255_v50, %v4428_v41  ;;  %v2737_v59 = vpop.f32.mrb[19].mxu1  ;;  %v3192_v4 = vsel %vm154_vm0, %v3112_v9, 0.0 }
 0x3e3   :  { %v3190_v42 = vsel %vm154_vm0, %v3111_v0, 0.0  ;;  %2984 = vst.msk [vmem:[%s6525_s4 + $0x90] sm:$0xff] %vm154_vm0, %v2737_v59  ;;  %v3048_v51 = vsub.f32 %v2737_v59, %v4429_v56  ;;  %v4438_v0 = vld [vmem:[#allocation2 + $0xe8] sm:$0xff] }
 0x3e4   :  { %v3191_v49 = vadd.f32 %v3190_v42, %v3189_v44  ;;  %v3114_v52 = vmul.f32 %v3049_v60, %v3049_v60  ;;  %v4439_v60 = vld [vmem:[#allocation2 + $0xe0] sm:$0xff] }
 0x3e5   :  { %v3113_v38 = vmul.f32 %v3048_v51, %v3048_v51  ;;  %v4258_v36 = vpop.f32.mrb[20].mxu1 }
 0x3e6   :  { %v3193_v54 = vadd.f32 %v3192_v4, %v3191_v49  ;;  %2987 = vst.msk [vmem:[%s6525_s4 + $0xa8] sm:$0xff] %vm154_vm0, %v4258_v36  ;;  %v3051_v25 = vsub.f32 %v4258_v36, %v4430_v29  ;;  %v2747_v23 = vpop.f32.mrb[21].mxu1  ;;  %v3196_v22 = vsel %vm154_vm0, %v3114_v52, 0.0 }
 0x3e7   :  { %v3194_v53 = vsel %vm154_vm0, %v3113_v38, 0.0  ;;  %2986 = vst.msk [vmem:[%s6525_s4 + $0xa0] sm:$0xff] %vm154_vm0, %v2747_v23  ;;  %v3050_v7 = vsub.f32 %v2747_v23, %v4431_v6  ;;  %v4440_v38 = vld [vmem:[#allocation2 + $0xf8] sm:$0xff] }
 0x3e8   :  { %v3195_v13 = vadd.f32 %v3194_v53, %v3193_v54  ;;  %v3116_v47 = vmul.f32 %v3051_v25, %v3051_v25  ;;  %v4441_v25 = vld [vmem:[#allocation2 + $0xf0] sm:$0xff] }
 0x3e9   :  { %v3115_v24 = vmul.f32 %v3050_v7, %v3050_v7  ;;  %v4261_v46 = vpop.f32.mrb[22].mxu1 }
 0x3ea   :  { %v3197_v63 = vadd.f32 %v3196_v22, %v3195_v13  ;;  %2989 = vst.msk [vmem:[%s6525_s4 + $0xb8] sm:$0xff] %vm154_vm0, %v4261_v46  ;;  %v3053_v27 = vsub.f32 %v4261_v46, %v4432_v30  ;;  %v2757_v40 = vpop.f32.mrb[23].mxu1  ;;  %v3200_v14 = vsel %vm154_vm0, %v3116_v47, 0.0 }
 0x3eb   :  { %v3198_v48 = vsel %vm154_vm0, %v3115_v24, 0.0  ;;  %2988 = vst.msk [vmem:[%s6525_s4 + $0xb0] sm:$0xff] %vm154_vm0, %v2757_v40  ;;  %v3052_v61 = vsub.f32 %v2757_v40, %v4433_v3  ;;  %v4442_v24 = vld [vmem:[#allocation2 + $0x108] sm:$0xff] }
 0x3ec   :  { %v3199_v15 = vadd.f32 %v3198_v48, %v3197_v63  ;;  %v3118_v18 = vmul.f32 %v3053_v27, %v3053_v27  ;;  %v4443_v27 = vld [vmem:[#allocation2 + $0x100] sm:$0xff] }
 0x3ed   :  { %v3117_v62 = vmul.f32 %v3052_v61, %v3052_v61  ;;  %v4264_v58 = vpop.f32.mrb[24].mxu1 }
 0x3ee   :  { %v3201_v10 = vadd.f32 %v3200_v14, %v3199_v15  ;;  %2991 = vst.msk [vmem:[%s6525_s4 + $0xc8] sm:$0xff] %vm154_vm0, %v4264_v58  ;;  %v3055_v35 = vsub.f32 %v4264_v58, %v4434_v17  ;;  %v2767_v19 = vpop.f32.mrb[25].mxu1  ;;  %v3204_v21 = vsel %vm154_vm0, %v3118_v18, 0.0 }
 0x3ef   :  { %v3202_v8 = vsel %vm154_vm0, %v3117_v62, 0.0  ;;  %2990 = vst.msk [vmem:[%s6525_s4 + $0xc0] sm:$0xff] %vm154_vm0, %v2767_v19  ;;  %v3054_v34 = vsub.f32 %v2767_v19, %v4435_v32  ;;  %v4444_v62 = vld [vmem:[#allocation2 + $0x118] sm:$0xff] }
 0x3f0   :  { %v3203_v12 = vadd.f32 %v3202_v8, %v3201_v10  ;;  %v3120_v57 = vmul.f32 %v3055_v35, %v3055_v35  ;;  %v4445_v35 = vld [vmem:[#allocation2 + $0x110] sm:$0xff] }
 0x3f1   :  { %v3119_v11 = vmul.f32 %v3054_v34, %v3054_v34  ;;  %v4267_v26 = vpop.f32.mrb[26].mxu1 }
 0x3f2   :  { %v3205_v55 = vadd.f32 %v3204_v21, %v3203_v12  ;;  %2993 = vst.msk [vmem:[%s6525_s4 + $0xd8] sm:$0xff] %vm154_vm0, %v4267_v26  ;;  %v3057_v31 = vsub.f32 %v4267_v26, %v4436_v37  ;;  %v2777_v28 = vpop.f32.mrb[27].mxu1  ;;  %v3208_v20 = vsel %vm154_vm0, %v3120_v57, 0.0 }
 0x3f3   :  { %v3206_v2 = vsel %vm154_vm0, %v3119_v11, 0.0  ;;  %2992 = vst.msk [vmem:[%s6525_s4 + $0xd0] sm:$0xff] %vm154_vm0, %v2777_v28  ;;  %v3056_v16 = vsub.f32 %v2777_v28, %v4437_v39  ;;  %v4446_v11 = vld [vmem:[#allocation2 + $0x128] sm:$0xff] }
 0x3f4   :  { %v3207_v43 = vadd.f32 %v3206_v2, %v3205_v55  ;;  %v3122_v1 = vmul.f32 %v3057_v31, %v3057_v31  ;;  %v4447_v31 = vld [vmem:[#allocation2 + $0x120] sm:$0xff] }
 0x3f5   :  { %v3121_v5 = vmul.f32 %v3056_v16, %v3056_v16  ;;  %v4270_v45 = vpop.f32.mrb[28].mxu1 }
 0x3f6   :  { %v3209_v9 = vadd.f32 %v3208_v20, %v3207_v43  ;;  %2995 = vst.msk [vmem:[%s6525_s4 + $0xe8] sm:$0xff] %vm154_vm0, %v4270_v45  ;;  %v3059_v50 = vsub.f32 %v4270_v45, %v4438_v0  ;;  %v2787_v44 = vpop.f32.mrb[29].mxu1  ;;  %v3212_v56 = vsel %vm154_vm0, %v3122_v1, 0.0 }
 0x3f7   :  { %v3210_v41 = vsel %vm154_vm0, %v3121_v5, 0.0  ;;  %2994 = vst.msk [vmem:[%s6525_s4 + $0xe0] sm:$0xff] %vm154_vm0, %v2787_v44  ;;  %v3058_v59 = vsub.f32 %v2787_v44, %v4439_v60  ;;  %v4448_v5 = vld [vmem:[#allocation2 + $0x138] sm:$0xff] }
 0x3f8   :  { %v3211_v42 = vadd.f32 %v3210_v41, %v3209_v9  ;;  %v3124_v51 = vmul.f32 %v3059_v50, %v3059_v50  ;;  %v4449_v50 = vld [vmem:[#allocation2 + $0x130] sm:$0xff] }
 0x3f9   :  { %v3123_v49 = vmul.f32 %v3058_v59, %v3058_v59  ;;  %v4273_v4 = vpop.f32.mrb[30].mxu1 }
 0x3fa   :  { %v3213_v52 = vadd.f32 %v3212_v56, %v3211_v42  ;;  %2997 = vst.msk [vmem:[%s6525_s4 + $0xf8] sm:$0xff] %vm154_vm0, %v4273_v4  ;;  %v3061_v36 = vsub.f32 %v4273_v4, %v4440_v38  ;;  %v2797_v54 = vpop.f32.mrb[31].mxu1  ;;  %v3216_v6 = vsel %vm154_vm0, %v3124_v51, 0.0 }
 0x3fb   :  { %v3214_v29 = vsel %vm154_vm0, %v3123_v49, 0.0  ;;  %2996 = vst.msk [vmem:[%s6525_s4 + $0xf0] sm:$0xff] %vm154_vm0, %v2797_v54  ;;  %v3060_v23 = vsub.f32 %v2797_v54, %v4441_v25  ;;  %v4450_v49 = vld [vmem:[#allocation2 + $0x148] sm:$0xff] }
 0x3fc   :  { %v3215_v53 = vadd.f32 %v3214_v29, %v3213_v52  ;;  %v3126_v7 = vmul.f32 %v3061_v36, %v3061_v36  ;;  %v4451_v36 = vld [vmem:[#allocation2 + $0x140] sm:$0xff] }
 0x3fd   :  { %v3125_v13 = vmul.f32 %v3060_v23, %v3060_v23  ;;  %v4276_v22 = vpop.f32.mrb[32].mxu1 }
 0x3fe   :  { %v3217_v47 = vadd.f32 %v3216_v6, %v3215_v53  ;;  %2999 = vst.msk [vmem:[%s6525_s4 + $0x108] sm:$0xff] %vm154_vm0, %v4276_v22  ;;  %v3063_v46 = vsub.f32 %v4276_v22, %v4442_v24  ;;  %v2807_v63 = vpop.f32.mrb[33].mxu1  ;;  %v3220_v3 = vsel %vm154_vm0, %v3126_v7, 0.0 }
 0x3ff   :  { %v3218_v30 = vsel %vm154_vm0, %v3125_v13, 0.0  ;;  %2998 = vst.msk [vmem:[%s6525_s4 + $0x100] sm:$0xff] %vm154_vm0, %v2807_v63  ;;  %v3062_v40 = vsub.f32 %v2807_v63, %v4443_v27  ;;  %v4452_v13 = vld [vmem:[#allocation2 + $0x158] sm:$0xff] }
 0x400   :  { %v3219_v48 = vadd.f32 %v3218_v30, %v3217_v47  ;;  %v3128_v61 = vmul.f32 %v3063_v46, %v3063_v46  ;;  %v4453_v46 = vld [vmem:[#allocation2 + $0x150] sm:$0xff] }
 0x401   :  { %v3127_v15 = vmul.f32 %v3062_v40, %v3062_v40  ;;  %v4279_v14 = vpop.f32.mrb[34].mxu1 }
 0x402   :  { %v3221_v18 = vadd.f32 %v3220_v3, %v3219_v48  ;;  %3001 = vst.msk [vmem:[%s6525_s4 + $0x118] sm:$0xff] %vm154_vm0, %v4279_v14  ;;  %v3065_v58 = vsub.f32 %v4279_v14, %v4444_v62  ;;  %v2817_v10 = vpop.f32.mrb[35].mxu1  ;;  %v3224_v32 = vsel %vm154_vm0, %v3128_v61, 0.0 }
 0x403   :  { %v3222_v17 = vsel %vm154_vm0, %v3127_v15, 0.0  ;;  %3000 = vst.msk [vmem:[%s6525_s4 + $0x110] sm:$0xff] %vm154_vm0, %v2817_v10  ;;  %v3064_v19 = vsub.f32 %v2817_v10, %v4445_v35  ;;  %v4454_v15 = vld [vmem:[#allocation2 + $0x168] sm:$0xff] }
 0x404   :  { %v3223_v8 = vadd.f32 %v3222_v17, %v3221_v18  ;;  %v3130_v34 = vmul.f32 %v3065_v58, %v3065_v58  ;;  %v4455_v58 = vld [vmem:[#allocation2 + $0x160] sm:$0xff] }
 0x405   :  { %v3129_v12 = vmul.f32 %v3064_v19, %v3064_v19  ;;  %v4282_v21 = vpop.f32.mrb[36].mxu1 }
 0x406   :  { %v3225_v57 = vadd.f32 %v3224_v32, %v3223_v8  ;;  %3003 = vst.msk [vmem:[%s6525_s4 + $0x128] sm:$0xff] %vm154_vm0, %v4282_v21  ;;  %v3067_v26 = vsub.f32 %v4282_v21, %v4446_v11  ;;  %v2827_v55 = vpop.f32.mrb[37].mxu1  ;;  %v3228_v39 = vsel %vm154_vm0, %v3130_v34, 0.0 }
 0x407   :  { %v3226_v37 = vsel %vm154_vm0, %v3129_v12, 0.0  ;;  %3002 = vst.msk [vmem:[%s6525_s4 + $0x120] sm:$0xff] %vm154_vm0, %v2827_v55  ;;  %v3066_v28 = vsub.f32 %v2827_v55, %v4447_v31  ;;  %v4456_v12 = vld [vmem:[#allocation2 + $0x178] sm:$0xff] }
 0x408   :  { %v3227_v2 = vadd.f32 %v3226_v37, %v3225_v57  ;;  %v3132_v16 = vmul.f32 %v3067_v26, %v3067_v26  ;;  %v4457_v26 = vld [vmem:[#allocation2 + $0x170] sm:$0xff] }
 0x409   :  { %v3131_v43 = vmul.f32 %v3066_v28, %v3066_v28  ;;  %v4285_v20 = vpop.f32.mrb[38].mxu1 }
 0x40a   :  { %v3229_v1 = vadd.f32 %v3228_v39, %v3227_v2  ;;  %3005 = vst.msk [vmem:[%s6525_s4 + $0x138] sm:$0xff] %vm154_vm0, %v4285_v20  ;;  %v3069_v45 = vsub.f32 %v4285_v20, %v4448_v5  ;;  %v2837_v9 = vpop.f32.mrb[39].mxu1  ;;  %v3232_v60 = vsel %vm154_vm0, %v3132_v16, 0.0 }
 0x40b   :  { %v3230_v0 = vsel %vm154_vm0, %v3131_v43, 0.0  ;;  %3004 = vst.msk [vmem:[%s6525_s4 + $0x130] sm:$0xff] %vm154_vm0, %v2837_v9  ;;  %v3068_v44 = vsub.f32 %v2837_v9, %v4449_v50  ;;  %v4458_v43 = vld [vmem:[#allocation2 + $0x188] sm:$0xff] }
 0x40c   :  { %v3231_v41 = vadd.f32 %v3230_v0, %v3229_v1  ;;  %v3134_v59 = vmul.f32 %v3069_v45, %v3069_v45  ;;  %v4459_v45 = vld [vmem:[#allocation2 + $0x180] sm:$0xff] }
 0x40d   :  { %v3133_v42 = vmul.f32 %v3068_v44, %v3068_v44  ;;  %v4288_v56 = vpop.f32.mrb[40].mxu1 }
 0x40e   :  { %v3233_v51 = vadd.f32 %v3232_v60, %v3231_v41  ;;  %3007 = vst.msk [vmem:[%s6525_s4 + $0x148] sm:$0xff] %vm154_vm0, %v4288_v56  ;;  %v3071_v4 = vsub.f32 %v4288_v56, %v4450_v49  ;;  %v2847_v52 = vpop.f32.mrb[41].mxu1  ;;  %v3236_v25 = vsel %vm154_vm0, %v3134_v59, 0.0 }
 0x40f   :  { %v3234_v38 = vsel %vm154_vm0, %v3133_v42, 0.0  ;;  %3006 = vst.msk [vmem:[%s6525_s4 + $0x140] sm:$0xff] %vm154_vm0, %v2847_v52  ;;  %v3070_v54 = vsub.f32 %v2847_v52, %v4451_v36  ;;  %v4460_v42 = vld [vmem:[#allocation2 + $0x198] sm:$0xff] }
 0x410   :  { %v3235_v29 = vadd.f32 %v3234_v38, %v3233_v51  ;;  %v3136_v23 = vmul.f32 %v3071_v4, %v3071_v4  ;;  %v4461_v4 = vld [vmem:[#allocation2 + $0x190] sm:$0xff] }
 0x411   :  { %v3135_v53 = vmul.f32 %v3070_v54, %v3070_v54  ;;  %v4291_v6 = vpop.f32.mrb[42].mxu1 }
 0x412   :  { %v3237_v7 = vadd.f32 %v3236_v25, %v3235_v29  ;;  %3009 = vst.msk [vmem:[%s6525_s4 + $0x158] sm:$0xff] %vm154_vm0, %v4291_v6  ;;  %v3073_v22 = vsub.f32 %v4291_v6, %v4452_v13  ;;  %v2857_v47 = vpop.f32.mrb[43].mxu1  ;;  %v3240_v27 = vsel %vm154_vm0, %v3136_v23, 0.0 }
 0x413   :  { %v3238_v24 = vsel %vm154_vm0, %v3135_v53, 0.0  ;;  %3008 = vst.msk [vmem:[%s6525_s4 + $0x150] sm:$0xff] %vm154_vm0, %v2857_v47  ;;  %v3072_v63 = vsub.f32 %v2857_v47, %v4453_v46  ;;  %v4462_v53 = vld [vmem:[#allocation2 + $0x1a8] sm:$0xff] }
 0x414   :  { %v3239_v30 = vadd.f32 %v3238_v24, %v3237_v7  ;;  %v3138_v40 = vmul.f32 %v3073_v22, %v3073_v22  ;;  %v4463_v22 = vld [vmem:[#allocation2 + $0x1a0] sm:$0xff] }
 0x415   :  { %v3137_v48 = vmul.f32 %v3072_v63, %v3072_v63  ;;  %v4294_v3 = vpop.f32.mrb[44].mxu1 }
 0x416   :  { %v3241_v61 = vadd.f32 %v3240_v27, %v3239_v30  ;;  %3011 = vst.msk [vmem:[%s6525_s4 + $0x168] sm:$0xff] %vm154_vm0, %v4294_v3  ;;  %v3075_v14 = vsub.f32 %v4294_v3, %v4454_v15  ;;  %v2867_v18 = vpop.f32.mrb[45].mxu1  ;;  %v3244_v35 = vsel %vm154_vm0, %v3138_v40, 0.0 }
 0x417   :  { %v3242_v62 = vsel %vm154_vm0, %v3137_v48, 0.0  ;;  %3010 = vst.msk [vmem:[%s6525_s4 + $0x160] sm:$0xff] %vm154_vm0, %v2867_v18  ;;  %v3074_v10 = vsub.f32 %v2867_v18, %v4455_v58  ;;  %v4464_v48 = vld [vmem:[#allocation2 + $0x1b8] sm:$0xff] }
 0x418   :  { %v3243_v17 = vadd.f32 %v3242_v62, %v3241_v61  ;;  %v3140_v19 = vmul.f32 %v3075_v14, %v3075_v14  ;;  %v4465_v14 = vld [vmem:[#allocation2 + $0x1b0] sm:$0xff] }
 0x419   :  { %v3139_v8 = vmul.f32 %v3074_v10, %v3074_v10  ;;  %v4297_v32 = vpop.f32.mrb[46].mxu1 }
 0x41a   :  { %v3245_v34 = vadd.f32 %v3244_v35, %v3243_v17  ;;  %3013 = vst.msk [vmem:[%s6525_s4 + $0x178] sm:$0xff] %vm154_vm0, %v4297_v32  ;;  %v3077_v21 = vsub.f32 %v4297_v32, %v4456_v12  ;;  %v2877_v57 = vpop.f32.mrb[47].mxu1  ;;  %v3248_v31 = vsel %vm154_vm0, %v3140_v19, 0.0 }
 0x41b   :  { %v3246_v11 = vsel %vm154_vm0, %v3139_v8, 0.0  ;;  %3012 = vst.msk [vmem:[%s6525_s4 + $0x170] sm:$0xff] %vm154_vm0, %v2877_v57  ;;  %v3076_v55 = vsub.f32 %v2877_v57, %v4457_v26  ;;  %v4466_v8 = vld [vmem:[#allocation2 + $0x1c8] sm:$0xff] }
 0x41c   :  { %v3247_v37 = vadd.f32 %v3246_v11, %v3245_v34  ;;  %v3142_v28 = vmul.f32 %v3077_v21, %v3077_v21  ;;  %v4467_v21 = vld [vmem:[#allocation2 + $0x1c0] sm:$0xff] }
 0x41d   :  { %v3141_v2 = vmul.f32 %v3076_v55, %v3076_v55  ;;  %v4300_v39 = vpop.f32.mrb[48].mxu1 }
 0x41e   :  { %v3249_v16 = vadd.f32 %v3248_v31, %v3247_v37  ;;  %3015 = vst.msk [vmem:[%s6525_s4 + $0x188] sm:$0xff] %vm154_vm0, %v4300_v39  ;;  %v3079_v20 = vsub.f32 %v4300_v39, %v4458_v43  ;;  %v2887_v1 = vpop.f32.mrb[49].mxu1  ;;  %v3252_v50 = vsel %vm154_vm0, %v3142_v28, 0.0 }
 0x41f   :  { %v3250_v5 = vsel %vm154_vm0, %v3141_v2, 0.0  ;;  %3014 = vst.msk [vmem:[%s6525_s4 + $0x180] sm:$0xff] %vm154_vm0, %v2887_v1  ;;  %v3078_v9 = vsub.f32 %v2887_v1, %v4459_v45  ;;  %v4468_v2 = vld [vmem:[#allocation2 + $0x1d8] sm:$0xff] }
 0x420   :  { %v3251_v0 = vadd.f32 %v3250_v5, %v3249_v16  ;;  %v3144_v44 = vmul.f32 %v3079_v20, %v3079_v20  ;;  %v4469_v20 = vld [vmem:[#allocation2 + $0x1d0] sm:$0xff] }
 0x421   :  { %v3143_v41 = vmul.f32 %v3078_v9, %v3078_v9  ;;  %v4303_v60 = vpop.f32.mrb[50].mxu1 }
 0x422   :  { %v3253_v59 = vadd.f32 %v3252_v50, %v3251_v0  ;;  %3017 = vst.msk [vmem:[%s6525_s4 + $0x198] sm:$0xff] %vm154_vm0, %v4303_v60  ;;  %v3081_v56 = vsub.f32 %v4303_v60, %v4460_v42  ;;  %v2897_v51 = vpop.f32.mrb[51].mxu1  ;;  %v3256_v36 = vsel %vm154_vm0, %v3144_v44, 0.0 }
 0x423   :  { %v3254_v49 = vsel %vm154_vm0, %v3143_v41, 0.0  ;;  %3016 = vst.msk [vmem:[%s6525_s4 + $0x190] sm:$0xff] %vm154_vm0, %v2897_v51  ;;  %v3080_v52 = vsub.f32 %v2897_v51, %v4461_v4  ;;  %v4470_v41 = vld [vmem:[#allocation2 + $0x1e8] sm:$0xff] }
 0x424   :  { %v3255_v38 = vadd.f32 %v3254_v49, %v3253_v59  ;;  %v3146_v54 = vmul.f32 %v3081_v56, %v3081_v56  ;;  %v4471_v56 = vld [vmem:[#allocation2 + $0x1e0] sm:$0xff] }
 0x425   :  { %v3145_v29 = vmul.f32 %v3080_v52, %v3080_v52  ;;  %v4306_v25 = vpop.f32.mrb[52].mxu1 }
 0x426   :  { %v3257_v23 = vadd.f32 %v3256_v36, %v3255_v38  ;;  %3019 = vst.msk [vmem:[%s6525_s4 + $0x1a8] sm:$0xff] %vm154_vm0, %v4306_v25  ;;  %v3083_v6 = vsub.f32 %v4306_v25, %v4462_v53  ;;  %v2907_v7 = vpop.f32.mrb[53].mxu1  ;;  %v3260_v46 = vsel %vm154_vm0, %v3146_v54, 0.0 }
 0x427   :  { %v3258_v13 = vsel %vm154_vm0, %v3145_v29, 0.0  ;;  %3018 = vst.msk [vmem:[%s6525_s4 + $0x1a0] sm:$0xff] %vm154_vm0, %v2907_v7  ;;  %v3082_v47 = vsub.f32 %v2907_v7, %v4463_v22  ;;  %v4472_v29 = vld [vmem:[#allocation2 + $0x1f8] sm:$0xff] }
 0x428   :  { %v3259_v24 = vadd.f32 %v3258_v13, %v3257_v23  ;;  %v3148_v63 = vmul.f32 %v3083_v6, %v3083_v6  ;;  %v4473_v6 = vld [vmem:[#allocation2 + $0x1f0] sm:$0xff] }
 0x429   :  { %v3147_v30 = vmul.f32 %v3082_v47, %v3082_v47  ;;  %v4309_v27 = vpop.f32.mrb[54].mxu1 }
 0x42a   :  { %v3261_v40 = vadd.f32 %v3260_v46, %v3259_v24  ;;  %3021 = vst.msk [vmem:[%s6525_s4 + $0x1b8] sm:$0xff] %vm154_vm0, %v4309_v27  ;;  %v3085_v3 = vsub.f32 %v4309_v27, %v4464_v48  ;;  %v2917_v61 = vpop.f32.mrb[55].mxu1  ;;  %v3264_v58 = vsel %vm154_vm0, %v3148_v63, 0.0 }
 0x42b   :  { %v3262_v15 = vsel %vm154_vm0, %v3147_v30, 0.0  ;;  %3020 = vst.msk [vmem:[%s6525_s4 + $0x1b0] sm:$0xff] %vm154_vm0, %v2917_v61  ;;  %v3084_v18 = vsub.f32 %v2917_v61, %v4465_v14 }
 0x42c   :  { %v3263_v62 = vadd.f32 %v3262_v15, %v3261_v40  ;;  %v3150_v10 = vmul.f32 %v3085_v3, %v3085_v3 }
 0x42d   :  { %v3149_v17 = vmul.f32 %v3084_v18, %v3084_v18  ;;  %v4312_v35 = vpop.f32.mrb[56].mxu1 }
 0x42e   :  { %v3265_v19 = vadd.f32 %v3264_v58, %v3263_v62  ;;  %3023 = vst.msk [vmem:[%s6525_s4 + $0x1c8] sm:$0xff] %vm154_vm0, %v4312_v35  ;;  %v3087_v32 = vsub.f32 %v4312_v35, %v4466_v8  ;;  %v2927_v34 = vpop.f32.mrb[57].mxu1  ;;  %v3268_v26 = vsel %vm154_vm0, %v3150_v10, 0.0  ;;  %v3094_v58 = vld [vmem:[#allocation5] sm:$0x1] }
 0x42f   :  { %v3266_v12 = vsel %vm154_vm0, %v3149_v17, 0.0  ;;  %3022 = vst.msk [vmem:[%s6525_s4 + $0x1c0] sm:$0xff] %vm154_vm0, %v2927_v34  ;;  %v3086_v57 = vsub.f32 %v2927_v34, %v4467_v21 }
 0x430   :  { %v3267_v11 = vadd.f32 %v3266_v12, %v3265_v19  ;;  %v3152_v55 = vmul.f32 %v3087_v32, %v3087_v32 }
 0x431   :  { %v3151_v37 = vmul.f32 %v3086_v57, %v3086_v57  ;;  %v4315_v31 = vpop.f32.mrb[58].mxu1 }
 0x432   :  { %v3269_v28 = vadd.f32 %v3268_v26, %v3267_v11  ;;  %3025 = vst.msk [vmem:[%s6525_s4 + $0x1d8] sm:$0xff] %vm154_vm0, %v4315_v31  ;;  %v3089_v39 = vsub.f32 %v4315_v31, %v4468_v2  ;;  %v2937_v16 = vpop.f32.mrb[59].mxu1  ;;  %v3272_v45 = vsel %vm154_vm0, %v3152_v55, 0.0 }
 0x433   :  { %v3270_v43 = vsel %vm154_vm0, %v3151_v37, 0.0  ;;  %3024 = vst.msk [vmem:[%s6525_s4 + $0x1d0] sm:$0xff] %vm154_vm0, %v2937_v16  ;;  %v3088_v1 = vsub.f32 %v2937_v16, %v4469_v20 }
 0x434   :  { %v3271_v5 = vadd.f32 %v3270_v43, %v3269_v28  ;;  %v3154_v9 = vmul.f32 %v3089_v39, %v3089_v39 }
 0x435   :  { %v3153_v0 = vmul.f32 %v3088_v1, %v3088_v1  ;;  %v4318_v50 = vpop.f32.mrb[60].mxu1 }
 0x436   :  { %v3273_v44 = vadd.f32 %v3272_v45, %v3271_v5  ;;  %3027 = vst.msk [vmem:[%s6525_s4 + $0x1e8] sm:$0xff] %vm154_vm0, %v4318_v50  ;;  %v3091_v60 = vsub.f32 %v4318_v50, %v4470_v41  ;;  %v2947_v59 = vpop.f32.mrb[61].mxu1  ;;  %v3276_v4 = vsel %vm154_vm0, %v3154_v9, 0.0 }
 0x437   :  { %v3274_v42 = vsel %vm154_vm0, %v3153_v0, 0.0  ;;  %3026 = vst.msk [vmem:[%s6525_s4 + $0x1e0] sm:$0xff] %vm154_vm0, %v2947_v59  ;;  %v3090_v51 = vsub.f32 %v2947_v59, %v4471_v56 }
 0x438   :  { %v3275_v49 = vadd.f32 %v3274_v42, %v3273_v44  ;;  %v3156_v52 = vmul.f32 %v3091_v60, %v3091_v60 }
 0x439   :  { %v3155_v38 = vmul.f32 %v3090_v51, %v3090_v51  ;;  %v4321_v36 = vpop.f32.mrb[62].mxu1 }
 0x43a   :  { %v3277_v54 = vadd.f32 %v3276_v4, %v3275_v49  ;;  %3029 = vst.msk [vmem:[%s6525_s4 + $0x1f8] sm:$0xff] %vm154_vm0, %v4321_v36  ;;  %v3093_v25 = vsub.f32 %v4321_v36, %v4472_v29  ;;  %v2957_v23 = vpop.f32.mrb[63].mxu1  ;;  %v3280_v22 = vsel %vm154_vm0, %v3156_v52, 0.0 }
 0x43b   :  { %v3278_v53 = vsel %vm154_vm0, %v3155_v38, 0.0  ;;  %3028 = vst.msk [vmem:[%s6525_s4 + $0x1f0] sm:$0xff] %vm154_vm0, %v2957_v23  ;;  %v3092_v7 = vsub.f32 %v2957_v23, %v4473_v6  ;;  %s4527_s4 = smov [#allocation5]  }
 0x43c   :  { %v3279_v13 = vadd.f32 %v3278_v53, %v3277_v54  ;;  %v3158_v47 = vmul.f32 %v3093_v25, %v3093_v25  ;;  %s3397_s17 = sshll.u32 %s4527_s4, 4  ;;  %s3398_s17 = int_to_ptr.vmem [resolvable:$true] %s3397_s17 }
 0x43d   :  { %v3157_v24 = vmul.f32 %v3092_v7, %v3092_v7  ;;  %s4496_s18 = scalar_lea.vmem %s3398_s17, 16  ;;  %s4500_s19 = scalar_lea.vmem %s3398_s17, 32 }
 0x43e   :  { %v3281_v46 = vadd.f32 %v3280_v22, %v3279_v13  ;;  %v3284_v27 = vsel %vm154_vm0, %v3158_v47, 0.0  ;;  %p4497_p8 = scmp.ne.s32.totalorder %s3398_s17, %s4496_s18  ;;  %p4501_p9 = scmp.lt.s32.totalorder %s3398_s17, %s3398_s17 }
 0x43f   :  { %v3282_v63 = vsel %vm154_vm0, %v3157_v24, 0.0  ;;  %p4502_p10 = scmp.lt.s32.totalorder %s4500_s19, %s4496_s18 }
 0x440   :  { %v3283_v30 = vadd.f32 %v3282_v63, %v3281_v46 }
 0x441   :  { %p4503_p11 = por %p4502_p10, %p4501_p9 }
 0x442   :  { %v3285_v40 = vadd.f32 %v3284_v27, %v3283_v30 }
 0x443   :  { %p4504_p12 = pnand %p4503_p11, %p4497_p8 }
 0x444   :  { %3286 = vadd.xlane.f32.xlu0 %v3285_v40 }
 0x4d1   :  { %v3287_v48 = vpop.xlane.xlu0 %3286 }
 0x4d2   :  { %v3288_v3 = vrot.slane %v3287_v48, 4 }
 0x4d4   :  { %v3289_v61 = vadd.f32 %v3288_v3, %v3287_v48 }
 0x4d6   :  { %v3290_v15 = vrot.slane %v3289_v61, 2 }
 0x4d8   :  { %v3291_v14 = vadd.f32 %v3290_v15, %v3289_v61 }
 0x4da   :  { %v3292_v18 = vrot.slane %v3291_v14, 1 }
 0x4dc   :  { %v3293_v62 = vadd.f32 %v3292_v18, %v3291_v14 }
 0x4de   :  { %4402 = vpush %v3293_v62 }
 0x50f   :  { %s4403_s2 = spop %4402 }
 0x510   :  { %v3295_v10 = vstv %s4403_s2 }
 0x511   :  { %v3296_v17 = vadd.f32 %v3295_v10, %v3094_v58 }
 0x513   :  { %3298 = vst.msk [vmem:[#allocation5] sm:$0x1] %vm71_vm14, %v3296_v17 }
 0x514   :  { %4507 = shalt.err (!%p4504_p12)
}
 0x515   :  { %s4508_s22 = scalar_lea.hbm %s6526_s5, 16 }
 0x516   :  { %p4509_p13 = scmp.ne.s32.totalorder %s6526_s5, %s4508_s22  ;;  %p4512_p0 = scmp.lt.u32.totalorder %s4508_s22, %s6526_s5 }
 0x518   :  { %p4514_p1 = pnand %p4512_p0, %p4509_p13 }
 0x51a   :  { %4517 = shalt.err (!%p4514_p1)
}
 0x51b   :  { %3400 = dma.vmem_to_hbm [thread:$0]  %s3398_s17, 16, %s6526_s5, [#allocation4]  }
 0x51c   :  { %4520 = dma.done.wait [#allocation4], 16  }
 0x51d   :  { %4521 = vsyncadd [#allocation4], 4294967280 }
 0x51e   :  { %3424 = vsyncpa [#allocation3], 1 }
 0x51f   :  { %3425 = vsyncpa [#allocation4], 1 }

</bundles_post_ra>
